<compile_context>
chip_gen: v7x
topology: tpu7x:2x2x1
jax: 0.10.0
libtpu: 0.0.40
codegen_flags: <defaults>
</compile_context>

<pallas_src>
import functools

import jax
import jax.numpy as jnp
import numpy as np
from jax.experimental import pallas as pl
from jax.experimental.pallas import tpu as pltpu

OBS_DIM = 64                        # observation_space[1]
ACTION_DIM = 16                     # action_space
HIDDEN_SIZES = (512, 512, 512, 512, 256)
HEAD_HIDDEN = 128
NEG_MASK = 100000000.0
OUT_LANES = 128                     # lane-dense output slab width
VALUE_COL = ACTION_DIM              # col 16 of the slab holds value
LOGP_COL = ACTION_DIM + 1           # col 17 of the slab holds logp_a


def _round_up(x, m):
    return (x + m - 1) // m * m


def _device_kind():
    try:
        return jax.devices()[0].device_kind.lower()
    except Exception:
        return ""


def _supports_bf16_eup():
    # v6e / v7x have a bf16 EUP/VPU path; v5e (and older) do not.
    k = _device_kind()
    return ("v6" in k) or ("v7" in k) or ("7x" in k)


def _vmem_limit_bytes():
    k = _device_kind()
    if ("v7" in k) or ("7x" in k):
        return 48 * 1024 * 1024     # v7x: 64 MiB physical per TC -> leave headroom
    if ("v6" in k) or ("v5" in k):
        return 64 * 1024 * 1024     # 128 MiB physical; raise the 16/32 MiB scoped default
    return None                     # unknown chip: keep the compiler default


def _actor_critic_kernel(obs_ref,
                         w0, w1, w2, w3, w4,
                         b0, b1, b2, b3, b4,
                         wh0, bh0, wh1, bh1,
                         pen_ref, act_ref,
                         out_ref, *, bf16_tanh):
    act_dtype = jnp.bfloat16 if bf16_tanh else jnp.float32

    # ---- shared MLP: (Linear -> Tanh) x 5; bf16 weights, f32 accumulate / bias ----
    x = obs_ref[...]                                   # bf16 (TM, 64)
    for w_r, b_r in ((w0, b0), (w1, b1), (w2, b2), (w3, b3), (w4, b4)):
        z = jnp.dot(x, w_r[...], preferred_element_type=jnp.float32) + b_r[...]
        x = jnp.tanh(z.astype(act_dtype)).astype(jnp.bfloat16)

    # ---- fused pi/v head, first layer: one 256-wide matmul (fills 256-lane MXU) ----
    zh = jnp.dot(x, wh0[...], preferred_element_type=jnp.float32) + bh0[...]
    h_both = jnp.tanh(zh.astype(act_dtype)).astype(jnp.bfloat16)  # (TM, 256)

    # ---- fused second layer: block-diagonal (256,128) weight, lane-aligned output ----
    # cols 0:16 -> raw pi logits, col 16 -> value, remaining cols -> 0   (all f32)
    y2 = jnp.dot(h_both, wh1[...], preferred_element_type=jnp.float32) + bh1[...]

    # pen_ref is lane-dense (TM,128) bf16: cols 0:16 = (legal-1)*1e8, rest = 0
    masked = y2 + pen_ref[...].astype(jnp.float32)

    # ---- Categorical(logits).log_prob(act): masked log-softmax + one-hot gather ----
    col = jax.lax.broadcasted_iota(jnp.int32, masked.shape, 1)
    valid = col < ACTION_DIM
    logits_sm = jnp.where(valid, masked, -1e30)
    m = jnp.max(logits_sm, axis=-1, keepdims=True)
    lse = m + jnp.log(jnp.sum(jnp.exp(logits_sm - m), axis=-1, keepdims=True))
    onehot = (col == act_ref[...]).astype(jnp.float32)       # act_ref is (TM,1) int32
    logp_a = jnp.sum((masked - lse) * onehot, axis=-1, keepdims=True)

    # ---- single lane-dense store: logits | value | logp_a packed in one (TM,128) slab ----
    out_ref[...] = jnp.where(col == LOGP_COL,
                             jnp.broadcast_to(logp_a, masked.shape),
                             masked)


def init_params(key):
    """Deterministic orthogonal-init weights (gain=1.0), zero biases (as torch __init__).
    Weights stored pre-transposed as (in_features, out_features)."""
    ortho = jax.nn.initializers.orthogonal(scale=1.0)

    def make_stack(key, sizes):
        ws, bs = [], []
        for j in range(len(sizes) - 1):
            key, k = jax.random.split(key)
            ws.append(ortho(k, (sizes[j], sizes[j + 1]), jnp.float32))
            bs.append(jnp.zeros((1, sizes[j + 1]), jnp.float32))
        return key, ws, bs

    key, sw, sb = make_stack(key, [OBS_DIM] + list(HIDDEN_SIZES))
    key, pw, pb = make_stack(key, [HIDDEN_SIZES[-1], HEAD_HIDDEN, ACTION_DIM])
    key, vw, vb = make_stack(key, [HIDDEN_SIZES[-1], HEAD_HIDDEN, 1])
    return {"shared_w": sw, "shared_b": sb,
            "pi_w": pw, "pi_b": pb,
            "v_w": vw, "v_b": vb}


def pack_params(params):
    """One-time conversion to the kernel layout: bf16 weights, fused heads."""
    packed = {
        "shared_w": [w.astype(jnp.bfloat16) for w in params["shared_w"]],
        "shared_b": [b.astype(jnp.float32) for b in params["shared_b"]],
    }
    # head first layers fused side-by-side: (256, 256) = [pi_w0 | v_w0]
    wh0 = jnp.concatenate([params["pi_w"][0], params["v_w"][0]], axis=1)
    bh0 = jnp.concatenate([params["pi_b"][0], params["v_b"][0]], axis=1)
    # head second layers fused block-diagonally into a lane-aligned (256, 128):
    #   rows 0:128, cols 0:16  <- pi_w1 ; rows 128:256, col 16 <- v_w1
    wh1 = jnp.zeros((2 * HEAD_HIDDEN, OUT_LANES), jnp.float32)
    wh1 = wh1.at[:HEAD_HIDDEN, :ACTION_DIM].set(params["pi_w"][1])
    wh1 = wh1.at[HEAD_HIDDEN:, VALUE_COL:VALUE_COL + 1].set(params["v_w"][1])
    bh1 = jnp.zeros((1, OUT_LANES), jnp.float32)
    bh1 = bh1.at[:, :ACTION_DIM].set(params["pi_b"][1])
    bh1 = bh1.at[:, VALUE_COL:VALUE_COL + 1].set(params["v_b"][1])
    packed["wh0"] = wh0.astype(jnp.bfloat16)
    packed["bh0"] = bh0.astype(jnp.float32)
    packed["wh1"] = wh1.astype(jnp.bfloat16)
    packed["bh1"] = bh1.astype(jnp.float32)
    return packed


@functools.partial(jax.jit,
                   static_argnames=("block_m", "bf16_tanh", "single_buffer_weights"))
def actor_critic_forward(obs, act, legal_action, packed,
                         block_m=512, bf16_tanh=None, single_buffer_weights=True):
    """Returns (masked_logits, logp_a, value) — the tensors defining torch's
    (Categorical(pi), logp_a, value) output."""
    if bf16_tanh is None:
        bf16_tanh = _supports_bf16_eup()

    B = obs.shape[0]
    b8 = _round_up(B, 8)
    tm = min(block_m, b8)
    # Guarantee >= 2 grid steps whenever the batch allows it so
    # dimension_semantics=("parallel",) actually uses both v7x TensorCores.
    if b8 >= 16 and b8 <= tm:
        tm = _round_up(b8 // 2, 8)
    b_pad = _round_up(B, tm)
    grid = (b_pad // tm,)

    # bf16 obs + precomputed additive bf16 penalty: halves per-step input DMA.
    obs_p = obs.astype(jnp.bfloat16)
    pen = (legal_action.astype(jnp.float32) - 1.0) * NEG_MASK          # (B, 16)
    pen_p = jnp.zeros((B, OUT_LANES), jnp.float32).at[:, :ACTION_DIM].set(pen)
    pen_p = pen_p.astype(jnp.bfloat16)
    act_p = act.astype(jnp.int32)[:, None]
    if b_pad != B:   # only materialize padding when actually needed
        pad = b_pad - B
        obs_p = jnp.pad(obs_p, ((0, pad), (0, 0)))
        pen_p = jnp.pad(pen_p, ((0, pad), (0, 0)))
        act_p = jnp.pad(act_p, ((0, pad), (0, 0)))

    const = lambda i: (0, 0)    # weights/biases stay resident across batch tiles
    row = lambda i: (i, 0)      # per-batch-tile inputs/outputs

    def resident_spec(shape):
        if single_buffer_weights:
            # fetched once -> a single VMEM buffer is enough; saves ~2.5 MiB.
            return pl.BlockSpec(shape, const, pipeline_mode=pl.Buffered(1))
        return pl.BlockSpec(shape, const)

    weight_specs = [resident_spec(w.shape) for w in packed["shared_w"]]
    bias_specs = [resident_spec(b.shape) for b in packed["shared_b"]]
    head_specs = [resident_spec(packed[k].shape)
                  for k in ("wh0", "bh0", "wh1", "bh1")]

    macs = (OBS_DIM * HIDDEN_SIZES[0]
            + sum(HIDDEN_SIZES[j] * HIDDEN_SIZES[j + 1]
                  for j in range(len(HIDDEN_SIZES) - 1))
            + HIDDEN_SIZES[-1] * 2 * HEAD_HIDDEN
            + 2 * HEAD_HIDDEN * OUT_LANES)
    cost = pl.CostEstimate(
        flops=2 * macs * b_pad,
        transcendentals=b_pad * (sum(HIDDEN_SIZES) + 2 * HEAD_HIDDEN + ACTION_DIM),
        bytes_accessed=2 * macs + b_pad * (2 * OBS_DIM + 2 * OUT_LANES
                                           + 4 * OUT_LANES + 4),
    )

    vmem_limit = _vmem_limit_bytes()
    cp_kwargs = {"dimension_semantics": ("parallel",)}   # v7x: shard tiles over 2 TCs
    if vmem_limit is not None:
        cp_kwargs["vmem_limit_bytes"] = vmem_limit

    out = pl.pallas_call(
        functools.partial(_actor_critic_kernel, bf16_tanh=bf16_tanh),
        out_shape=jax.ShapeDtypeStruct((b_pad, OUT_LANES), jnp.float32),
        grid=grid,
        in_specs=([pl.BlockSpec((tm, OBS_DIM), row)]
                  + weight_specs + bias_specs + head_specs
                  + [pl.BlockSpec((tm, OUT_LANES), row),
                     pl.BlockSpec((tm, 1), row)]),
        out_specs=pl.BlockSpec((tm, OUT_LANES), row),
        compiler_params=pltpu.CompilerParams(**cp_kwargs),
        cost_estimate=cost,
    )(obs_p,
      *packed["shared_w"], *packed["shared_b"],
      packed["wh0"], packed["bh0"], packed["wh1"], packed["bh1"],
      pen_p, act_p)

    logits = out[:B, :ACTION_DIM]
    value = out[:B, VALUE_COL]
    logp_a = out[:B, LOGP_COL]
    return logits, logp_a, value


def reference_forward(obs, act, legal_action, params, bf16_tanh=False):
    """Pure-JAX reference mirroring the torch forward (same bf16-weight numerics)."""
    act_dtype = jnp.bfloat16 if bf16_tanh else jnp.float32

    def mm(x, w, b):
        return jnp.dot(x.astype(jnp.bfloat16), w.astype(jnp.bfloat16),
                       preferred_element_type=jnp.float32) + b

    def layer(x, w, b):
        return jnp.tanh(mm(x, w, b).astype(act_dtype)).astype(jnp.float32)

    x = obs
    for w, b in zip(params["shared_w"], params["shared_b"]):
        x = layer(x, w, b)
    h = layer(x, params["pi_w"][0], params["pi_b"][0])
    logits = mm(h, params["pi_w"][1], params["pi_b"][1])
    logits = logits - (1.0 - legal_action) * NEG_MASK
    logp = jax.nn.log_softmax(logits, axis=-1)
    logp_a = jnp.take_along_axis(logp, act[:, None].astype(jnp.int32), axis=-1)[:, 0]
    hv = layer(x, params["v_w"][0], params["v_b"][0])
    value = mm(hv, params["v_w"][1], params["v_b"][1])[:, 0]
    return logits, logp_a, value


if __name__ == "__main__":
    key = jax.random.PRNGKey(0)
    kp, ko, kl, ka = jax.random.split(key, 4)

    B = 8
    params = init_params(kp)
    packed = pack_params(params)

    obs = jax.random.normal(ko, (B, OBS_DIM), dtype=jnp.float32)
    legal_action = (jax.random.uniform(kl, (B, ACTION_DIM)) > 0.3).astype(jnp.float32)
    legal_action = legal_action.at[:, 0].set(1.0)          # guarantee >=1 legal action
    act = jax.random.randint(ka, (B,), 0, ACTION_DIM, dtype=jnp.int32)

    bf16_tanh = _supports_bf16_eup()

    def run_and_check(**kw):
        logits, logp_a, value = actor_critic_forward(obs, act, legal_action, packed, **kw)
        jax.block_until_ready((logits, logp_a, value))
        r_logits, r_logp, r_value = reference_forward(
            obs, act, legal_action, params, bf16_tanh=kw.get("bf16_tanh", False))
        # loose tolerance: MXU / bf16 vs XLA f32-ish accumulation
        np.testing.assert_allclose(np.asarray(logits), np.asarray(r_logits),
                                   rtol=2e-2, atol=1e-1)
        np.testing.assert_allclose(np.asarray(logp_a), np.asarray(r_logp),
                                   rtol=2e-2, atol=1e-1)
        np.testing.assert_allclose(np.asarray(value), np.asarray(r_value),
                                   rtol=2e-2, atol=1e-1)
        assert logits.shape == (B, ACTION_DIM) and logp_a.shape == (B,) and value.shape == (B,)
        return logits, logp_a, value

    # Preferred config first; fall back to default buffering / f32 tanh if the
    # running JAX / chip rejects the optimized variant (robustness > micro-opts).
    attempts = [dict(bf16_tanh=bf16_tanh, single_buffer_weights=True),
                dict(bf16_tanh=bf16_tanh, single_buffer_weights=False)]
    if bf16_tanh:
        attempts.append(dict(bf16_tanh=False, single_buffer_weights=False))

    last_err = None
    for kw in attempts:
        try:
            run_and_check(**kw)
            last_err = None
            break
        except Exception as e:          # noqa: BLE001 — fall back to a safer config
            last_err = e
    if last_err is not None:
        raise last_err

    # TODO(synk): torch.distributions.Categorical object and .sample() in step() have no
    # tensor equivalent; forward() only needs logits/log_prob/value, computed here.
    print("KERNEL_OK")
</pallas_src>

<mosaic_0001>
module attributes {stable_mosaic.version = 11 : i64} {
  func.func @_actor_critic_kernel(%arg0: i32, %arg1: memref<8x64xbf16, #tpu.memory_space<vmem>>, %arg2: memref<64x512xbf16, #tpu.memory_space<vmem>>, %arg3: memref<512x512xbf16, #tpu.memory_space<vmem>>, %arg4: memref<512x512xbf16, #tpu.memory_space<vmem>>, %arg5: memref<512x512xbf16, #tpu.memory_space<vmem>>, %arg6: memref<512x256xbf16, #tpu.memory_space<vmem>>, %arg7: memref<1x512xf32, #tpu.memory_space<vmem>>, %arg8: memref<1x512xf32, #tpu.memory_space<vmem>>, %arg9: memref<1x512xf32, #tpu.memory_space<vmem>>, %arg10: memref<1x512xf32, #tpu.memory_space<vmem>>, %arg11: memref<1x256xf32, #tpu.memory_space<vmem>>, %arg12: memref<256x256xbf16, #tpu.memory_space<vmem>>, %arg13: memref<1x256xf32, #tpu.memory_space<vmem>>, %arg14: memref<256x128xbf16, #tpu.memory_space<vmem>>, %arg15: memref<1x128xf32, #tpu.memory_space<vmem>>, %arg16: memref<8x128xbf16, #tpu.memory_space<vmem>>, %arg17: memref<8x1xi32, #tpu.memory_space<vmem>>, %arg18: memref<8x128xf32, #tpu.memory_space<vmem>>) attributes {dimension_semantics = [#tpu.dimension_semantics<parallel>], iteration_bounds = array<i64: 1>, scalar_prefetch = 0 : i64, scratch_operands = 0 : i64, tpu.core_type = #tpu.core_type<tc>, window_params = [{transform_indices = @transform_0, window_bounds = array<i64: 8, 64>}, {pipeline_mode = #tpu.pipeline_mode<synchronous>, transform_indices = @transform_1, window_bounds = array<i64: 64, 512>}, {pipeline_mode = #tpu.pipeline_mode<synchronous>, transform_indices = @transform_2, window_bounds = array<i64: 512, 512>}, {pipeline_mode = #tpu.pipeline_mode<synchronous>, transform_indices = @transform_3, window_bounds = array<i64: 512, 512>}, {pipeline_mode = #tpu.pipeline_mode<synchronous>, transform_indices = @transform_4, window_bounds = array<i64: 512, 512>}, {pipeline_mode = #tpu.pipeline_mode<synchronous>, transform_indices = @transform_5, window_bounds = array<i64: 512, 256>}, {pipeline_mode = #tpu.pipeline_mode<synchronous>, transform_indices = @transform_6, window_bounds = array<i64: 1, 512>}, {pipeline_mode = #tpu.pipeline_mode<synchronous>, transform_indices = @transform_7, window_bounds = array<i64: 1, 512>}, {pipeline_mode = #tpu.pipeline_mode<synchronous>, transform_indices = @transform_8, window_bounds = array<i64: 1, 512>}, {pipeline_mode = #tpu.pipeline_mode<synchronous>, transform_indices = @transform_9, window_bounds = array<i64: 1, 512>}, {pipeline_mode = #tpu.pipeline_mode<synchronous>, transform_indices = @transform_10, window_bounds = array<i64: 1, 256>}, {pipeline_mode = #tpu.pipeline_mode<synchronous>, transform_indices = @transform_11, window_bounds = array<i64: 256, 256>}, {pipeline_mode = #tpu.pipeline_mode<synchronous>, transform_indices = @transform_12, window_bounds = array<i64: 1, 256>}, {pipeline_mode = #tpu.pipeline_mode<synchronous>, transform_indices = @transform_13, window_bounds = array<i64: 256, 128>}, {pipeline_mode = #tpu.pipeline_mode<synchronous>, transform_indices = @transform_14, window_bounds = array<i64: 1, 128>}, {transform_indices = @transform_15, window_bounds = array<i64: 8, 128>}, {transform_indices = @transform_16, window_bounds = array<i64: 8, 1>}, {transform_indices = @transform_17, window_bounds = array<i64: 8, 128>}]} {
    %c0 = arith.constant 0 : index
    %c0_0 = arith.constant 0 : index
    %0 = vector.load %arg1[%c0, %c0_0] : memref<8x64xbf16, #tpu.memory_space<vmem>>, vector<8x64xbf16>
    %c0_1 = arith.constant 0 : index
    %c0_2 = arith.constant 0 : index
    %1 = vector.load %arg2[%c0_1, %c0_2] : memref<64x512xbf16, #tpu.memory_space<vmem>>, vector<64x512xbf16>
    %cst = arith.constant dense<0.000000e+00> : vector<8x512xf32>
    %2 = tpu.matmul %0, %1, %cst {dimension_numbers = #tpu.dot_dimension_numbers<[1], [0], [0], [1], [0, 0, 1, 1], [], []>} : vector<8x64xbf16>, vector<64x512xbf16>, vector<8x512xf32> -> vector<8x512xf32>
    %c0_3 = arith.constant 0 : index
    %c0_4 = arith.constant 0 : index
    %3 = vector.load %arg7[%c0_3, %c0_4] : memref<1x512xf32, #tpu.memory_space<vmem>>, vector<1x512xf32>
    %4 = vector.broadcast %3 : vector<1x512xf32> to vector<8x512xf32>
    %5 = arith.addf %2, %4 : vector<8x512xf32>
    %6 = math.tanh %5 : vector<8x512xf32>
    %7 = arith.truncf %6 : vector<8x512xf32> to vector<8x512xbf16>
    %c0_5 = arith.constant 0 : index
    %c0_6 = arith.constant 0 : index
    %8 = vector.load %arg3[%c0_5, %c0_6] : memref<512x512xbf16, #tpu.memory_space<vmem>>, vector<512x512xbf16>
    %cst_7 = arith.constant dense<0.000000e+00> : vector<8x512xf32>
    %9 = tpu.matmul %7, %8, %cst_7 {dimension_numbers = #tpu.dot_dimension_numbers<[1], [0], [0], [1], [0, 0, 1, 1], [], []>} : vector<8x512xbf16>, vector<512x512xbf16>, vector<8x512xf32> -> vector<8x512xf32>
    %c0_8 = arith.constant 0 : index
    %c0_9 = arith.constant 0 : index
    %10 = vector.load %arg8[%c0_8, %c0_9] : memref<1x512xf32, #tpu.memory_space<vmem>>, vector<1x512xf32>
    %11 = vector.broadcast %10 : vector<1x512xf32> to vector<8x512xf32>
    %12 = arith.addf %9, %11 : vector<8x512xf32>
    %13 = math.tanh %12 : vector<8x512xf32>
    %14 = arith.truncf %13 : vector<8x512xf32> to vector<8x512xbf16>
    %c0_10 = arith.constant 0 : index
    %c0_11 = arith.constant 0 : index
    %15 = vector.load %arg4[%c0_10, %c0_11] : memref<512x512xbf16, #tpu.memory_space<vmem>>, vector<512x512xbf16>
    %cst_12 = arith.constant dense<0.000000e+00> : vector<8x512xf32>
    %16 = tpu.matmul %14, %15, %cst_12 {dimension_numbers = #tpu.dot_dimension_numbers<[1], [0], [0], [1], [0, 0, 1, 1], [], []>} : vector<8x512xbf16>, vector<512x512xbf16>, vector<8x512xf32> -> vector<8x512xf32>
    %c0_13 = arith.constant 0 : index
    %c0_14 = arith.constant 0 : index
    %17 = vector.load %arg9[%c0_13, %c0_14] : memref<1x512xf32, #tpu.memory_space<vmem>>, vector<1x512xf32>
    %18 = vector.broadcast %17 : vector<1x512xf32> to vector<8x512xf32>
    %19 = arith.addf %16, %18 : vector<8x512xf32>
    %20 = math.tanh %19 : vector<8x512xf32>
    %21 = arith.truncf %20 : vector<8x512xf32> to vector<8x512xbf16>
    %c0_15 = arith.constant 0 : index
    %c0_16 = arith.constant 0 : index
    %22 = vector.load %arg5[%c0_15, %c0_16] : memref<512x512xbf16, #tpu.memory_space<vmem>>, vector<512x512xbf16>
    %cst_17 = arith.constant dense<0.000000e+00> : vector<8x512xf32>
    %23 = tpu.matmul %21, %22, %cst_17 {dimension_numbers = #tpu.dot_dimension_numbers<[1], [0], [0], [1], [0, 0, 1, 1], [], []>} : vector<8x512xbf16>, vector<512x512xbf16>, vector<8x512xf32> -> vector<8x512xf32>
    %c0_18 = arith.constant 0 : index
    %c0_19 = arith.constant 0 : index
    %24 = vector.load %arg10[%c0_18, %c0_19] : memref<1x512xf32, #tpu.memory_space<vmem>>, vector<1x512xf32>
    %25 = vector.broadcast %24 : vector<1x512xf32> to vector<8x512xf32>
    %26 = arith.addf %23, %25 : vector<8x512xf32>
    %27 = math.tanh %26 : vector<8x512xf32>
    %28 = arith.truncf %27 : vector<8x512xf32> to vector<8x512xbf16>
    %c0_20 = arith.constant 0 : index
    %c0_21 = arith.constant 0 : index
    %29 = vector.load %arg6[%c0_20, %c0_21] : memref<512x256xbf16, #tpu.memory_space<vmem>>, vector<512x256xbf16>
    %cst_22 = arith.constant dense<0.000000e+00> : vector<8x256xf32>
    %30 = tpu.matmul %28, %29, %cst_22 {dimension_numbers = #tpu.dot_dimension_numbers<[1], [0], [0], [1], [0, 0, 1, 1], [], []>} : vector<8x512xbf16>, vector<512x256xbf16>, vector<8x256xf32> -> vector<8x256xf32>
    %c0_23 = arith.constant 0 : index
    %c0_24 = arith.constant 0 : index
    %31 = vector.load %arg11[%c0_23, %c0_24] : memref<1x256xf32, #tpu.memory_space<vmem>>, vector<1x256xf32>
    %32 = vector.broadcast %31 : vector<1x256xf32> to vector<8x256xf32>
    %33 = arith.addf %30, %32 : vector<8x256xf32>
    %34 = math.tanh %33 : vector<8x256xf32>
    %35 = arith.truncf %34 : vector<8x256xf32> to vector<8x256xbf16>
    %c0_25 = arith.constant 0 : index
    %c0_26 = arith.constant 0 : index
    %36 = vector.load %arg12[%c0_25, %c0_26] : memref<256x256xbf16, #tpu.memory_space<vmem>>, vector<256x256xbf16>
    %cst_27 = arith.constant dense<0.000000e+00> : vector<8x256xf32>
    %37 = tpu.matmul %35, %36, %cst_27 {dimension_numbers = #tpu.dot_dimension_numbers<[1], [0], [0], [1], [0, 0, 1, 1], [], []>} : vector<8x256xbf16>, vector<256x256xbf16>, vector<8x256xf32> -> vector<8x256xf32>
    %c0_28 = arith.constant 0 : index
    %c0_29 = arith.constant 0 : index
    %38 = vector.load %arg13[%c0_28, %c0_29] : memref<1x256xf32, #tpu.memory_space<vmem>>, vector<1x256xf32>
    %39 = vector.broadcast %38 : vector<1x256xf32> to vector<8x256xf32>
    %40 = arith.addf %37, %39 : vector<8x256xf32>
    %41 = math.tanh %40 : vector<8x256xf32>
    %42 = arith.truncf %41 : vector<8x256xf32> to vector<8x256xbf16>
    %c0_30 = arith.constant 0 : index
    %c0_31 = arith.constant 0 : index
    %43 = vector.load %arg14[%c0_30, %c0_31] : memref<256x128xbf16, #tpu.memory_space<vmem>>, vector<256x128xbf16>
    %cst_32 = arith.constant dense<0.000000e+00> : vector<8x128xf32>
    %44 = tpu.matmul %42, %43, %cst_32 {dimension_numbers = #tpu.dot_dimension_numbers<[1], [0], [0], [1], [0, 0, 1, 1], [], []>} : vector<8x256xbf16>, vector<256x128xbf16>, vector<8x128xf32> -> vector<8x128xf32>
    %c0_33 = arith.constant 0 : index
    %c0_34 = arith.constant 0 : index
    %45 = vector.load %arg15[%c0_33, %c0_34] : memref<1x128xf32, #tpu.memory_space<vmem>>, vector<1x128xf32>
    %46 = vector.broadcast %45 : vector<1x128xf32> to vector<8x128xf32>
    %47 = arith.addf %44, %46 : vector<8x128xf32>
    %c0_35 = arith.constant 0 : index
    %c0_36 = arith.constant 0 : index
    %48 = vector.load %arg16[%c0_35, %c0_36] : memref<8x128xbf16, #tpu.memory_space<vmem>>, vector<8x128xbf16>
    %49 = arith.extf %48 : vector<8x128xbf16> to vector<8x128xf32>
    %50 = arith.addf %47, %49 : vector<8x128xf32>
    %51 = tpu.iota {dimensions = array<i32: 1>} : vector<8x128xi32>
    %c16_i32 = arith.constant 16 : i32
    %52 = vector.broadcast %c16_i32 : i32 to vector<8x128xi32>
    %53 = arith.cmpi slt, %51, %52 : vector<8x128xi32>
    %cst_37 = arith.constant -1.000000e+30 : f32
    %54 = vector.broadcast %cst_37 : f32 to vector<8x128xf32>
    %55 = arith.select %53, %50, %54 : vector<8x128xi1>, vector<8x128xf32>
    %cst_38 = arith.constant dense<0xFF800000> : vector<8xf32>
    %56 = vector.multi_reduction <maximumf>, %55, %cst_38 [1] : vector<8x128xf32> to vector<8xf32>
    %57 = vector.shape_cast %56 : vector<8xf32> to vector<8x1xf32>
    %58 = vector.broadcast %57 : vector<8x1xf32> to vector<8x128xf32>
    %59 = arith.subf %55, %58 : vector<8x128xf32>
    %60 = math.exp %59 : vector<8x128xf32>
    %cst_39 = arith.constant dense<0.000000e+00> : vector<8xf32>
    %61 = vector.multi_reduction <add>, %60, %cst_39 [1] : vector<8x128xf32> to vector<8xf32>
    %62 = vector.shape_cast %61 : vector<8xf32> to vector<8x1xf32>
    %63 = math.log %62 : vector<8x1xf32>
    %64 = arith.addf %57, %63 : vector<8x1xf32>
    %c0_40 = arith.constant 0 : index
    %c0_41 = arith.constant 0 : index
    %65 = vector.load %arg17[%c0_40, %c0_41] : memref<8x1xi32, #tpu.memory_space<vmem>>, vector<8x1xi32>
    %66 = vector.broadcast %65 : vector<8x1xi32> to vector<8x128xi32>
    %67 = arith.cmpi eq, %51, %66 : vector<8x128xi32>
    %68 = arith.extui %67 : vector<8x128xi1> to vector<8x128xi32>
    %69 = arith.sitofp %68 : vector<8x128xi32> to vector<8x128xf32>
    %70 = vector.broadcast %64 : vector<8x1xf32> to vector<8x128xf32>
    %71 = arith.subf %50, %70 : vector<8x128xf32>
    %72 = arith.mulf %71, %69 : vector<8x128xf32>
    %cst_42 = arith.constant dense<0.000000e+00> : vector<8xf32>
    %73 = vector.multi_reduction <add>, %72, %cst_42 [1] : vector<8x128xf32> to vector<8xf32>
    %74 = vector.shape_cast %73 : vector<8xf32> to vector<8x1xf32>
    %c17_i32 = arith.constant 17 : i32
    %75 = vector.broadcast %c17_i32 : i32 to vector<8x128xi32>
    %76 = arith.cmpi eq, %51, %75 : vector<8x128xi32>
    %77 = vector.shape_cast %74 : vector<8x1xf32> to vector<8x1xf32>
    %78 = vector.broadcast %77 : vector<8x1xf32> to vector<8x128xf32>
    %79 = arith.select %76, %78, %50 : vector<8x128xi1>, vector<8x128xf32>
    %c0_43 = arith.constant 0 : index
    %c0_44 = arith.constant 0 : index
    %80 = vector.load %arg18[%c0_43, %c0_44] : memref<8x128xf32, #tpu.memory_space<vmem>>, vector<8x128xf32>
    tpu.vector_store %arg18[%c0_43, %c0_44], %79 {strides = array<i32>} : memref<8x128xf32, #tpu.memory_space<vmem>>, vector<8x128xf32>,
    return
  }
  func.func @transform_0(%arg0: i32) -> (i32, i32) {
    %c0_i32 = arith.constant 0 : i32
    %c0_i32_0 = arith.constant 0 : i32
    return %arg0, %c0_i32 : i32, i32
  }
  func.func @transform_1(%arg0: i32) -> (i32, i32) {
    %c0_i32 = arith.constant 0 : i32
    %c0_i32_0 = arith.constant 0 : i32
    %c0_i32_1 = arith.constant 0 : i32
    return %c0_i32, %c0_i32_0 : i32, i32
  }
  func.func @transform_2(%arg0: i32) -> (i32, i32) {
    %c0_i32 = arith.constant 0 : i32
    %c0_i32_0 = arith.constant 0 : i32
    %c0_i32_1 = arith.constant 0 : i32
    return %c0_i32, %c0_i32_0 : i32, i32
  }
  func.func @transform_3(%arg0: i32) -> (i32, i32) {
    %c0_i32 = arith.constant 0 : i32
    %c0_i32_0 = arith.constant 0 : i32
    %c0_i32_1 = arith.constant 0 : i32
    return %c0_i32, %c0_i32_0 : i32, i32
  }
  func.func @transform_4(%arg0: i32) -> (i32, i32) {
    %c0_i32 = arith.constant 0 : i32
    %c0_i32_0 = arith.constant 0 : i32
    %c0_i32_1 = arith.constant 0 : i32
    return %c0_i32, %c0_i32_0 : i32, i32
  }
  func.func @transform_5(%arg0: i32) -> (i32, i32) {
    %c0_i32 = arith.constant 0 : i32
    %c0_i32_0 = arith.constant 0 : i32
    %c0_i32_1 = arith.constant 0 : i32
    return %c0_i32, %c0_i32_0 : i32, i32
  }
  func.func @transform_6(%arg0: i32) -> (i32, i32) {
    %c0_i32 = arith.constant 0 : i32
    %c0_i32_0 = arith.constant 0 : i32
    %c0_i32_1 = arith.constant 0 : i32
    return %c0_i32, %c0_i32_0 : i32, i32
  }
  func.func @transform_7(%arg0: i32) -> (i32, i32) {
    %c0_i32 = arith.constant 0 : i32
    %c0_i32_0 = arith.constant 0 : i32
    %c0_i32_1 = arith.constant 0 : i32
    return %c0_i32, %c0_i32_0 : i32, i32
  }
  func.func @transform_8(%arg0: i32) -> (i32, i32) {
    %c0_i32 = arith.constant 0 : i32
    %c0_i32_0 = arith.constant 0 : i32
    %c0_i32_1 = arith.constant 0 : i32
    return %c0_i32, %c0_i32_0 : i32, i32
  }
  func.func @transform_9(%arg0: i32) -> (i32, i32) {
    %c0_i32 = arith.constant 0 : i32
    %c0_i32_0 = arith.constant 0 : i32
    %c0_i32_1 = arith.constant 0 : i32
    return %c0_i32, %c0_i32_0 : i32, i32
  }
  func.func @transform_10(%arg0: i32) -> (i32, i32) {
    %c0_i32 = arith.constant 0 : i32
    %c0_i32_0 = arith.constant 0 : i32
    %c0_i32_1 = arith.constant 0 : i32
    return %c0_i32, %c0_i32_0 : i32, i32
  }
  func.func @transform_11(%arg0: i32) -> (i32, i32) {
    %c0_i32 = arith.constant 0 : i32
    %c0_i32_0 = arith.constant 0 : i32
    %c0_i32_1 = arith.constant 0 : i32
    return %c0_i32, %c0_i32_0 : i32, i32
  }
  func.func @transform_12(%arg0: i32) -> (i32, i32) {
    %c0_i32 = arith.constant 0 : i32
    %c0_i32_0 = arith.constant 0 : i32
    %c0_i32_1 = arith.constant 0 : i32
    return %c0_i32, %c0_i32_0 : i32, i32
  }
  func.func @transform_13(%arg0: i32) -> (i32, i32) {
    %c0_i32 = arith.constant 0 : i32
    %c0_i32_0 = arith.constant 0 : i32
    %c0_i32_1 = arith.constant 0 : i32
    return %c0_i32, %c0_i32_0 : i32, i32
  }
  func.func @transform_14(%arg0: i32) -> (i32, i32) {
    %c0_i32 = arith.constant 0 : i32
    %c0_i32_0 = arith.constant 0 : i32
    %c0_i32_1 = arith.constant 0 : i32
    return %c0_i32, %c0_i32_0 : i32, i32
  }
  func.func @transform_15(%arg0: i32) -> (i32, i32) {
    %c0_i32 = arith.constant 0 : i32
    %c0_i32_0 = arith.constant 0 : i32
    return %arg0, %c0_i32 : i32, i32
  }
  func.func @transform_16(%arg0: i32) -> (i32, i32) {
    %c0_i32 = arith.constant 0 : i32
    %c0_i32_0 = arith.constant 0 : i32
    return %arg0, %c0_i32 : i32, i32
  }
  func.func @transform_17(%arg0: i32) -> (i32, i32) {
    %c0_i32 = arith.constant 0 : i32
    %c0_i32_0 = arith.constant 0 : i32
    return %arg0, %c0_i32 : i32, i32
  }
}

module attributes {stable_mosaic.version = 11 : i64} {
  func.func @_actor_critic_kernel(%arg0: i32, %arg1: memref<8x64xbf16, #tpu.memory_space<vmem>>, %arg2: memref<64x512xbf16, #tpu.memory_space<vmem>>, %arg3: memref<512x512xbf16, #tpu.memory_space<vmem>>, %arg4: memref<512x512xbf16, #tpu.memory_space<vmem>>, %arg5: memref<512x512xbf16, #tpu.memory_space<vmem>>, %arg6: memref<512x256xbf16, #tpu.memory_space<vmem>>, %arg7: memref<1x512xf32, #tpu.memory_space<vmem>>, %arg8: memref<1x512xf32, #tpu.memory_space<vmem>>, %arg9: memref<1x512xf32, #tpu.memory_space<vmem>>, %arg10: memref<1x512xf32, #tpu.memory_space<vmem>>, %arg11: memref<1x256xf32, #tpu.memory_space<vmem>>, %arg12: memref<256x256xbf16, #tpu.memory_space<vmem>>, %arg13: memref<1x256xf32, #tpu.memory_space<vmem>>, %arg14: memref<256x128xbf16, #tpu.memory_space<vmem>>, %arg15: memref<1x128xf32, #tpu.memory_space<vmem>>, %arg16: memref<8x128xbf16, #tpu.memory_space<vmem>>, %arg17: memref<8x1xi32, #tpu.memory_space<vmem>>, %arg18: memref<8x128xf32, #tpu.memory_space<vmem>>) attributes {dimension_semantics = [#tpu.dimension_semantics<parallel>], iteration_bounds = array<i64: 1>, scalar_prefetch = 0 : i64, scratch_operands = 0 : i64, tpu.core_type = #tpu.core_type<tc>, window_params = [{transform_indices = @transform_0, window_bounds = array<i64: 8, 64>}, {pipeline_mode = #tpu.pipeline_mode<synchronous>, transform_indices = @transform_1, window_bounds = array<i64: 64, 512>}, {pipeline_mode = #tpu.pipeline_mode<synchronous>, transform_indices = @transform_2, window_bounds = array<i64: 512, 512>}, {pipeline_mode = #tpu.pipeline_mode<synchronous>, transform_indices = @transform_3, window_bounds = array<i64: 512, 512>}, {pipeline_mode = #tpu.pipeline_mode<synchronous>, transform_indices = @transform_4, window_bounds = array<i64: 512, 512>}, {pipeline_mode = #tpu.pipeline_mode<synchronous>, transform_indices = @transform_5, window_bounds = array<i64: 512, 256>}, {pipeline_mode = #tpu.pipeline_mode<synchronous>, transform_indices = @transform_6, window_bounds = array<i64: 1, 512>}, {pipeline_mode = #tpu.pipeline_mode<synchronous>, transform_indices = @transform_7, window_bounds = array<i64: 1, 512>}, {pipeline_mode = #tpu.pipeline_mode<synchronous>, transform_indices = @transform_8, window_bounds = array<i64: 1, 512>}, {pipeline_mode = #tpu.pipeline_mode<synchronous>, transform_indices = @transform_9, window_bounds = array<i64: 1, 512>}, {pipeline_mode = #tpu.pipeline_mode<synchronous>, transform_indices = @transform_10, window_bounds = array<i64: 1, 256>}, {pipeline_mode = #tpu.pipeline_mode<synchronous>, transform_indices = @transform_11, window_bounds = array<i64: 256, 256>}, {pipeline_mode = #tpu.pipeline_mode<synchronous>, transform_indices = @transform_12, window_bounds = array<i64: 1, 256>}, {pipeline_mode = #tpu.pipeline_mode<synchronous>, transform_indices = @transform_13, window_bounds = array<i64: 256, 128>}, {pipeline_mode = #tpu.pipeline_mode<synchronous>, transform_indices = @transform_14, window_bounds = array<i64: 1, 128>}, {transform_indices = @transform_15, window_bounds = array<i64: 8, 128>}, {transform_indices = @transform_16, window_bounds = array<i64: 8, 1>}, {transform_indices = @transform_17, window_bounds = array<i64: 8, 128>}]} {
    %c0 = arith.constant 0 : index
    %c0_0 = arith.constant 0 : index
    %0 = vector.load %arg1[%c0, %c0_0] : memref<8x64xbf16, #tpu.memory_space<vmem>>, vector<8x64xbf16>
    %c0_1 = arith.constant 0 : index
    %c0_2 = arith.constant 0 : index
    %1 = vector.load %arg2[%c0_1, %c0_2] : memref<64x512xbf16, #tpu.memory_space<vmem>>, vector<64x512xbf16>
    %cst = arith.constant dense<0.000000e+00> : vector<8x512xf32>
    %2 = tpu.matmul %0, %1, %cst {dimension_numbers = #tpu.dot_dimension_numbers<[1], [0], [0], [1], [0, 0, 1, 1], [], []>} : vector<8x64xbf16>, vector<64x512xbf16>, vector<8x512xf32> -> vector<8x512xf32>
    %c0_3 = arith.constant 0 : index
    %c0_4 = arith.constant 0 : index
    %3 = vector.load %arg7[%c0_3, %c0_4] : memref<1x512xf32, #tpu.memory_space<vmem>>, vector<1x512xf32>
    %4 = vector.broadcast %3 : vector<1x512xf32> to vector<8x512xf32>
    %5 = arith.addf %2, %4 : vector<8x512xf32>
    %6 = math.tanh %5 : vector<8x512xf32>
    %7 = arith.truncf %6 : vector<8x512xf32> to vector<8x512xbf16>
    %c0_5 = arith.constant 0 : index
    %c0_6 = arith.constant 0 : index
    %8 = vector.load %arg3[%c0_5, %c0_6] : memref<512x512xbf16, #tpu.memory_space<vmem>>, vector<512x512xbf16>
    %cst_7 = arith.constant dense<0.000000e+00> : vector<8x512xf32>
    %9 = tpu.matmul %7, %8, %cst_7 {dimension_numbers = #tpu.dot_dimension_numbers<[1], [0], [0], [1], [0, 0, 1, 1], [], []>} : vector<8x512xbf16>, vector<512x512xbf16>, vector<8x512xf32> -> vector<8x512xf32>
    %c0_8 = arith.constant 0 : index
    %c0_9 = arith.constant 0 : index
    %10 = vector.load %arg8[%c0_8, %c0_9] : memref<1x512xf32, #tpu.memory_space<vmem>>, vector<1x512xf32>
    %11 = vector.broadcast %10 : vector<1x512xf32> to vector<8x512xf32>
    %12 = arith.addf %9, %11 : vector<8x512xf32>
    %13 = math.tanh %12 : vector<8x512xf32>
    %14 = arith.truncf %13 : vector<8x512xf32> to vector<8x512xbf16>
    %c0_10 = arith.constant 0 : index
    %c0_11 = arith.constant 0 : index
    %15 = vector.load %arg4[%c0_10, %c0_11] : memref<512x512xbf16, #tpu.memory_space<vmem>>, vector<512x512xbf16>
    %cst_12 = arith.constant dense<0.000000e+00> : vector<8x512xf32>
    %16 = tpu.matmul %14, %15, %cst_12 {dimension_numbers = #tpu.dot_dimension_numbers<[1], [0], [0], [1], [0, 0, 1, 1], [], []>} : vector<8x512xbf16>, vector<512x512xbf16>, vector<8x512xf32> -> vector<8x512xf32>
    %c0_13 = arith.constant 0 : index
    %c0_14 = arith.constant 0 : index
    %17 = vector.load %arg9[%c0_13, %c0_14] : memref<1x512xf32, #tpu.memory_space<vmem>>, vector<1x512xf32>
    %18 = vector.broadcast %17 : vector<1x512xf32> to vector<8x512xf32>
    %19 = arith.addf %16, %18 : vector<8x512xf32>
    %20 = math.tanh %19 : vector<8x512xf32>
    %21 = arith.truncf %20 : vector<8x512xf32> to vector<8x512xbf16>
    %c0_15 = arith.constant 0 : index
    %c0_16 = arith.constant 0 : index
    %22 = vector.load %arg5[%c0_15, %c0_16] : memref<512x512xbf16, #tpu.memory_space<vmem>>, vector<512x512xbf16>
    %cst_17 = arith.constant dense<0.000000e+00> : vector<8x512xf32>
    %23 = tpu.matmul %21, %22, %cst_17 {dimension_numbers = #tpu.dot_dimension_numbers<[1], [0], [0], [1], [0, 0, 1, 1], [], []>} : vector<8x512xbf16>, vector<512x512xbf16>, vector<8x512xf32> -> vector<8x512xf32>
    %c0_18 = arith.constant 0 : index
    %c0_19 = arith.constant 0 : index
    %24 = vector.load %arg10[%c0_18, %c0_19] : memref<1x512xf32, #tpu.memory_space<vmem>>, vector<1x512xf32>
    %25 = vector.broadcast %24 : vector<1x512xf32> to vector<8x512xf32>
    %26 = arith.addf %23, %25 : vector<8x512xf32>
    %27 = math.tanh %26 : vector<8x512xf32>
    %28 = arith.truncf %27 : vector<8x512xf32> to vector<8x512xbf16>
    %c0_20 = arith.constant 0 : index
    %c0_21 = arith.constant 0 : index
    %29 = vector.load %arg6[%c0_20, %c0_21] : memref<512x256xbf16, #tpu.memory_space<vmem>>, vector<512x256xbf16>
    %cst_22 = arith.constant dense<0.000000e+00> : vector<8x256xf32>
    %30 = tpu.matmul %28, %29, %cst_22 {dimension_numbers = #tpu.dot_dimension_numbers<[1], [0], [0], [1], [0, 0, 1, 1], [], []>} : vector<8x512xbf16>, vector<512x256xbf16>, vector<8x256xf32> -> vector<8x256xf32>
    %c0_23 = arith.constant 0 : index
    %c0_24 = arith.constant 0 : index
    %31 = vector.load %arg11[%c0_23, %c0_24] : memref<1x256xf32, #tpu.memory_space<vmem>>, vector<1x256xf32>
    %32 = vector.broadcast %31 : vector<1x256xf32> to vector<8x256xf32>
    %33 = arith.addf %30, %32 : vector<8x256xf32>
    %34 = math.tanh %33 : vector<8x256xf32>
    %35 = arith.truncf %34 : vector<8x256xf32> to vector<8x256xbf16>
    %c0_25 = arith.constant 0 : index
    %c0_26 = arith.constant 0 : index
    %36 = vector.load %arg12[%c0_25, %c0_26] : memref<256x256xbf16, #tpu.memory_space<vmem>>, vector<256x256xbf16>
    %cst_27 = arith.constant dense<0.000000e+00> : vector<8x256xf32>
    %37 = tpu.matmul %35, %36, %cst_27 {dimension_numbers = #tpu.dot_dimension_numbers<[1], [0], [0], [1], [0, 0, 1, 1], [], []>} : vector<8x256xbf16>, vector<256x256xbf16>, vector<8x256xf32> -> vector<8x256xf32>
    %c0_28 = arith.constant 0 : index
    %c0_29 = arith.constant 0 : index
    %38 = vector.load %arg13[%c0_28, %c0_29] : memref<1x256xf32, #tpu.memory_space<vmem>>, vector<1x256xf32>
    %39 = vector.broadcast %38 : vector<1x256xf32> to vector<8x256xf32>
    %40 = arith.addf %37, %39 : vector<8x256xf32>
    %41 = math.tanh %40 : vector<8x256xf32>
    %42 = arith.truncf %41 : vector<8x256xf32> to vector<8x256xbf16>
    %c0_30 = arith.constant 0 : index
    %c0_31 = arith.constant 0 : index
    %43 = vector.load %arg14[%c0_30, %c0_31] : memref<256x128xbf16, #tpu.memory_space<vmem>>, vector<256x128xbf16>
    %cst_32 = arith.constant dense<0.000000e+00> : vector<8x128xf32>
    %44 = tpu.matmul %42, %43, %cst_32 {dimension_numbers = #tpu.dot_dimension_numbers<[1], [0], [0], [1], [0, 0, 1, 1], [], []>} : vector<8x256xbf16>, vector<256x128xbf16>, vector<8x128xf32> -> vector<8x128xf32>
    %c0_33 = arith.constant 0 : index
    %c0_34 = arith.constant 0 : index
    %45 = vector.load %arg15[%c0_33, %c0_34] : memref<1x128xf32, #tpu.memory_space<vmem>>, vector<1x128xf32>
    %46 = vector.broadcast %45 : vector<1x128xf32> to vector<8x128xf32>
    %47 = arith.addf %44, %46 : vector<8x128xf32>
    %c0_35 = arith.constant 0 : index
    %c0_36 = arith.constant 0 : index
    %48 = vector.load %arg16[%c0_35, %c0_36] : memref<8x128xbf16, #tpu.memory_space<vmem>>, vector<8x128xbf16>
    %49 = arith.extf %48 : vector<8x128xbf16> to vector<8x128xf32>
    %50 = arith.addf %47, %49 : vector<8x128xf32>
    %51 = tpu.iota {dimensions = array<i32: 1>} : vector<8x128xi32>
    %c16_i32 = arith.constant 16 : i32
    %52 = vector.broadcast %c16_i32 : i32 to vector<8x128xi32>
    %53 = arith.cmpi slt, %51, %52 : vector<8x128xi32>
    %cst_37 = arith.constant -1.000000e+30 : f32
    %54 = vector.broadcast %cst_37 : f32 to vector<8x128xf32>
    %55 = arith.select %53, %50, %54 : vector<8x128xi1>, vector<8x128xf32>
    %cst_38 = arith.constant dense<0xFF800000> : vector<8xf32>
    %56 = vector.multi_reduction <maximumf>, %55, %cst_38 [1] : vector<8x128xf32> to vector<8xf32>
    %57 = vector.shape_cast %56 : vector<8xf32> to vector<8x1xf32>
    %58 = vector.broadcast %57 : vector<8x1xf32> to vector<8x128xf32>
    %59 = arith.subf %55, %58 : vector<8x128xf32>
    %60 = math.exp %59 : vector<8x128xf32>
    %cst_39 = arith.constant dense<0.000000e+00> : vector<8xf32>
    %61 = vector.multi_reduction <add>, %60, %cst_39 [1] : vector<8x128xf32> to vector<8xf32>
    %62 = vector.shape_cast %61 : vector<8xf32> to vector<8x1xf32>
    %63 = math.log %62 : vector<8x1xf32>
    %64 = arith.addf %57, %63 : vector<8x1xf32>
    %c0_40 = arith.constant 0 : index
    %c0_41 = arith.constant 0 : index
    %65 = vector.load %arg17[%c0_40, %c0_41] : memref<8x1xi32, #tpu.memory_space<vmem>>, vector<8x1xi32>
    %66 = vector.broadcast %65 : vector<8x1xi32> to vector<8x128xi32>
    %67 = arith.cmpi eq, %51, %66 : vector<8x128xi32>
    %68 = arith.extui %67 : vector<8x128xi1> to vector<8x128xi32>
    %69 = arith.sitofp %68 : vector<8x128xi32> to vector<8x128xf32>
    %70 = vector.broadcast %64 : vector<8x1xf32> to vector<8x128xf32>
    %71 = arith.subf %50, %70 : vector<8x128xf32>
    %72 = arith.mulf %71, %69 : vector<8x128xf32>
    %cst_42 = arith.constant dense<0.000000e+00> : vector<8xf32>
    %73 = vector.multi_reduction <add>, %72, %cst_42 [1] : vector<8x128xf32> to vector<8xf32>
    %74 = vector.shape_cast %73 : vector<8xf32> to vector<8x1xf32>
    %c17_i32 = arith.constant 17 : i32
    %75 = vector.broadcast %c17_i32 : i32 to vector<8x128xi32>
    %76 = arith.cmpi eq, %51, %75 : vector<8x128xi32>
    %77 = vector.shape_cast %74 : vector<8x1xf32> to vector<8x1xf32>
    %78 = vector.broadcast %77 : vector<8x1xf32> to vector<8x128xf32>
    %79 = arith.select %76, %78, %50 : vector<8x128xi1>, vector<8x128xf32>
    %c0_43 = arith.constant 0 : index
    %c0_44 = arith.constant 0 : index
    %80 = vector.load %arg18[%c0_43, %c0_44] : memref<8x128xf32, #tpu.memory_space<vmem>>, vector<8x128xf32>
    tpu.vector_store %arg18[%c0_43, %c0_44], %79 {strides = array<i32>} : memref<8x128xf32, #tpu.memory_space<vmem>>, vector<8x128xf32>,
    return
  }
  func.func @transform_0(%arg0: i32) -> (i32, i32) {
    %c0_i32 = arith.constant 0 : i32
    %c0_i32_0 = arith.constant 0 : i32
    return %arg0, %c0_i32 : i32, i32
  }
  func.func @transform_1(%arg0: i32) -> (i32, i32) {
    %c0_i32 = arith.constant 0 : i32
    %c0_i32_0 = arith.constant 0 : i32
    %c0_i32_1 = arith.constant 0 : i32
    return %c0_i32, %c0_i32_0 : i32, i32
  }
  func.func @transform_2(%arg0: i32) -> (i32, i32) {
    %c0_i32 = arith.constant 0 : i32
    %c0_i32_0 = arith.constant 0 : i32
    %c0_i32_1 = arith.constant 0 : i32
    return %c0_i32, %c0_i32_0 : i32, i32
  }
  func.func @transform_3(%arg0: i32) -> (i32, i32) {
    %c0_i32 = arith.constant 0 : i32
    %c0_i32_0 = arith.constant 0 : i32
    %c0_i32_1 = arith.constant 0 : i32
    return %c0_i32, %c0_i32_0 : i32, i32
  }
  func.func @transform_4(%arg0: i32) -> (i32, i32) {
    %c0_i32 = arith.constant 0 : i32
    %c0_i32_0 = arith.constant 0 : i32
    %c0_i32_1 = arith.constant 0 : i32
    return %c0_i32, %c0_i32_0 : i32, i32
  }
  func.func @transform_5(%arg0: i32) -> (i32, i32) {
    %c0_i32 = arith.constant 0 : i32
    %c0_i32_0 = arith.constant 0 : i32
    %c0_i32_1 = arith.constant 0 : i32
    return %c0_i32, %c0_i32_0 : i32, i32
  }
  func.func @transform_6(%arg0: i32) -> (i32, i32) {
    %c0_i32 = arith.constant 0 : i32
    %c0_i32_0 = arith.constant 0 : i32
    %c0_i32_1 = arith.constant 0 : i32
    return %c0_i32, %c0_i32_0 : i32, i32
  }
  func.func @transform_7(%arg0: i32) -> (i32, i32) {
    %c0_i32 = arith.constant 0 : i32
    %c0_i32_0 = arith.constant 0 : i32
    %c0_i32_1 = arith.constant 0 : i32
    return %c0_i32, %c0_i32_0 : i32, i32
  }
  func.func @transform_8(%arg0: i32) -> (i32, i32) {
    %c0_i32 = arith.constant 0 : i32
    %c0_i32_0 = arith.constant 0 : i32
    %c0_i32_1 = arith.constant 0 : i32
    return %c0_i32, %c0_i32_0 : i32, i32
  }
  func.func @transform_9(%arg0: i32) -> (i32, i32) {
    %c0_i32 = arith.constant 0 : i32
    %c0_i32_0 = arith.constant 0 : i32
    %c0_i32_1 = arith.constant 0 : i32
    return %c0_i32, %c0_i32_0 : i32, i32
  }
  func.func @transform_10(%arg0: i32) -> (i32, i32) {
    %c0_i32 = arith.constant 0 : i32
    %c0_i32_0 = arith.constant 0 : i32
    %c0_i32_1 = arith.constant 0 : i32
    return %c0_i32, %c0_i32_0 : i32, i32
  }
  func.func @transform_11(%arg0: i32) -> (i32, i32) {
    %c0_i32 = arith.constant 0 : i32
    %c0_i32_0 = arith.constant 0 : i32
    %c0_i32_1 = arith.constant 0 : i32
    return %c0_i32, %c0_i32_0 : i32, i32
  }
  func.func @transform_12(%arg0: i32) -> (i32, i32) {
    %c0_i32 = arith.constant 0 : i32
    %c0_i32_0 = arith.constant 0 : i32
    %c0_i32_1 = arith.constant 0 : i32
    return %c0_i32, %c0_i32_0 : i32, i32
  }
  func.func @transform_13(%arg0: i32) -> (i32, i32) {
    %c0_i32 = arith.constant 0 : i32
    %c0_i32_0 = arith.constant 0 : i32
    %c0_i32_1 = arith.constant 0 : i32
    return %c0_i32, %c0_i32_0 : i32, i32
  }
  func.func @transform_14(%arg0: i32) -> (i32, i32) {
    %c0_i32 = arith.constant 0 : i32
    %c0_i32_0 = arith.constant 0 : i32
    %c0_i32_1 = arith.constant 0 : i32
    return %c0_i32, %c0_i32_0 : i32, i32
  }
  func.func @transform_15(%arg0: i32) -> (i32, i32) {
    %c0_i32 = arith.constant 0 : i32
    %c0_i32_0 = arith.constant 0 : i32
    return %arg0, %c0_i32 : i32, i32
  }
  func.func @transform_16(%arg0: i32) -> (i32, i32) {
    %c0_i32 = arith.constant 0 : i32
    %c0_i32_0 = arith.constant 0 : i32
    return %arg0, %c0_i32 : i32, i32
  }
  func.func @transform_17(%arg0: i32) -> (i32, i32) {
    %c0_i32 = arith.constant 0 : i32
    %c0_i32_0 = arith.constant 0 : i32
    return %arg0, %c0_i32 : i32, i32
  }
}

</mosaic_0001>

<bundles_post_ra>
// kernel: actor_critic_forward.1
= control target key start
LH: loop header
LB: loop body
LE: loop exit
PB: predicated region body
PF: predicated region fallthrough
CT: control target
= control target key end

     0   :  { %s6094_s0 = inlined_call_operand.vmem [shape: bf16[8,64], index: 0, kind: input, shape index: {}]   ;;  %s6095_s1 = inlined_call_operand.hbm [shape: bf16[64,512], index: 1, kind: input, shape index: {}]   ;;  %s6096_s2 = inlined_call_operand.hbm [shape: bf16[512,512], index: 2, kind: input, shape index: {}]   ;;  %s6097_s3 = inlined_call_operand.hbm [shape: bf16[512,512], index: 3, kind: input, shape index: {}]   ;;  %s6098_s4 = inlined_call_operand.hbm [shape: bf16[512,512], index: 4, kind: input, shape index: {}]   ;;  %s6099_s5 = inlined_call_operand.hbm [shape: bf16[512,256], index: 5, kind: input, shape index: {}]   ;;  %s6100_s6 = inlined_call_operand.vmem [shape: f32[1,512], index: 6, kind: input, shape index: {}]   ;;  %s6101_s7 = inlined_call_operand.vmem [shape: f32[1,512], index: 7, kind: input, shape index: {}]   ;;  %s6102_s8 = inlined_call_operand.vmem [shape: f32[1,512], index: 8, kind: input, shape index: {}]   ;;  %s6103_s9 = inlined_call_operand.vmem [shape: f32[1,512], index: 9, kind: input, shape index: {}]   ;;  %s6104_s10 = inlined_call_operand.vmem [shape: f32[1,256], index: 10, kind: input, shape index: {}]   ;;  %s6105_s11 = inlined_call_operand.hbm [shape: bf16[256,256], index: 11, kind: input, shape index: {}]   ;;  %s6106_s12 = inlined_call_operand.vmem [shape: f32[1,256], index: 12, kind: input, shape index: {}]   ;;  %s6107_s13 = inlined_call_operand.hbm [shape: bf16[256,128], index: 13, kind: input, shape index: {}]   ;;  %s6108_s14 = inlined_call_operand.vmem [shape: f32[1,128], index: 14, kind: input, shape index: {}]   ;;  %s6109_s15 = inlined_call_operand.vmem [shape: bf16[8,128], index: 15, kind: input, shape index: {}]   ;;  %s6110_s16 = inlined_call_operand.vmem [shape: s32[8,1], index: 16, kind: input, shape index: {}]   ;;  %s6111_s17 = inlined_call_operand.vmem [shape: f32[8,128], index: 17, kind: output, shape index: {}]  }
   0x1   :  { %6114 = sst [smem:[#allocation17_spill]] %s6094_s0 }
   0x2   :  { %6115 = sst [smem:[#allocation18_spill]] %s6095_s1 }
   0x3   :  { %22 = vsyncpa [#allocation3], 0 }
   0x4   :  { %23 = vsyncpa [#allocation5], 0 }
   0x5   :  { %24 = vsyncpa [#allocation8], 0 }
   0x6   :  { %25 = vsyncpa [#allocation11], 0  ;;  %s5759_s24 = smov [#allocation4]   ;;  %s5760_s26 = smov [#allocation7]  }
   0x7   :  { %s45_s25 = sshll.u32 %s5759_s24, 4  ;;  %s69_s27 = sshll.u32 %s5760_s26, 4  ;;  %s46_s25 = int_to_ptr.vmem [resolvable:$true] %s45_s25  ;;  %s5864_s27 = int_to_ptr.vmem [resolvable:$true] %s69_s27 }
   0x8   :  { %s5597_s0 = scalar_lea.hbm %s6096_s2, 16384 }
   0x9   :  { %p5598_p0 = scmp.ne.s32.totalorder %s6096_s2, %s5597_s0  ;;  %p5601_p1 = scmp.lt.u32.totalorder %s5597_s0, %s6096_s2 }
   0xb   :  { %p5603_p2 = pnand %p5601_p1, %p5598_p0 }
   0xd   :  { %5606 = shalt.err (!%p5603_p2)
}
   0xe   :  { %s5607_s20 = scalar_lea.vmem %s46_s25, 16384  ;;  %p5612_p4 = scmp.lt.s32.totalorder %s46_s25, %s46_s25 }
   0xf   :  { %p5608_p3 = scmp.ne.s32.totalorder %s46_s25, %s5607_s20  ;;  %p5613_p5 = scmp.lt.s32.totalorder %s5607_s20, %s5607_s20 }
  0x11   :  { %p5614_p6 = por %p5613_p5, %p5612_p4 }
  0x13   :  { %p5615_p7 = pnand %p5614_p6, %p5608_p3 }
  0x15   :  { %5618 = shalt.err (!%p5615_p7)
}
  0x16   :  { %s5761_s21 = smov 256   ;;  %s5762_s22 = smov 16  }
  0x17   :  { %51 = dma.hbm_to_vmem [thread:$0]  %s6096_s2, 16384, %s46_s25, [#allocation5], %s5761_s21, %s5761_s21, %s5762_s22  }
  0x18   :  { %s5619_s29 = scalar_lea.hbm %s6098_s4, 16384 }
  0x19   :  { %p5620_p8 = scmp.ne.s32.totalorder %s6098_s4, %s5619_s29  ;;  %p5623_p9 = scmp.lt.u32.totalorder %s5619_s29, %s6098_s4 }
  0x1b   :  { %p5625_p10 = pnand %p5623_p9, %p5620_p8 }
  0x1d   :  { %5628 = shalt.err (!%p5625_p10)
}
  0x1e   :  { %s5629_s1 = scalar_lea.vmem %s5864_s27, 16384  ;;  %p5634_p12 = scmp.lt.s32.totalorder %s5864_s27, %s5864_s27 }
  0x1f   :  { %p5630_p11 = scmp.ne.s32.totalorder %s5864_s27, %s5629_s1  ;;  %p5635_p13 = scmp.lt.s32.totalorder %s5629_s1, %s5629_s1 }
  0x21   :  { %p5636_p0 = por %p5635_p13, %p5634_p12 }
  0x23   :  { %p5637_p1 = pnand %p5636_p0, %p5630_p11 }
  0x25   :  { %5640 = shalt.err (!%p5637_p1)
}
  0x26   :  { %75 = dma.hbm_to_vmem [thread:$0]  %s6098_s4, 16384, %s5864_s27, [#allocation8], %s5761_s21, %s5761_s21, %s5762_s22  }
  0x27   :  { %s5763_s20 = smov [#allocation10]   ;;  %s5764_s24 = smov [#allocation2]  }
  0x28   :  { %s103_s23 = sshll.u32 %s5763_s20, 4  ;;  %s33_s26 = sshll.u32 %s5764_s24, 4  ;;  %s104_s23 = int_to_ptr.vmem [resolvable:$true] %s103_s23  ;;  %s5901_s26 = int_to_ptr.vmem [resolvable:$true] %s33_s26 }
  0x29   :  { %s5641_s0 = scalar_lea.hbm %s6105_s11, 4096 }
  0x2a   :  { %p5642_p2 = scmp.ne.s32.totalorder %s6105_s11, %s5641_s0  ;;  %p5645_p3 = scmp.lt.u32.totalorder %s5641_s0, %s6105_s11 }
  0x2c   :  { %p5647_p4 = pnand %p5645_p3, %p5642_p2 }
  0x2e   :  { %5650 = shalt.err (!%p5647_p4)
}
  0x2f   :  { %s5651_s4 = scalar_lea.vmem %s104_s23, 4096  ;;  %p5656_p6 = scmp.lt.s32.totalorder %s104_s23, %s104_s23 }
  0x30   :  { %p5652_p5 = scmp.ne.s32.totalorder %s104_s23, %s5651_s4  ;;  %p5657_p7 = scmp.lt.s32.totalorder %s5651_s4, %s5651_s4 }
  0x32   :  { %p5658_p8 = por %p5657_p7, %p5656_p6 }
  0x34   :  { %p5659_p9 = pnand %p5658_p8, %p5652_p5 }
  0x36   :  { %5662 = shalt.err (!%p5659_p9)
}
  0x37   :  { %s6113_s27 = smov 128   ;;  %s5766_s2 = smov 8  }
  0x38   :  { %109 = dma.hbm_to_vmem [thread:$0]  %s6105_s11, 4096, %s104_s23, [#allocation11], %s6113_s27, %s6113_s27, %s5766_s2  }
  0x39   :  { %s6116_s29 = sld [smem:[#allocation18_spill]] }
  0x3f   :  { %s5663_s0 = scalar_lea.hbm %s6116_s29, 2048 }
  0x40   :  { %p5664_p10 = scmp.ne.s32.totalorder %s6116_s29, %s5663_s0  ;;  %p5667_p11 = scmp.lt.u32.totalorder %s5663_s0, %s6116_s29 }
  0x42   :  { %p5669_p12 = pnand %p5667_p11, %p5664_p10 }
  0x44   :  { %5672 = shalt.err (!%p5669_p12)
}
  0x45   :  { %s5673_s4 = scalar_lea.vmem %s5901_s26, 2048  ;;  %p5678_p0 = scmp.lt.s32.totalorder %s5901_s26, %s5901_s26 }
  0x46   :  { %p5674_p13 = scmp.ne.s32.totalorder %s5901_s26, %s5673_s4  ;;  %p5679_p1 = scmp.lt.s32.totalorder %s5673_s4, %s5673_s4 }
  0x48   :  { %p5680_p2 = por %p5679_p1, %p5678_p0 }
  0x4a   :  { %p5681_p3 = pnand %p5680_p2, %p5674_p13 }
  0x4c   :  { %5684 = shalt.err (!%p5681_p3)
}
  0x4d   :  { %39 = dma.hbm_to_vmem [thread:$0]  %s6116_s29, 2048, %s5901_s26, [#allocation3], %s5761_s21, %s5761_s21, %s5762_s22  }
  0x4e   :  { %s5767_s25 = smov [#allocation6]   ;;  %s5768_s24 = smov [#allocation9]  }
  0x4f   :  { %s57_s20 = sshll.u32 %s5767_s25, 4  ;;  %s81_s28 = sshll.u32 %s5768_s24, 4  ;;  %s58_s20 = int_to_ptr.vmem [resolvable:$true] %s57_s20  ;;  %s5938_s28 = int_to_ptr.vmem [resolvable:$true] %s81_s28 }
  0x50   :  { %s5685_s18 = scalar_lea.hbm %s6097_s3, 16384 }
  0x51   :  { %p5686_p4 = scmp.ne.s32.totalorder %s6097_s3, %s5685_s18  ;;  %p5689_p5 = scmp.lt.u32.totalorder %s5685_s18, %s6097_s3 }
  0x53   :  { %p5691_p6 = pnand %p5689_p5, %p5686_p4 }
  0x55   :  { %5694 = shalt.err (!%p5691_p6)
}
  0x56   :  { %s5695_s26 = scalar_lea.vmem %s58_s20, 16384  ;;  %p5700_p8 = scmp.lt.s32.totalorder %s58_s20, %s58_s20 }
  0x57   :  { %p5696_p7 = scmp.ne.s32.totalorder %s58_s20, %s5695_s26  ;;  %p5701_p9 = scmp.lt.s32.totalorder %s5695_s26, %s5695_s26 }
  0x59   :  { %p5702_p10 = por %p5701_p9, %p5700_p8 }
  0x5b   :  { %p5703_p11 = pnand %p5702_p10, %p5696_p7 }
  0x5d   :  { %5706 = shalt.err (!%p5703_p11)
}
  0x5e   :  { %63 = dma.hbm_to_vmem [thread:$0]  %s6097_s3, 16384, %s58_s20, [#allocation5], %s5761_s21, %s5761_s21, %s5762_s22  }
  0x5f   :  { %s5707_s27 = scalar_lea.hbm %s6099_s5, 8192 }
  0x60   :  { %p5708_p12 = scmp.ne.s32.totalorder %s6099_s5, %s5707_s27  ;;  %p5711_p13 = scmp.lt.u32.totalorder %s5707_s27, %s6099_s5 }
  0x62   :  { %p5713_p0 = pnand %p5711_p13, %p5708_p12 }
  0x64   :  { %5716 = shalt.err (!%p5713_p0)
}
  0x65   :  { %s5717_s19 = scalar_lea.vmem %s5938_s28, 8192  ;;  %p5722_p2 = scmp.lt.s32.totalorder %s5938_s28, %s5938_s28 }
  0x66   :  { %p5718_p1 = scmp.ne.s32.totalorder %s5938_s28, %s5717_s19  ;;  %p5723_p3 = scmp.lt.s32.totalorder %s5717_s19, %s5717_s19 }
  0x68   :  { %p5724_p4 = por %p5723_p3, %p5722_p2 }
  0x6a   :  { %p5725_p5 = pnand %p5724_p4, %p5718_p1 }
  0x6c   :  { %5728 = shalt.err (!%p5725_p5)
}
  0x6d   :  { %s6117_s3 = smov 128   ;;  %s5769_s20 = smov [#allocation12]  }
  0x6e   :  { %87 = dma.hbm_to_vmem [thread:$0]  %s6099_s5, 8192, %s5938_s28, [#allocation8], %s6117_s3, %s6117_s3, %s5766_s2  }
  0x6f   :  { %s117_s1 = sshll.u32 %s5769_s20, 4  ;;  %s5729_s29 = scalar_lea.hbm %s6107_s13, 2048  ;;  %s118_s1 = int_to_ptr.vmem [resolvable:$true] %s117_s1 }
  0x70   :  { %p5730_p6 = scmp.ne.s32.totalorder %s6107_s13, %s5729_s29  ;;  %p5733_p7 = scmp.lt.u32.totalorder %s5729_s29, %s6107_s13 }
  0x72   :  { %p5735_p8 = pnand %p5733_p7, %p5730_p6 }
  0x74   :  { %5738 = shalt.err (!%p5735_p8)
}
  0x75   :  { %s5739_s24 = scalar_lea.vmem %s118_s1, 2048  ;;  %p5744_p10 = scmp.lt.s32.totalorder %s118_s1, %s118_s1 }
  0x76   :  { %p5740_p9 = scmp.ne.s32.totalorder %s118_s1, %s5739_s24  ;;  %p5745_p11 = scmp.lt.s32.totalorder %s5739_s24, %s5739_s24 }
  0x78   :  { %p5746_p12 = por %p5745_p11, %p5744_p10 }
  0x7a   :  { %p5747_p13 = pnand %p5746_p12, %p5740_p9 }
  0x7c   :  { %5750 = shalt.err (!%p5747_p13)
}
  0x7d   :  { %s5770_s5 = smov 64   ;;  %s5771_s2 = smov 4  }
  0x7e   :  { %123 = dma.hbm_to_vmem [thread:$0]  %s6107_s13, 2048, %s118_s1, [#allocation11], %s5770_s5, %s5770_s5, %s5771_s2  }
  0x7f   :  { %5751 = dma.done.wait [#allocation3], 2048  }
  0x80   :  { %5752 = vsyncadd [#allocation3], 4294965248 }
  0x81   :  { %5753 = dma.done.wait [#allocation5], 32768  }
  0x82   :  { %5754 = vsyncadd [#allocation5], 4294934528 }
  0x83   :  { %5755 = dma.done.wait [#allocation8], 24576  }
  0x84   :  { %5756 = vsyncadd [#allocation8], 4294942720 }
  0x85   :  { %5757 = dma.done.wait [#allocation11], 6144  }
  0x86   :  { %5758 = vsyncadd [#allocation11], 4294961152  ;;  %v5772_v0 = vmov 0   ;;  %v4793_v1 = vld [vmem:[#allocation2 + $0x4] ss:$16 sps:$4 sm:$0xff]   ;;  %s6118_s18 = sld [smem:[#allocation17_spill]] }
  0x87   :  { %307 = vmatprep.mubr.bf16.mxu1 %v5772_v0  ;;  %4791 = vset.pattern.permute.xlu1 %v5772_v0  ;;  %v4795_v2 = vld [vmem:[#allocation2] ss:$16 sps:$4 sm:$0xff]   ;;  %v4796_v3 = vld [vmem:[#allocation2 + $0x24] ss:$16 sps:$4 sm:$0xff]   ;;  %v4807_v10 = vld [vmem:[#allocation2 + $0xc] ss:$16 sps:$4 sm:$0xff]  }
  0x88   :  { %4792 = vset.pattern.permute.xlu0 %v5772_v0  ;;  %275 = vmatprep.subr.bf16.mxu1 %v4793_v1  ;;  %v4798_v4 = vld [vmem:[#allocation2 + $0x20] ss:$16 sps:$4 sm:$0xff]   ;;  %v4799_v5 = vld [vmem:[#allocation2 + $0x44] ss:$16 sps:$4 sm:$0xff]   ;;  %vm271_vm0 = vcmask 523264  }
  0x89   :  { %276 = vmatpush1.bf16.msra.mxu1 %v4795_v2  ;;  %v4801_v6 = vld [vmem:[#allocation2 + $0x40] ss:$16 sps:$4 sm:$0xff]   ;;  %v4802_v7 = vld [vmem:[#allocation2 + $0x64] ss:$16 sps:$4 sm:$0xff]   ;;  %v4805_v14 = vld [vmem:[#allocation2 + $0x8] ss:$16 sps:$4 sm:$0xff]  }
  0x8a   :  { %277 = vmatprep.subr.bf16.mxu1 %v4796_v3  ;;  %v4804_v8 = vld [vmem:[#allocation2 + $0x60] ss:$16 sps:$4 sm:$0xff]   ;;  %v4817_v9 = vld [vmem:[#allocation4 + $0x4] ss:$16 sps:$4 sm:$0xff]   ;;  %v4810_v15 = vld [vmem:[#allocation2 + $0x2c] ss:$16 sps:$4 sm:$0xff]  }
  0x8b   :  { %1155 = vmatprep.subr.bf16.mxu0 %v4817_v9  ;;  %v4822_v12 = vld [vmem:[#allocation4] ss:$16 sps:$4 sm:$0xff]   ;;  %v4823_v13 = vld [vmem:[#allocation4 + $0x24] ss:$16 sps:$4 sm:$0xff]   ;;  %v4808_v18 = vld [vmem:[#allocation2 + $0x28] ss:$16 sps:$4 sm:$0xff]  }
  0x8c   :  { %v152_v11 = vld [vmem:[%s6118_s18] sm:$0xf]  ;;  %1156 = vmatpush1.bf16.msra.mxu0 %v4822_v12  ;;  %v4829_v17 = vld [vmem:[#allocation4 + $0x44] ss:$16 sps:$4 sm:$0xff]   ;;  %v4813_v19 = vld [vmem:[#allocation2 + $0x4c] ss:$16 sps:$4 sm:$0xff]  }
  0x8d   :  { %278 = vmatpush1.bf16.msra.mxu1 %v4798_v4  ;;  %1157 = vmatprep.subr.bf16.mxu0 %v4823_v13  ;;  %v4828_v16 = vld [vmem:[#allocation4 + $0x20] ss:$16 sps:$4 sm:$0xff]   ;;  %v4835_v21 = vld [vmem:[#allocation4 + $0x64] ss:$16 sps:$4 sm:$0xff]   ;;  %v4811_v22 = vld [vmem:[#allocation2 + $0x48] ss:$16 sps:$4 sm:$0xff]  }
  0x8e   :  { %279 = vmatprep.subr.bf16.mxu1 %v4799_v5  ;;  %v4834_v20 = vld [vmem:[#allocation4 + $0x40] ss:$16 sps:$4 sm:$0xff]   ;;  %v4816_v23 = vld [vmem:[#allocation2 + $0x6c] ss:$16 sps:$4 sm:$0xff]   ;;  %v4841_v25 = vld [vmem:[#allocation4 + $0x84] ss:$16 sps:$4 sm:$0xff]  }
  0x8f   :  { %v4840_v24 = vld [vmem:[#allocation4 + $0x60] ss:$16 sps:$4 sm:$0xff]   ;;  %v4814_v26 = vld [vmem:[#allocation2 + $0x68] ss:$16 sps:$4 sm:$0xff]   ;;  %v4821_v27 = vld [vmem:[#allocation4 + $0xc] ss:$16 sps:$4 sm:$0xff]  }
  0x90   :  { %1158 = vmatpush1.bf16.msra.mxu0 %v4828_v16  ;;  %v4846_v28 = vld [vmem:[#allocation4 + $0x80] ss:$16 sps:$4 sm:$0xff]   ;;  %v4847_v29 = vld [vmem:[#allocation4 + $0xa4] ss:$16 sps:$4 sm:$0xff]   ;;  %v4819_v30 = vld [vmem:[#allocation4 + $0x8] ss:$16 sps:$4 sm:$0xff]  }
  0x91   :  { %280 = vmatpush1.bf16.msra.mxu1 %v4801_v6  ;;  %1159 = vmatprep.subr.bf16.mxu0 %v4829_v17  ;;  %v4827_v31 = vld [vmem:[#allocation4 + $0x2c] ss:$16 sps:$4 sm:$0xff]   ;;  %v4852_v32 = vld [vmem:[#allocation4 + $0xa0] ss:$16 sps:$4 sm:$0xff]   ;;  %v4853_v33 = vld [vmem:[#allocation4 + $0xc4] ss:$16 sps:$4 sm:$0xff]  }
  0x92   :  { %281 = vmatprep.subr.bf16.mxu1 %v4802_v7  ;;  %v4825_v34 = vld [vmem:[#allocation4 + $0x28] ss:$16 sps:$4 sm:$0xff]   ;;  %v4833_v35 = vld [vmem:[#allocation4 + $0x4c] ss:$16 sps:$4 sm:$0xff]   ;;  %v4858_v36 = vld [vmem:[#allocation4 + $0xc0] ss:$16 sps:$4 sm:$0xff]  }
  0x93   :  { %v4859_v37 = vld [vmem:[#allocation4 + $0xe4] ss:$16 sps:$4 sm:$0xff]   ;;  %v4831_v38 = vld [vmem:[#allocation4 + $0x48] ss:$16 sps:$4 sm:$0xff]   ;;  %v4839_v39 = vld [vmem:[#allocation4 + $0x6c] ss:$16 sps:$4 sm:$0xff]  }
  0x94   :  { %1160 = vmatpush1.bf16.msra.mxu0 %v4834_v20  ;;  %v4864_v40 = vld [vmem:[#allocation4 + $0xe0] ss:$16 sps:$4 sm:$0xff]   ;;  %v4865_v41 = vld [vmem:[#allocation4 + $0x104] ss:$16 sps:$4 sm:$0xff]   ;;  %v4837_v42 = vld [vmem:[#allocation4 + $0x68] ss:$16 sps:$4 sm:$0xff]   ;;  %v171_v20 = vlaneseq }
  0x95   :  { %282 = vmatpush1.bf16.msra.mxu1 %v4804_v8  ;;  %1161 = vmatprep.subr.bf16.mxu0 %v4835_v21  ;;  %v4845_v43 = vld [vmem:[#allocation4 + $0x8c] ss:$16 sps:$4 sm:$0xff]   ;;  %v4870_v44 = vld [vmem:[#allocation4 + $0x100] ss:$16 sps:$4 sm:$0xff]   ;;  %v4871_v45 = vld [vmem:[#allocation4 + $0x124] ss:$16 sps:$4 sm:$0xff]  }
  0x96   :  { %316 = vmatprep.subr.bf16.mxu1 %v4807_v10  ;;  %v4843_v46 = vld [vmem:[#allocation4 + $0x88] ss:$16 sps:$4 sm:$0xff]   ;;  %v4851_v47 = vld [vmem:[#allocation4 + $0xac] ss:$16 sps:$4 sm:$0xff]   ;;  %v4876_v48 = vld [vmem:[#allocation4 + $0x120] ss:$16 sps:$4 sm:$0xff]  }
  0x97   :  { %v4877_v49 = vld [vmem:[#allocation4 + $0x144] ss:$16 sps:$4 sm:$0xff]   ;;  %v4849_v50 = vld [vmem:[#allocation4 + $0xa8] ss:$16 sps:$4 sm:$0xff]   ;;  %v4857_v51 = vld [vmem:[#allocation4 + $0xcc] ss:$16 sps:$4 sm:$0xff]  }
  0x98   :  { %4212 = vmatmul.mubr.msk.bf16.vlgmr.msra.gmra.mrb[0].mxu1 %vm271_vm0, %v152_v11  ;;  %1162 = vmatpush1.bf16.msra.mxu0 %v4840_v24  ;;  %v4882_v52 = vld [vmem:[#allocation4 + $0x140] ss:$16 sps:$4 sm:$0xff]   ;;  %v4883_v53 = vld [vmem:[#allocation4 + $0x164] ss:$16 sps:$4 sm:$0xff]   ;;  %v4855_v54 = vld [vmem:[#allocation4 + $0xc8] ss:$16 sps:$4 sm:$0xff]  }
  0x99   :  { %317 = vmatpush1.bf16.msra.mxu1 %v4805_v14  ;;  %348 = vmatprep.mubr.bf16.mxu1 %v5772_v0  ;;  %v4863_v55 = vld [vmem:[#allocation4 + $0xec] ss:$16 sps:$4 sm:$0xff]   ;;  %v4888_v56 = vld [vmem:[#allocation4 + $0x160] ss:$16 sps:$4 sm:$0xff]   ;;  %v4861_v57 = vld [vmem:[#allocation4 + $0xe8] ss:$16 sps:$4 sm:$0xff]  }
  0x9a   :  { %318 = vmatprep.subr.bf16.mxu1 %v4810_v15  ;;  %1163 = vmatprep.subr.bf16.mxu0 %v4841_v25  ;;  %v4869_v58 = vld [vmem:[#allocation4 + $0x10c] ss:$16 sps:$4 sm:$0xff]   ;;  %v4867_v59 = vld [vmem:[#allocation4 + $0x108] ss:$16 sps:$4 sm:$0xff]   ;;  %v4889_v2 = vld [vmem:[#allocation4 + $0x184] ss:$16 sps:$4 sm:$0xff]  }
  0x9b   :  { %v4875_v60 = vld [vmem:[#allocation4 + $0x12c] ss:$16 sps:$4 sm:$0xff]   ;;  %v4873_v61 = vld [vmem:[#allocation4 + $0x128] ss:$16 sps:$4 sm:$0xff]   ;;  %v4894_v5 = vld [vmem:[#allocation4 + $0x180] ss:$16 sps:$4 sm:$0xff]  }
  0x9c   :  { %1164 = vmatpush1.bf16.msra.mxu0 %v4846_v28  ;;  %v4881_v62 = vld [vmem:[#allocation4 + $0x14c] ss:$16 sps:$4 sm:$0xff]   ;;  %v4879_v63 = vld [vmem:[#allocation4 + $0x148] ss:$16 sps:$4 sm:$0xff]   ;;  %v4895_v6 = vld [vmem:[#allocation4 + $0x1a4] ss:$16 sps:$4 sm:$0xff]  }
  0x9d   :  { %319 = vmatpush1.bf16.msra.mxu1 %v4808_v18  ;;  %1165 = vmatprep.subr.bf16.mxu0 %v4847_v29  ;;  %v4887_v0 = vld [vmem:[#allocation4 + $0x16c] ss:$16 sps:$4 sm:$0xff]   ;;  %v4885_v1 = vld [vmem:[#allocation4 + $0x168] ss:$16 sps:$4 sm:$0xff]   ;;  %v4900_v9 = vld [vmem:[#allocation4 + $0x1a0] ss:$16 sps:$4 sm:$0xff]  }
  0x9e   :  { %320 = vmatprep.subr.bf16.mxu1 %v4813_v19  ;;  %v4893_v3 = vld [vmem:[#allocation4 + $0x18c] ss:$16 sps:$4 sm:$0xff]   ;;  %v4891_v4 = vld [vmem:[#allocation4 + $0x188] ss:$16 sps:$4 sm:$0xff]   ;;  %v4901_v10 = vld [vmem:[#allocation4 + $0x1c4] ss:$16 sps:$4 sm:$0xff]  }
  0x9f   :  { %v4899_v7 = vld [vmem:[#allocation4 + $0x1ac] ss:$16 sps:$4 sm:$0xff]   ;;  %v4897_v8 = vld [vmem:[#allocation4 + $0x1a8] ss:$16 sps:$4 sm:$0xff]   ;;  %v4906_v13 = vld [vmem:[#allocation4 + $0x1c0] ss:$16 sps:$4 sm:$0xff]  }
  0xa0   :  { %1166 = vmatpush1.bf16.msra.mxu0 %v4852_v32  ;;  %v4903_v12 = vld [vmem:[#allocation4 + $0x1c8] ss:$16 sps:$4 sm:$0xff]   ;;  %v4907_v14 = vld [vmem:[#allocation4 + $0x1e4] ss:$16 sps:$4 sm:$0xff]   ;;  %v4911_v15 = vld [vmem:[#allocation4 + $0x1ec] ss:$16 sps:$4 sm:$0xff]  }
  0xa1   :  { %321 = vmatpush1.bf16.msra.mxu1 %v4811_v22  ;;  %1167 = vmatprep.subr.bf16.mxu0 %v4853_v33  ;;  %v4909_v16 = vld [vmem:[#allocation4 + $0x1e8] ss:$16 sps:$4 sm:$0xff]   ;;  %v4912_v17 = vld [vmem:[#allocation4 + $0x1e0] ss:$16 sps:$4 sm:$0xff]   ;;  %v4915_v18 = vld [vmem:[#allocation4 + $0x204] ss:$16 sps:$4 sm:$0xff]  }
  0xa2   :  { %322 = vmatprep.subr.bf16.mxu1 %v4816_v23  ;;  %v4918_v19 = vld [vmem:[#allocation4 + $0x20c] ss:$16 sps:$4 sm:$0xff]   ;;  %v5993_v21 = vshrl.u32 %v171_v20, 7  ;;  %v5998_v22 = vld [vmem:[%s6100_s6] sm:$0xf] }
  0xa4   :  { %1168 = vmatpush1.bf16.msra.mxu0 %v4858_v36  ;;  %v6001_v23 = vsub.s32 0, %v5993_v21  ;;  %v6004_v24 = vsub.s32 1, %v5993_v21  ;;  %v6011_v33 = vsub.s32 3, %v5993_v21 }
  0xa5   :  { %323 = vmatpush1.bf16.msra.mxu1 %v4814_v26  ;;  %1169 = vmatprep.subr.bf16.mxu0 %v4859_v37 }
  0xa6   :  { %1237 = vmatprep.subr.bf16.mxu1 %v4821_v27  ;;  %v174_v25 = vrot.slane %v5998_v22, %v6001_v23  ;;  %v178_v26 = vrot.slane %v5998_v22, %v6004_v24  ;;  %v186_v36 = vrot.slane %v5998_v22, %v6011_v33 }
  0xa8   :  { %4213 = vmatmul.mubr.msk.bf16.vlgmr.msra.gmra.mrb[4].mxu1 %vm271_vm0, %v152_v11  ;;  %1170 = vmatpush1.bf16.msra.mxu0 %v4864_v40  ;;  %v4905_v11 = vld [vmem:[#allocation4 + $0x1cc] ss:$16 sps:$4 sm:$0xff]  }
  0xa9   :  { %1238 = vmatpush1.bf16.msra.mxu1 %v4819_v30  ;;  %1171 = vmatprep.subr.bf16.mxu0 %v4865_v41  ;;  %v4921_v41 = vld [vmem:[#allocation4 + $0x224] ss:$16 sps:$4 sm:$0xff]  }
  0xaa   :  { %1239 = vmatprep.subr.bf16.mxu1 %v4827_v31 }
  0xac   :  { %1172 = vmatpush1.bf16.msra.mxu0 %v4870_v44 }
  0xad   :  { %1240 = vmatpush1.bf16.msra.mxu1 %v4825_v34  ;;  %1173 = vmatprep.subr.bf16.mxu0 %v4871_v45 }
  0xae   :  { %1241 = vmatprep.subr.bf16.mxu1 %v4833_v35 }
  0xb0   :  { %1174 = vmatpush1.bf16.msra.mxu0 %v4876_v48  ;;  %v4922_v48 = vld [vmem:[#allocation4 + $0x228] ss:$16 sps:$4 sm:$0xff]  }
  0xb1   :  { %1242 = vmatpush1.bf16.msra.mxu1 %v4831_v38  ;;  %1175 = vmatprep.subr.bf16.mxu0 %v4877_v49  ;;  %v4913_v38 = vld [vmem:[#allocation4 + $0x200] ss:$16 sps:$4 sm:$0xff]  }
  0xb2   :  { %1243 = vmatprep.subr.bf16.mxu1 %v4839_v39  ;;  %v4916_v39 = vld [vmem:[#allocation4 + $0x208] ss:$16 sps:$4 sm:$0xff]  }
  0xb4   :  { %1176 = vmatpush1.bf16.msra.mxu0 %v4882_v52  ;;  %v4925_v52 = vld [vmem:[#allocation4 + $0x240] ss:$16 sps:$4 sm:$0xff]  }
  0xb5   :  { %1244 = vmatpush1.bf16.msra.mxu1 %v4837_v42  ;;  %1177 = vmatprep.subr.bf16.mxu0 %v4883_v53  ;;  %v4924_v42 = vld [vmem:[#allocation4 + $0x22c] ss:$16 sps:$4 sm:$0xff]   ;;  %v4928_v53 = vld [vmem:[#allocation4 + $0x248] ss:$16 sps:$4 sm:$0xff]  }
  0xb6   :  { %1245 = vmatprep.subr.bf16.mxu1 %v4845_v43 }
  0xb8   :  { %1178 = vmatpush1.bf16.msra.mxu0 %v4888_v56  ;;  %v4931_v56 = vld [vmem:[#allocation4 + $0x260] ss:$16 sps:$4 sm:$0xff]  }
  0xb9   :  { %1246 = vmatpush1.bf16.msra.mxu1 %v4843_v46  ;;  %1179 = vmatprep.subr.bf16.mxu0 %v4889_v2  ;;  %v4943_v2 = vld [vmem:[#allocation4 + $0x2a0] ss:$16 sps:$4 sm:$0xff]  }
  0xba   :  { %1247 = vmatprep.subr.bf16.mxu1 %v4851_v47  ;;  %v4919_v47 = vld [vmem:[#allocation4 + $0x220] ss:$16 sps:$4 sm:$0xff]  }
  0xbc   :  { %1180 = vmatpush1.bf16.msra.mxu0 %v4894_v5  ;;  %v4954_v5 = vld [vmem:[#allocation4 + $0x2cc] ss:$16 sps:$4 sm:$0xff]  }
  0xbd   :  { %1248 = vmatpush1.bf16.msra.mxu1 %v4849_v50  ;;  %1181 = vmatprep.subr.bf16.mxu0 %v4895_v6  ;;  %v4927_v50 = vld [vmem:[#allocation4 + $0x244] ss:$16 sps:$4 sm:$0xff]   ;;  %v4949_v6 = vld [vmem:[#allocation4 + $0x2c0] ss:$16 sps:$4 sm:$0xff]  }
  0xbe   :  { %1249 = vmatprep.subr.bf16.mxu1 %v4857_v51  ;;  %v4930_v51 = vld [vmem:[#allocation4 + $0x24c] ss:$16 sps:$4 sm:$0xff]  }
  0xc0   :  { %1182 = vmatpush1.bf16.msra.mxu0 %v4900_v9  ;;  %v4960_v9 = vld [vmem:[#allocation4 + $0x2ec] ss:$16 sps:$4 sm:$0xff]  }
  0xc1   :  { %1250 = vmatpush1.bf16.msra.mxu1 %v4855_v54  ;;  %1183 = vmatprep.subr.bf16.mxu0 %v4901_v10  ;;  %v4933_v54 = vld [vmem:[#allocation4 + $0x264] ss:$16 sps:$4 sm:$0xff]   ;;  %v4955_v10 = vld [vmem:[#allocation4 + $0x2e0] ss:$16 sps:$4 sm:$0xff]  }
  0xc2   :  { %1251 = vmatprep.subr.bf16.mxu1 %v4863_v55  ;;  %v4936_v55 = vld [vmem:[#allocation4 + $0x26c] ss:$16 sps:$4 sm:$0xff]  }
  0xc4   :  { %1184 = vmatpush1.bf16.msra.mxu0 %v4906_v13  ;;  %v4966_v13 = vld [vmem:[#allocation4 + $0x30c] ss:$16 sps:$4 sm:$0xff]  }
  0xc5   :  { %1252 = vmatpush1.bf16.msra.mxu1 %v4861_v57  ;;  %1185 = vmatprep.subr.bf16.mxu0 %v4907_v14  ;;  %v4934_v57 = vld [vmem:[#allocation4 + $0x268] ss:$16 sps:$4 sm:$0xff]   ;;  %v4961_v14 = vld [vmem:[#allocation4 + $0x300] ss:$16 sps:$4 sm:$0xff]  }
  0xc6   :  { %1253 = vmatprep.subr.bf16.mxu1 %v4869_v58  ;;  %v4939_v58 = vld [vmem:[#allocation4 + $0x284] ss:$16 sps:$4 sm:$0xff]  }
  0xc8   :  { %1186 = vmatpush1.bf16.msra.mxu0 %v4912_v17  ;;  %v4972_v17 = vld [vmem:[#allocation4 + $0x32c] ss:$16 sps:$4 sm:$0xff]  }
  0xc9   :  { %1254 = vmatpush1.bf16.msra.mxu1 %v4867_v59  ;;  %1196 = vmatprep.subr.bf16.mxu0 %v4915_v18  ;;  %v4942_v59 = vld [vmem:[#allocation4 + $0x28c] ss:$16 sps:$4 sm:$0xff]   ;;  %v4967_v18 = vld [vmem:[#allocation4 + $0x320] ss:$16 sps:$4 sm:$0xff]  }
  0xca   :  { %1255 = vmatprep.subr.bf16.mxu1 %v4875_v60 }
  0xcd   :  { %1256 = vmatpush1.bf16.msra.mxu1 %v4873_v61  ;;  %v4937_v61 = vld [vmem:[#allocation4 + $0x280] ss:$16 sps:$4 sm:$0xff]  }
  0xce   :  { %1257 = vmatprep.subr.bf16.mxu1 %v4881_v62  ;;  %v4940_v62 = vld [vmem:[#allocation4 + $0x288] ss:$16 sps:$4 sm:$0xff]  }
  0xd1   :  { %1258 = vmatpush1.bf16.msra.mxu1 %v4879_v63 }
  0xd2   :  { %1259 = vmatprep.subr.bf16.mxu1 %v4887_v0  ;;  %v4945_v0 = vld [vmem:[#allocation4 + $0x2a4] ss:$16 sps:$4 sm:$0xff]  }
  0xd5   :  { %1260 = vmatpush1.bf16.msra.mxu1 %v4885_v1  ;;  %v4948_v1 = vld [vmem:[#allocation4 + $0x2ac] ss:$16 sps:$4 sm:$0xff]  }
  0xd6   :  { %1261 = vmatprep.subr.bf16.mxu1 %v4893_v3  ;;  %v4946_v3 = vld [vmem:[#allocation4 + $0x2a8] ss:$16 sps:$4 sm:$0xff]  }
  0xd9   :  { %1262 = vmatpush1.bf16.msra.mxu1 %v4891_v4  ;;  %v4951_v4 = vld [vmem:[#allocation4 + $0x2c4] ss:$16 sps:$4 sm:$0xff]  }
  0xda   :  { %1263 = vmatprep.subr.bf16.mxu1 %v4899_v7  ;;  %v4952_v7 = vld [vmem:[#allocation4 + $0x2c8] ss:$16 sps:$4 sm:$0xff]  }
  0xdd   :  { %1264 = vmatpush1.bf16.msra.mxu1 %v4897_v8  ;;  %v4957_v8 = vld [vmem:[#allocation4 + $0x2e4] ss:$16 sps:$4 sm:$0xff]  }
  0xde   :  { %1265 = vmatprep.subr.bf16.mxu1 %v4905_v11  ;;  %v4958_v11 = vld [vmem:[#allocation4 + $0x2e8] ss:$16 sps:$4 sm:$0xff]  }
  0xe1   :  { %1266 = vmatpush1.bf16.msra.mxu1 %v4903_v12  ;;  %v4963_v12 = vld [vmem:[#allocation4 + $0x304] ss:$16 sps:$4 sm:$0xff]  }
  0xe2   :  { %1267 = vmatprep.subr.bf16.mxu1 %v4911_v15  ;;  %v4964_v15 = vld [vmem:[#allocation4 + $0x308] ss:$16 sps:$4 sm:$0xff]  }
  0xe5   :  { %1268 = vmatpush1.bf16.msra.mxu1 %v4909_v16  ;;  %v4969_v16 = vld [vmem:[#allocation4 + $0x324] ss:$16 sps:$4 sm:$0xff]  }
  0xe6   :  { %1278 = vmatprep.subr.bf16.mxu1 %v4918_v19  ;;  %v4970_v19 = vld [vmem:[#allocation4 + $0x328] ss:$16 sps:$4 sm:$0xff]  }
 0x16b   :  { %v309_v27 = vpop.f32.mrb[0].mxu1 }
 0x16c   :  { %v310_v28 = vadd.f32 %v309_v27, %v174_v25  ;;  %v311_v29 = vpop.f32.mrb[1].mxu1  ;;  %v4975_v25 = vld [vmem:[#allocation4 + $0x344] ss:$16 sps:$4 sm:$0xff]   ;;  %v4973_v27 = vld [vmem:[#allocation4 + $0x340] ss:$16 sps:$4 sm:$0xff]  }
 0x16d   :  { %v312_v30 = vadd.f32 %v311_v29, %v178_v26  ;;  %v313_v31 = vpop.f32.mrb[2].mxu1  ;;  %v4978_v26 = vld [vmem:[#allocation4 + $0x34c] ss:$16 sps:$4 sm:$0xff]   ;;  %v6018_v29 = vsub.s32 2, %v5993_v21  ;;  %v4985_v21 = vld [vmem:[#allocation4 + $0x380] ss:$16 sps:$4 sm:$0xff]  }
 0x16e   :  { %5553 = vtanh.f32 %v310_v28  ;;  %v314_v32 = vpop.f32.mrb[3].mxu1  ;;  %v4976_v28 = vld [vmem:[#allocation4 + $0x348] ss:$16 sps:$4 sm:$0xff]   ;;  %v4984_v31 = vld [vmem:[#allocation4 + $0x36c] ss:$16 sps:$4 sm:$0xff]  }
 0x16f   :  { %5555 = vtanh.f32 %v312_v30  ;;  %v4981_v30 = vld [vmem:[#allocation4 + $0x364] ss:$16 sps:$4 sm:$0xff]   ;;  %v182_v32 = vrot.slane %v5998_v22, %v6018_v29  ;;  %v4991_v22 = vld [vmem:[#allocation4 + $0x3a0] ss:$16 sps:$4 sm:$0xff]  }
 0x178   :  { %v5554_v34 = vpop.eup %5553 }
 0x179   :  { %v5556_v35 = vpop.eup %5555  ;;  %v361_v40 = vpack.c.bf16 %v5554_v34, %v5554_v34  ;;  %v4979_v34 = vld [vmem:[#allocation4 + $0x360] ss:$16 sps:$4 sm:$0xff]  }
 0x17a   :  { %v362_v37 = vpack.c.bf16 %v5556_v35, %v5556_v35  ;;  %v4982_v35 = vld [vmem:[#allocation4 + $0x368] ss:$16 sps:$4 sm:$0xff]  }
 0x17b   :  { %v6015_v43 = vpop.f32.mrb[4].mxu1 }
 0x17c   :  { %1187 = vmatprep.mubr.bf16.mxu0 %v362_v37  ;;  %1269 = vmatprep.mubr.bf16.mxu1 %v362_v37  ;;  %v352_v44 = vpop.f32.mrb[5].mxu1  ;;  %v4990_v37 = vld [vmem:[#allocation4 + $0x38c] ss:$16 sps:$4 sm:$0xff]  }
 0x17d   :  { %1188 = vmatmul.mubr.bf16.vlgmr.msra.gmra.mrb[0].mxu0 %v361_v40  ;;  %1270 = vmatmul.mubr.bf16.vlgmr.msra.gmra.mrb[8].mxu1 %v361_v40  ;;  %v353_v45 = vadd.f32 %v352_v44, %v186_v36  ;;  %v354_v46 = vpop.f32.mrb[6].mxu1  ;;  %v4987_v36 = vld [vmem:[#allocation4 + $0x384] ss:$16 sps:$4 sm:$0xff]  }
 0x17e   :  { %1197 = vmatpush1.bf16.msra.mxu0 %v4913_v38  ;;  %1279 = vmatpush1.bf16.msra.mxu1 %v4916_v39  ;;  %v355_v49 = vpop.f32.mrb[7].mxu1  ;;  %v351_v38 = vadd.f32 %v6015_v43, %v182_v32  ;;  %v4988_v39 = vld [vmem:[#allocation4 + $0x388] ss:$16 sps:$4 sm:$0xff]   ;;  %v4993_v40 = vld [vmem:[#allocation4 + $0x3a4] ss:$16 sps:$4 sm:$0xff]  }
 0x17f   :  { %1198 = vmatprep.subr.bf16.mxu0 %v4921_v41  ;;  %1280 = vmatprep.subr.bf16.mxu1 %v4924_v42  ;;  %5557 = vtanh.f32 %v353_v45  ;;  %v4996_v41 = vld [vmem:[#allocation4 + $0x3ac] ss:$16 sps:$4 sm:$0xff]   ;;  %v4994_v42 = vld [vmem:[#allocation4 + $0x3a8] ss:$16 sps:$4 sm:$0xff]   ;;  %v4999_v44 = vld [vmem:[#allocation4 + $0x3c4] ss:$16 sps:$4 sm:$0xff]  }
 0x180   :  { %5559 = vtanh.f32 %v351_v38  ;;  %v5002_v45 = vld [vmem:[#allocation4 + $0x3cc] ss:$16 sps:$4 sm:$0xff]   ;;  %v4997_v43 = vld [vmem:[#allocation4 + $0x3c0] ss:$16 sps:$4 sm:$0xff]   ;;  %v5000_v46 = vld [vmem:[#allocation4 + $0x3c8] ss:$16 sps:$4 sm:$0xff]  }
 0x181   :  { %v5003_v49 = vld [vmem:[#allocation4 + $0x3e0] ss:$16 sps:$4 sm:$0xff]   ;;  %v5068_v32 = vld [vmem:[#allocation6 + $0x12c] ss:$16 sps:$4 sm:$0xff]  }
 0x182   :  { %1199 = vmatpush1.bf16.msra.mxu0 %v4919_v47  ;;  %1281 = vmatpush1.bf16.msra.mxu1 %v4922_v48  ;;  %v5005_v47 = vld [vmem:[#allocation4 + $0x3e4] ss:$16 sps:$4 sm:$0xff]   ;;  %v5008_v48 = vld [vmem:[#allocation4 + $0x3ec] ss:$16 sps:$4 sm:$0xff]   ;;  %v5069_v38 = vld [vmem:[#allocation6 + $0x140] ss:$16 sps:$4 sm:$0xff]  }
 0x183   :  { %1200 = vmatprep.subr.bf16.mxu0 %v4927_v50  ;;  %1282 = vmatprep.subr.bf16.mxu1 %v4930_v51  ;;  %v5006_v50 = vld [vmem:[#allocation4 + $0x3e8] ss:$16 sps:$4 sm:$0xff]   ;;  %v5011_v51 = vld [vmem:[#allocation6 + $0x4] ss:$16 sps:$4 sm:$0xff]  }
 0x186   :  { %1201 = vmatpush1.bf16.msra.mxu0 %v4925_v52  ;;  %1283 = vmatpush1.bf16.msra.mxu1 %v4928_v53  ;;  %v5014_v52 = vld [vmem:[#allocation6 + $0xc] ss:$16 sps:$4 sm:$0xff]  }
 0x187   :  { %1202 = vmatprep.subr.bf16.mxu0 %v4933_v54  ;;  %1284 = vmatprep.subr.bf16.mxu1 %v4936_v55  ;;  %v5009_v54 = vld [vmem:[#allocation6] ss:$16 sps:$4 sm:$0xff]   ;;  %v5012_v55 = vld [vmem:[#allocation6 + $0x8] ss:$16 sps:$4 sm:$0xff]  }
 0x189   :  { %v5558_v60 = vpop.eup %5557 }
 0x18a   :  { %1203 = vmatpush1.bf16.msra.mxu0 %v4931_v56  ;;  %1285 = vmatpush1.bf16.msra.mxu1 %v4934_v57  ;;  %v364_v63 = vpack.c.bf16 %v5558_v60, %v5558_v60  ;;  %v5560_v53 = vpop.eup %5559  ;;  %v5017_v57 = vld [vmem:[#allocation6 + $0x24] ss:$16 sps:$4 sm:$0xff]   ;;  %v5018_v60 = vld [vmem:[#allocation6 + $0x28] ss:$16 sps:$4 sm:$0xff]  }
 0x18b   :  { %1204 = vmatprep.subr.bf16.mxu0 %v4939_v58  ;;  %1286 = vmatprep.subr.bf16.mxu1 %v4942_v59  ;;  %v363_v56 = vpack.c.bf16 %v5560_v53, %v5560_v53  ;;  %v5020_v58 = vld [vmem:[#allocation6 + $0x2c] ss:$16 sps:$4 sm:$0xff]   ;;  %v5015_v59 = vld [vmem:[#allocation6 + $0x20] ss:$16 sps:$4 sm:$0xff]   ;;  %v5096_v53 = vld [vmem:[#allocation6 + $0x1c8] ss:$16 sps:$4 sm:$0xff]  }
 0x18c   :  { %1228 = vmatprep.mubr.bf16.mxu0 %v364_v63  ;;  %1310 = vmatprep.mubr.bf16.mxu1 %v364_v63  ;;  %v5021_v63 = vld [vmem:[#allocation6 + $0x40] ss:$16 sps:$4 sm:$0xff]  }
 0x18e   :  { %1205 = vmatpush1.bf16.msra.mxu0 %v4937_v61  ;;  %1287 = vmatpush1.bf16.msra.mxu1 %v4940_v62  ;;  %v5023_v61 = vld [vmem:[#allocation6 + $0x44] ss:$16 sps:$4 sm:$0xff]   ;;  %v5026_v62 = vld [vmem:[#allocation6 + $0x4c] ss:$16 sps:$4 sm:$0xff]  }
 0x18f   :  { %1206 = vmatprep.subr.bf16.mxu0 %v4945_v0  ;;  %1288 = vmatprep.subr.bf16.mxu1 %v4948_v1  ;;  %v5024_v0 = vld [vmem:[#allocation6 + $0x48] ss:$16 sps:$4 sm:$0xff]   ;;  %v5029_v1 = vld [vmem:[#allocation6 + $0x64] ss:$16 sps:$4 sm:$0xff]  }
 0x192   :  { %1207 = vmatpush1.bf16.msra.mxu0 %v4943_v2  ;;  %1289 = vmatpush1.bf16.msra.mxu1 %v4946_v3  ;;  %v5032_v2 = vld [vmem:[#allocation6 + $0x6c] ss:$16 sps:$4 sm:$0xff]   ;;  %v5027_v3 = vld [vmem:[#allocation6 + $0x60] ss:$16 sps:$4 sm:$0xff]  }
 0x193   :  { %1208 = vmatprep.subr.bf16.mxu0 %v4951_v4  ;;  %1290 = vmatprep.subr.bf16.mxu1 %v4954_v5  ;;  %v5030_v4 = vld [vmem:[#allocation6 + $0x68] ss:$16 sps:$4 sm:$0xff]   ;;  %v5035_v5 = vld [vmem:[#allocation6 + $0x84] ss:$16 sps:$4 sm:$0xff]  }
 0x196   :  { %1209 = vmatpush1.bf16.msra.mxu0 %v4949_v6  ;;  %1291 = vmatpush1.bf16.msra.mxu1 %v4952_v7  ;;  %v5038_v6 = vld [vmem:[#allocation6 + $0x8c] ss:$16 sps:$4 sm:$0xff]   ;;  %v5033_v7 = vld [vmem:[#allocation6 + $0x80] ss:$16 sps:$4 sm:$0xff]  }
 0x197   :  { %1210 = vmatprep.subr.bf16.mxu0 %v4957_v8  ;;  %1292 = vmatprep.subr.bf16.mxu1 %v4960_v9  ;;  %v5036_v8 = vld [vmem:[#allocation6 + $0x88] ss:$16 sps:$4 sm:$0xff]   ;;  %v5041_v9 = vld [vmem:[#allocation6 + $0xa4] ss:$16 sps:$4 sm:$0xff]  }
 0x19a   :  { %1211 = vmatpush1.bf16.msra.mxu0 %v4955_v10  ;;  %1293 = vmatpush1.bf16.msra.mxu1 %v4958_v11  ;;  %v5044_v10 = vld [vmem:[#allocation6 + $0xac] ss:$16 sps:$4 sm:$0xff]   ;;  %v5039_v11 = vld [vmem:[#allocation6 + $0xa0] ss:$16 sps:$4 sm:$0xff]  }
 0x19b   :  { %1212 = vmatprep.subr.bf16.mxu0 %v4963_v12  ;;  %1294 = vmatprep.subr.bf16.mxu1 %v4966_v13  ;;  %v5042_v12 = vld [vmem:[#allocation6 + $0xa8] ss:$16 sps:$4 sm:$0xff]   ;;  %v5047_v13 = vld [vmem:[#allocation6 + $0xc4] ss:$16 sps:$4 sm:$0xff]  }
 0x19e   :  { %1213 = vmatpush1.bf16.msra.mxu0 %v4961_v14  ;;  %1295 = vmatpush1.bf16.msra.mxu1 %v4964_v15  ;;  %v5050_v14 = vld [vmem:[#allocation6 + $0xcc] ss:$16 sps:$4 sm:$0xff]   ;;  %v5045_v15 = vld [vmem:[#allocation6 + $0xc0] ss:$16 sps:$4 sm:$0xff]  }
 0x19f   :  { %1214 = vmatprep.subr.bf16.mxu0 %v4969_v16  ;;  %1296 = vmatprep.subr.bf16.mxu1 %v4972_v17  ;;  %v5048_v16 = vld [vmem:[#allocation6 + $0xc8] ss:$16 sps:$4 sm:$0xff]   ;;  %v5053_v17 = vld [vmem:[#allocation6 + $0xe4] ss:$16 sps:$4 sm:$0xff]  }
 0x1a2   :  { %1215 = vmatpush1.bf16.msra.mxu0 %v4967_v18  ;;  %1297 = vmatpush1.bf16.msra.mxu1 %v4970_v19  ;;  %v5056_v18 = vld [vmem:[#allocation6 + $0xec] ss:$16 sps:$4 sm:$0xff]   ;;  %v5051_v19 = vld [vmem:[#allocation6 + $0xe0] ss:$16 sps:$4 sm:$0xff]  }
 0x1a3   :  { %1216 = vmatprep.subr.bf16.mxu0 %v4975_v25  ;;  %1298 = vmatprep.subr.bf16.mxu1 %v4978_v26  ;;  %v5054_v25 = vld [vmem:[#allocation6 + $0xe8] ss:$16 sps:$4 sm:$0xff]   ;;  %v5059_v26 = vld [vmem:[#allocation6 + $0x104] ss:$16 sps:$4 sm:$0xff]  }
 0x1a6   :  { %1217 = vmatpush1.bf16.msra.mxu0 %v4973_v27  ;;  %1299 = vmatpush1.bf16.msra.mxu1 %v4976_v28  ;;  %v5062_v27 = vld [vmem:[#allocation6 + $0x10c] ss:$16 sps:$4 sm:$0xff]   ;;  %v5057_v28 = vld [vmem:[#allocation6 + $0x100] ss:$16 sps:$4 sm:$0xff]  }
 0x1a7   :  { %1218 = vmatprep.subr.bf16.mxu0 %v4981_v30  ;;  %1300 = vmatprep.subr.bf16.mxu1 %v4984_v31  ;;  %v5060_v30 = vld [vmem:[#allocation6 + $0x108] ss:$16 sps:$4 sm:$0xff]   ;;  %v5065_v31 = vld [vmem:[#allocation6 + $0x124] ss:$16 sps:$4 sm:$0xff]  }
 0x1aa   :  { %1219 = vmatpush1.bf16.msra.mxu0 %v4979_v34  ;;  %1301 = vmatpush1.bf16.msra.mxu1 %v4982_v35  ;;  %v5063_v34 = vld [vmem:[#allocation6 + $0x120] ss:$16 sps:$4 sm:$0xff]   ;;  %v5066_v35 = vld [vmem:[#allocation6 + $0x128] ss:$16 sps:$4 sm:$0xff]  }
 0x1ab   :  { %1220 = vmatprep.subr.bf16.mxu0 %v4987_v36  ;;  %1302 = vmatprep.subr.bf16.mxu1 %v4990_v37  ;;  %v5071_v36 = vld [vmem:[#allocation6 + $0x144] ss:$16 sps:$4 sm:$0xff]   ;;  %v5074_v37 = vld [vmem:[#allocation6 + $0x14c] ss:$16 sps:$4 sm:$0xff]  }
 0x1ae   :  { %1221 = vmatpush1.bf16.msra.mxu0 %v4985_v21  ;;  %1303 = vmatpush1.bf16.msra.mxu1 %v4988_v39  ;;  %v5072_v21 = vld [vmem:[#allocation6 + $0x148] ss:$16 sps:$4 sm:$0xff]   ;;  %v5077_v39 = vld [vmem:[#allocation6 + $0x164] ss:$16 sps:$4 sm:$0xff]  }
 0x1af   :  { %1222 = vmatprep.subr.bf16.mxu0 %v4993_v40  ;;  %1304 = vmatprep.subr.bf16.mxu1 %v4996_v41  ;;  %v5080_v40 = vld [vmem:[#allocation6 + $0x16c] ss:$16 sps:$4 sm:$0xff]   ;;  %v5075_v41 = vld [vmem:[#allocation6 + $0x160] ss:$16 sps:$4 sm:$0xff]  }
 0x1b2   :  { %1223 = vmatpush1.bf16.msra.mxu0 %v4991_v22  ;;  %1305 = vmatpush1.bf16.msra.mxu1 %v4994_v42  ;;  %v5078_v22 = vld [vmem:[#allocation6 + $0x168] ss:$16 sps:$4 sm:$0xff]   ;;  %v5083_v42 = vld [vmem:[#allocation6 + $0x184] ss:$16 sps:$4 sm:$0xff]  }
 0x1b3   :  { %1224 = vmatprep.subr.bf16.mxu0 %v4999_v44  ;;  %1306 = vmatprep.subr.bf16.mxu1 %v5002_v45  ;;  %v5086_v44 = vld [vmem:[#allocation6 + $0x18c] ss:$16 sps:$4 sm:$0xff]   ;;  %v5081_v45 = vld [vmem:[#allocation6 + $0x180] ss:$16 sps:$4 sm:$0xff]  }
 0x1b6   :  { %1225 = vmatpush1.bf16.msra.mxu0 %v4997_v43  ;;  %1307 = vmatpush1.bf16.msra.mxu1 %v5000_v46  ;;  %v5084_v43 = vld [vmem:[#allocation6 + $0x188] ss:$16 sps:$4 sm:$0xff]   ;;  %v5089_v46 = vld [vmem:[#allocation6 + $0x1a4] ss:$16 sps:$4 sm:$0xff]  }
 0x1b7   :  { %1226 = vmatprep.subr.bf16.mxu0 %v5005_v47  ;;  %1308 = vmatprep.subr.bf16.mxu1 %v5008_v48  ;;  %v5092_v47 = vld [vmem:[#allocation6 + $0x1ac] ss:$16 sps:$4 sm:$0xff]   ;;  %v5087_v48 = vld [vmem:[#allocation6 + $0x1a0] ss:$16 sps:$4 sm:$0xff]  }
 0x1ba   :  { %1227 = vmatpush1.bf16.msra.mxu0 %v5003_v49  ;;  %1309 = vmatpush1.bf16.msra.mxu1 %v5006_v50  ;;  %v5090_v49 = vld [vmem:[#allocation6 + $0x1a8] ss:$16 sps:$4 sm:$0xff]   ;;  %v5095_v50 = vld [vmem:[#allocation6 + $0x1c4] ss:$16 sps:$4 sm:$0xff]  }
 0x1bb   :  { %2117 = vmatprep.subr.bf16.mxu0 %v5011_v51  ;;  %2199 = vmatprep.subr.bf16.mxu1 %v5014_v52  ;;  %v5098_v51 = vld [vmem:[#allocation6 + $0x1cc] ss:$16 sps:$4 sm:$0xff]   ;;  %v5093_v52 = vld [vmem:[#allocation6 + $0x1c0] ss:$16 sps:$4 sm:$0xff]  }
 0x1bd   :  { %1229 = vmatmul.mubr.bf16.vlgmr.msra.gmra.mrb[0].mxu0 %v363_v56  ;;  %1311 = vmatmul.mubr.bf16.vlgmr.msra.gmra.mrb[8].mxu1 %v363_v56  ;;  %v5099_v56 = vld [vmem:[#allocation6 + $0x1e0] ss:$16 sps:$4 sm:$0xff]  }
 0x1be   :  { %2118 = vmatpush1.bf16.msra.mxu0 %v5009_v54  ;;  %2200 = vmatpush1.bf16.msra.mxu1 %v5012_v55  ;;  %v5101_v54 = vld [vmem:[#allocation6 + $0x1e4] ss:$16 sps:$4 sm:$0xff]   ;;  %v5104_v55 = vld [vmem:[#allocation6 + $0x1ec] ss:$16 sps:$4 sm:$0xff]  }
 0x1bf   :  { %2119 = vmatprep.subr.bf16.mxu0 %v5017_v57  ;;  %2201 = vmatprep.subr.bf16.mxu1 %v5020_v58  ;;  %v5102_v57 = vld [vmem:[#allocation6 + $0x1e8] ss:$16 sps:$4 sm:$0xff]   ;;  %v5107_v58 = vld [vmem:[#allocation6 + $0x204] ss:$16 sps:$4 sm:$0xff]  }
 0x1c2   :  { %2120 = vmatpush1.bf16.msra.mxu0 %v5015_v59  ;;  %2202 = vmatpush1.bf16.msra.mxu1 %v5018_v60  ;;  %v5110_v59 = vld [vmem:[#allocation6 + $0x20c] ss:$16 sps:$4 sm:$0xff]   ;;  %v6026_v60 = vld [vmem:[%s6101_s7] sm:$0xf] }
 0x1c3   :  { %2121 = vmatprep.subr.bf16.mxu0 %v5023_v61  ;;  %2203 = vmatprep.subr.bf16.mxu1 %v5026_v62  ;;  %v498_v61 = vrot.slane %v6026_v60, %v6001_v23  ;;  %v502_v62 = vrot.slane %v6026_v60, %v6004_v24 }
 0x1c6   :  { %2122 = vmatpush1.bf16.msra.mxu0 %v5021_v63  ;;  %2204 = vmatpush1.bf16.msra.mxu1 %v5024_v0  ;;  %v510_v63 = vrot.slane %v6026_v60, %v6011_v33 }
 0x1c7   :  { %2123 = vmatprep.subr.bf16.mxu0 %v5029_v1  ;;  %2205 = vmatprep.subr.bf16.mxu1 %v5032_v2 }
 0x1ca   :  { %2124 = vmatpush1.bf16.msra.mxu0 %v5027_v3  ;;  %2206 = vmatpush1.bf16.msra.mxu1 %v5030_v4 }
 0x1cb   :  { %2125 = vmatprep.subr.bf16.mxu0 %v5035_v5  ;;  %2207 = vmatprep.subr.bf16.mxu1 %v5038_v6 }
 0x1ce   :  { %2126 = vmatpush1.bf16.msra.mxu0 %v5033_v7  ;;  %2208 = vmatpush1.bf16.msra.mxu1 %v5036_v8 }
 0x1cf   :  { %2127 = vmatprep.subr.bf16.mxu0 %v5041_v9  ;;  %2209 = vmatprep.subr.bf16.mxu1 %v5044_v10 }
 0x1d2   :  { %2128 = vmatpush1.bf16.msra.mxu0 %v5039_v11  ;;  %2210 = vmatpush1.bf16.msra.mxu1 %v5042_v12 }
 0x1d3   :  { %2129 = vmatprep.subr.bf16.mxu0 %v5047_v13  ;;  %2211 = vmatprep.subr.bf16.mxu1 %v5050_v14 }
 0x1d6   :  { %2130 = vmatpush1.bf16.msra.mxu0 %v5045_v15  ;;  %2212 = vmatpush1.bf16.msra.mxu1 %v5048_v16  ;;  %v5105_v15 = vld [vmem:[#allocation6 + $0x200] ss:$16 sps:$4 sm:$0xff]   ;;  %v5108_v16 = vld [vmem:[#allocation6 + $0x208] ss:$16 sps:$4 sm:$0xff]  }
 0x1d7   :  { %2131 = vmatprep.subr.bf16.mxu0 %v5053_v17  ;;  %2213 = vmatprep.subr.bf16.mxu1 %v5056_v18  ;;  %v5113_v18 = vld [vmem:[#allocation6 + $0x224] ss:$16 sps:$4 sm:$0xff]  }
 0x1da   :  { %2132 = vmatpush1.bf16.msra.mxu0 %v5051_v19  ;;  %2214 = vmatpush1.bf16.msra.mxu1 %v5054_v25  ;;  %v5116_v19 = vld [vmem:[#allocation6 + $0x22c] ss:$16 sps:$4 sm:$0xff]  }
 0x1db   :  { %2133 = vmatprep.subr.bf16.mxu0 %v5059_v26  ;;  %2215 = vmatprep.subr.bf16.mxu1 %v5062_v27  ;;  %v5111_v26 = vld [vmem:[#allocation6 + $0x220] ss:$16 sps:$4 sm:$0xff]   ;;  %v5114_v27 = vld [vmem:[#allocation6 + $0x228] ss:$16 sps:$4 sm:$0xff]  }
 0x1de   :  { %2134 = vmatpush1.bf16.msra.mxu0 %v5057_v28  ;;  %2216 = vmatpush1.bf16.msra.mxu1 %v5060_v30  ;;  %v5119_v28 = vld [vmem:[#allocation6 + $0x244] ss:$16 sps:$4 sm:$0xff]   ;;  %v5122_v30 = vld [vmem:[#allocation6 + $0x24c] ss:$16 sps:$4 sm:$0xff]  }
 0x1df   :  { %2135 = vmatprep.subr.bf16.mxu0 %v5065_v31  ;;  %2217 = vmatprep.subr.bf16.mxu1 %v5068_v32  ;;  %v5117_v31 = vld [vmem:[#allocation6 + $0x240] ss:$16 sps:$4 sm:$0xff]   ;;  %v5120_v32 = vld [vmem:[#allocation6 + $0x248] ss:$16 sps:$4 sm:$0xff]  }
 0x1e2   :  { %2136 = vmatpush1.bf16.msra.mxu0 %v5063_v34  ;;  %2218 = vmatpush1.bf16.msra.mxu1 %v5066_v35  ;;  %v5125_v34 = vld [vmem:[#allocation6 + $0x264] ss:$16 sps:$4 sm:$0xff]   ;;  %v5128_v35 = vld [vmem:[#allocation6 + $0x26c] ss:$16 sps:$4 sm:$0xff]  }
 0x1e3   :  { %2137 = vmatprep.subr.bf16.mxu0 %v5071_v36  ;;  %2219 = vmatprep.subr.bf16.mxu1 %v5074_v37  ;;  %v5123_v36 = vld [vmem:[#allocation6 + $0x260] ss:$16 sps:$4 sm:$0xff]   ;;  %v5126_v37 = vld [vmem:[#allocation6 + $0x268] ss:$16 sps:$4 sm:$0xff]  }
 0x1e6   :  { %2138 = vmatpush1.bf16.msra.mxu0 %v5069_v38  ;;  %2220 = vmatpush1.bf16.msra.mxu1 %v5072_v21  ;;  %v5131_v38 = vld [vmem:[#allocation6 + $0x284] ss:$16 sps:$4 sm:$0xff]   ;;  %v5134_v21 = vld [vmem:[#allocation6 + $0x28c] ss:$16 sps:$4 sm:$0xff]  }
 0x1e7   :  { %2139 = vmatprep.subr.bf16.mxu0 %v5077_v39  ;;  %2221 = vmatprep.subr.bf16.mxu1 %v5080_v40  ;;  %v5129_v39 = vld [vmem:[#allocation6 + $0x280] ss:$16 sps:$4 sm:$0xff]   ;;  %v5132_v40 = vld [vmem:[#allocation6 + $0x288] ss:$16 sps:$4 sm:$0xff]  }
 0x1ea   :  { %2140 = vmatpush1.bf16.msra.mxu0 %v5075_v41  ;;  %2222 = vmatpush1.bf16.msra.mxu1 %v5078_v22  ;;  %v5137_v41 = vld [vmem:[#allocation6 + $0x2a4] ss:$16 sps:$4 sm:$0xff]   ;;  %v5140_v22 = vld [vmem:[#allocation6 + $0x2ac] ss:$16 sps:$4 sm:$0xff]  }
 0x1eb   :  { %2141 = vmatprep.subr.bf16.mxu0 %v5083_v42  ;;  %2223 = vmatprep.subr.bf16.mxu1 %v5086_v44  ;;  %v5135_v42 = vld [vmem:[#allocation6 + $0x2a0] ss:$16 sps:$4 sm:$0xff]   ;;  %v5138_v44 = vld [vmem:[#allocation6 + $0x2a8] ss:$16 sps:$4 sm:$0xff]  }
 0x1ee   :  { %2142 = vmatpush1.bf16.msra.mxu0 %v5081_v45  ;;  %2224 = vmatpush1.bf16.msra.mxu1 %v5084_v43  ;;  %v5143_v45 = vld [vmem:[#allocation6 + $0x2c4] ss:$16 sps:$4 sm:$0xff]   ;;  %v5146_v43 = vld [vmem:[#allocation6 + $0x2cc] ss:$16 sps:$4 sm:$0xff]  }
 0x1ef   :  { %2143 = vmatprep.subr.bf16.mxu0 %v5089_v46  ;;  %2225 = vmatprep.subr.bf16.mxu1 %v5092_v47  ;;  %v5141_v46 = vld [vmem:[#allocation6 + $0x2c0] ss:$16 sps:$4 sm:$0xff]   ;;  %v5144_v47 = vld [vmem:[#allocation6 + $0x2c8] ss:$16 sps:$4 sm:$0xff]  }
 0x1f2   :  { %2144 = vmatpush1.bf16.msra.mxu0 %v5087_v48  ;;  %2226 = vmatpush1.bf16.msra.mxu1 %v5090_v49  ;;  %v5149_v48 = vld [vmem:[#allocation6 + $0x2e4] ss:$16 sps:$4 sm:$0xff]   ;;  %v5152_v49 = vld [vmem:[#allocation6 + $0x2ec] ss:$16 sps:$4 sm:$0xff]  }
 0x1f3   :  { %2145 = vmatprep.subr.bf16.mxu0 %v5095_v50  ;;  %2227 = vmatprep.subr.bf16.mxu1 %v5098_v51  ;;  %v5147_v50 = vld [vmem:[#allocation6 + $0x2e0] ss:$16 sps:$4 sm:$0xff]   ;;  %v5150_v51 = vld [vmem:[#allocation6 + $0x2e8] ss:$16 sps:$4 sm:$0xff]  }
 0x1f6   :  { %2146 = vmatpush1.bf16.msra.mxu0 %v5093_v52  ;;  %2228 = vmatpush1.bf16.msra.mxu1 %v5096_v53  ;;  %v5155_v52 = vld [vmem:[#allocation6 + $0x304] ss:$16 sps:$4 sm:$0xff]   ;;  %v5158_v53 = vld [vmem:[#allocation6 + $0x30c] ss:$16 sps:$4 sm:$0xff]  }
 0x1f7   :  { %2147 = vmatprep.subr.bf16.mxu0 %v5101_v54  ;;  %2229 = vmatprep.subr.bf16.mxu1 %v5104_v55  ;;  %v5153_v54 = vld [vmem:[#allocation6 + $0x300] ss:$16 sps:$4 sm:$0xff]   ;;  %v5156_v55 = vld [vmem:[#allocation6 + $0x308] ss:$16 sps:$4 sm:$0xff]  }
 0x1fa   :  { %2148 = vmatpush1.bf16.msra.mxu0 %v5099_v56  ;;  %2230 = vmatpush1.bf16.msra.mxu1 %v5102_v57  ;;  %v5161_v56 = vld [vmem:[#allocation6 + $0x324] ss:$16 sps:$4 sm:$0xff]   ;;  %v5164_v57 = vld [vmem:[#allocation6 + $0x32c] ss:$16 sps:$4 sm:$0xff]  }
 0x1fb   :  { %2158 = vmatprep.subr.bf16.mxu0 %v5107_v58  ;;  %2240 = vmatprep.subr.bf16.mxu1 %v5110_v59  ;;  %v5159_v58 = vld [vmem:[#allocation6 + $0x320] ss:$16 sps:$4 sm:$0xff]   ;;  %v5162_v59 = vld [vmem:[#allocation6 + $0x328] ss:$16 sps:$4 sm:$0xff]  }
 0x290   :  { %v1230_v0 = vpop.f32.mrb[0].mxu0  ;;  %v6034_v1 = vpop.f32.mrb[8].mxu1 }
 0x291   :  { %v4734_v2 = vadd.f32 %v1230_v0, %v498_v61  ;;  %v1232_v3 = vpop.f32.mrb[1].mxu0  ;;  %v1314_v4 = vpop.f32.mrb[9].mxu1  ;;  %v5167_v61 = vld [vmem:[#allocation6 + $0x344] ss:$16 sps:$4 sm:$0xff]   ;;  %v5168_v0 = vld [vmem:[#allocation6 + $0x348] ss:$16 sps:$4 sm:$0xff]  }
 0x292   :  { %v4735_v5 = vadd.f32 %v1232_v3, %v502_v62  ;;  %v4737_v6 = vadd.f32 %v1314_v4, %v510_v63  ;;  %v1234_v7 = vpop.f32.mrb[2].mxu0  ;;  %v1316_v8 = vpop.f32.mrb[10].mxu1  ;;  %v5170_v62 = vld [vmem:[#allocation6 + $0x34c] ss:$16 sps:$4 sm:$0xff]   ;;  %v5165_v63 = vld [vmem:[#allocation6 + $0x340] ss:$16 sps:$4 sm:$0xff]   ;;  %v506_v4 = vrot.slane %v6026_v60, %v6018_v29 }
 0x293   :  { %v1235_v9 = vpop.f32.mrb[3].mxu0  ;;  %v1317_v10 = vpop.f32.mrb[11].mxu1  ;;  %5561 = vtanh.f32 %v4734_v2  ;;  %v5173_v2 = vld [vmem:[#allocation6 + $0x364] ss:$16 sps:$4 sm:$0xff]   ;;  %v5176_v3 = vld [vmem:[#allocation6 + $0x36c] ss:$16 sps:$4 sm:$0xff]  }
 0x294   :  { %5563 = vtanh.f32 %v4735_v5  ;;  %v5171_v5 = vld [vmem:[#allocation6 + $0x360] ss:$16 sps:$4 sm:$0xff]   ;;  %v5179_v7 = vld [vmem:[#allocation6 + $0x384] ss:$16 sps:$4 sm:$0xff]   ;;  %v5182_v8 = vld [vmem:[#allocation6 + $0x38c] ss:$16 sps:$4 sm:$0xff]   ;;  %v4736_v9 = vadd.f32 %v6034_v1, %v506_v4 }
 0x295   :  { %5565 = vtanh.f32 %v4737_v6  ;;  %v5174_v6 = vld [vmem:[#allocation6 + $0x368] ss:$16 sps:$4 sm:$0xff]   ;;  %v5177_v10 = vld [vmem:[#allocation6 + $0x380] ss:$16 sps:$4 sm:$0xff]   ;;  %v5260_v4 = vld [vmem:[#allocation7 + $0x12c] ss:$16 sps:$4 sm:$0xff]  }
 0x296   :  { %5567 = vtanh.f32 %v4736_v9  ;;  %v5183_v60 = vld [vmem:[#allocation6 + $0x3a0] ss:$16 sps:$4 sm:$0xff]  }
 0x297   :  { %v5189_v1 = vld [vmem:[#allocation6 + $0x3c0] ss:$16 sps:$4 sm:$0xff]  }
 0x298   :  { %v5261_v9 = vld [vmem:[#allocation7 + $0x140] ss:$16 sps:$4 sm:$0xff]  }
 0x29d   :  { %v5562_v11 = vpop.eup %5561 }
 0x29e   :  { %v5564_v12 = vpop.eup %5563  ;;  %v1323_v17 = vpack.c.bf16 %v5562_v11, %v5562_v11  ;;  %v5180_v11 = vld [vmem:[#allocation6 + $0x388] ss:$16 sps:$4 sm:$0xff]  }
 0x29f   :  { %v5566_v13 = vpop.eup %5565  ;;  %v1324_v14 = vpack.c.bf16 %v5564_v12, %v5564_v12  ;;  %v5185_v12 = vld [vmem:[#allocation6 + $0x3a4] ss:$16 sps:$4 sm:$0xff]  }
 0x2a0   :  { %v1326_v25 = vpack.c.bf16 %v5566_v13, %v5566_v13  ;;  %v5188_v13 = vld [vmem:[#allocation6 + $0x3ac] ss:$16 sps:$4 sm:$0xff]  }
 0x2a1   :  { %2149 = vmatprep.mubr.bf16.mxu0 %v1324_v14  ;;  %2231 = vmatprep.mubr.bf16.mxu1 %v1324_v14  ;;  %v5186_v14 = vld [vmem:[#allocation6 + $0x3a8] ss:$16 sps:$4 sm:$0xff]  }
 0x2a2   :  { %2150 = vmatmul.mubr.bf16.vlgmr.msra.gmra.mrb[4].mxu0 %v1323_v17  ;;  %2232 = vmatmul.mubr.bf16.vlgmr.msra.gmra.mrb[12].mxu1 %v1323_v17  ;;  %v5192_v17 = vld [vmem:[#allocation6 + $0x3c8] ss:$16 sps:$4 sm:$0xff]  }
 0x2a3   :  { %2159 = vmatpush1.bf16.msra.mxu0 %v5105_v15  ;;  %2241 = vmatpush1.bf16.msra.mxu1 %v5108_v16  ;;  %v5191_v15 = vld [vmem:[#allocation6 + $0x3c4] ss:$16 sps:$4 sm:$0xff]   ;;  %v5194_v16 = vld [vmem:[#allocation6 + $0x3cc] ss:$16 sps:$4 sm:$0xff]  }
 0x2a4   :  { %2190 = vmatprep.mubr.bf16.mxu0 %v1326_v25  ;;  %2272 = vmatprep.mubr.bf16.mxu1 %v1326_v25  ;;  %v5195_v25 = vld [vmem:[#allocation6 + $0x3e0] ss:$16 sps:$4 sm:$0xff]  }
 0x2a5   :  { %2160 = vmatprep.subr.bf16.mxu0 %v5113_v18  ;;  %2242 = vmatprep.subr.bf16.mxu1 %v5116_v19  ;;  %v5197_v18 = vld [vmem:[#allocation6 + $0x3e4] ss:$16 sps:$4 sm:$0xff]   ;;  %v5200_v19 = vld [vmem:[#allocation6 + $0x3ec] ss:$16 sps:$4 sm:$0xff]  }
 0x2a7   :  { %2161 = vmatpush1.bf16.msra.mxu0 %v5111_v26  ;;  %2243 = vmatpush1.bf16.msra.mxu1 %v5114_v27  ;;  %v5198_v26 = vld [vmem:[#allocation6 + $0x3e8] ss:$16 sps:$4 sm:$0xff]   ;;  %v5203_v27 = vld [vmem:[#allocation7 + $0x4] ss:$16 sps:$4 sm:$0xff]  }
 0x2a8   :  { %2162 = vmatprep.subr.bf16.mxu0 %v5119_v28  ;;  %2244 = vmatprep.subr.bf16.mxu1 %v5122_v30  ;;  %v5206_v28 = vld [vmem:[#allocation7 + $0xc] ss:$16 sps:$4 sm:$0xff]   ;;  %v5568_v30 = vpop.eup %5567 }
 0x2ab   :  { %2163 = vmatpush1.bf16.msra.mxu0 %v5117_v31  ;;  %2245 = vmatpush1.bf16.msra.mxu1 %v5120_v32  ;;  %v5201_v31 = vld [vmem:[#allocation7] ss:$16 sps:$4 sm:$0xff]   ;;  %v5204_v32 = vld [vmem:[#allocation7 + $0x8] ss:$16 sps:$4 sm:$0xff]  }
 0x2ac   :  { %2164 = vmatprep.subr.bf16.mxu0 %v5125_v34  ;;  %2246 = vmatprep.subr.bf16.mxu1 %v5128_v35  ;;  %v1325_v34 = vpack.c.bf16 %v5568_v30, %v5568_v30  ;;  %v5209_v35 = vld [vmem:[#allocation7 + $0x24] ss:$16 sps:$4 sm:$0xff]   ;;  %v5288_v30 = vld [vmem:[#allocation7 + $0x1c8] ss:$16 sps:$4 sm:$0xff]  }
 0x2af   :  { %2165 = vmatpush1.bf16.msra.mxu0 %v5123_v36  ;;  %2247 = vmatpush1.bf16.msra.mxu1 %v5126_v37  ;;  %v5212_v36 = vld [vmem:[#allocation7 + $0x2c] ss:$16 sps:$4 sm:$0xff]   ;;  %v5207_v37 = vld [vmem:[#allocation7 + $0x20] ss:$16 sps:$4 sm:$0xff]  }
 0x2b0   :  { %2166 = vmatprep.subr.bf16.mxu0 %v5131_v38  ;;  %2248 = vmatprep.subr.bf16.mxu1 %v5134_v21  ;;  %v5210_v38 = vld [vmem:[#allocation7 + $0x28] ss:$16 sps:$4 sm:$0xff]   ;;  %v5215_v21 = vld [vmem:[#allocation7 + $0x44] ss:$16 sps:$4 sm:$0xff]  }
 0x2b3   :  { %2167 = vmatpush1.bf16.msra.mxu0 %v5129_v39  ;;  %2249 = vmatpush1.bf16.msra.mxu1 %v5132_v40  ;;  %v5218_v39 = vld [vmem:[#allocation7 + $0x4c] ss:$16 sps:$4 sm:$0xff]   ;;  %v5213_v40 = vld [vmem:[#allocation7 + $0x40] ss:$16 sps:$4 sm:$0xff]  }
 0x2b4   :  { %2168 = vmatprep.subr.bf16.mxu0 %v5137_v41  ;;  %2250 = vmatprep.subr.bf16.mxu1 %v5140_v22  ;;  %v5216_v41 = vld [vmem:[#allocation7 + $0x48] ss:$16 sps:$4 sm:$0xff]   ;;  %v5221_v22 = vld [vmem:[#allocation7 + $0x64] ss:$16 sps:$4 sm:$0xff]  }
 0x2b7   :  { %2169 = vmatpush1.bf16.msra.mxu0 %v5135_v42  ;;  %2251 = vmatpush1.bf16.msra.mxu1 %v5138_v44  ;;  %v5224_v42 = vld [vmem:[#allocation7 + $0x6c] ss:$16 sps:$4 sm:$0xff]   ;;  %v5219_v44 = vld [vmem:[#allocation7 + $0x60] ss:$16 sps:$4 sm:$0xff]  }
 0x2b8   :  { %2170 = vmatprep.subr.bf16.mxu0 %v5143_v45  ;;  %2252 = vmatprep.subr.bf16.mxu1 %v5146_v43  ;;  %v5222_v45 = vld [vmem:[#allocation7 + $0x68] ss:$16 sps:$4 sm:$0xff]   ;;  %v5227_v43 = vld [vmem:[#allocation7 + $0x84] ss:$16 sps:$4 sm:$0xff]  }
 0x2bb   :  { %2171 = vmatpush1.bf16.msra.mxu0 %v5141_v46  ;;  %2253 = vmatpush1.bf16.msra.mxu1 %v5144_v47  ;;  %v5230_v46 = vld [vmem:[#allocation7 + $0x8c] ss:$16 sps:$4 sm:$0xff]   ;;  %v5225_v47 = vld [vmem:[#allocation7 + $0x80] ss:$16 sps:$4 sm:$0xff]  }
 0x2bc   :  { %2172 = vmatprep.subr.bf16.mxu0 %v5149_v48  ;;  %2254 = vmatprep.subr.bf16.mxu1 %v5152_v49  ;;  %v5228_v48 = vld [vmem:[#allocation7 + $0x88] ss:$16 sps:$4 sm:$0xff]   ;;  %v5233_v49 = vld [vmem:[#allocation7 + $0xa4] ss:$16 sps:$4 sm:$0xff]  }
 0x2bf   :  { %2173 = vmatpush1.bf16.msra.mxu0 %v5147_v50  ;;  %2255 = vmatpush1.bf16.msra.mxu1 %v5150_v51  ;;  %v5236_v50 = vld [vmem:[#allocation7 + $0xac] ss:$16 sps:$4 sm:$0xff]   ;;  %v5231_v51 = vld [vmem:[#allocation7 + $0xa0] ss:$16 sps:$4 sm:$0xff]  }
 0x2c0   :  { %2174 = vmatprep.subr.bf16.mxu0 %v5155_v52  ;;  %2256 = vmatprep.subr.bf16.mxu1 %v5158_v53  ;;  %v5234_v52 = vld [vmem:[#allocation7 + $0xa8] ss:$16 sps:$4 sm:$0xff]   ;;  %v5239_v53 = vld [vmem:[#allocation7 + $0xc4] ss:$16 sps:$4 sm:$0xff]  }
 0x2c3   :  { %2175 = vmatpush1.bf16.msra.mxu0 %v5153_v54  ;;  %2257 = vmatpush1.bf16.msra.mxu1 %v5156_v55  ;;  %v5242_v54 = vld [vmem:[#allocation7 + $0xcc] ss:$16 sps:$4 sm:$0xff]   ;;  %v5237_v55 = vld [vmem:[#allocation7 + $0xc0] ss:$16 sps:$4 sm:$0xff]  }
 0x2c4   :  { %2176 = vmatprep.subr.bf16.mxu0 %v5161_v56  ;;  %2258 = vmatprep.subr.bf16.mxu1 %v5164_v57  ;;  %v5240_v56 = vld [vmem:[#allocation7 + $0xc8] ss:$16 sps:$4 sm:$0xff]   ;;  %v5245_v57 = vld [vmem:[#allocation7 + $0xe4] ss:$16 sps:$4 sm:$0xff]  }
 0x2c7   :  { %2177 = vmatpush1.bf16.msra.mxu0 %v5159_v58  ;;  %2259 = vmatpush1.bf16.msra.mxu1 %v5162_v59  ;;  %v5248_v58 = vld [vmem:[#allocation7 + $0xec] ss:$16 sps:$4 sm:$0xff]   ;;  %v5243_v59 = vld [vmem:[#allocation7 + $0xe0] ss:$16 sps:$4 sm:$0xff]  }
 0x2c8   :  { %2178 = vmatprep.subr.bf16.mxu0 %v5167_v61  ;;  %2260 = vmatprep.subr.bf16.mxu1 %v5170_v62  ;;  %v5246_v61 = vld [vmem:[#allocation7 + $0xe8] ss:$16 sps:$4 sm:$0xff]   ;;  %v5251_v62 = vld [vmem:[#allocation7 + $0x104] ss:$16 sps:$4 sm:$0xff]  }
 0x2cb   :  { %2179 = vmatpush1.bf16.msra.mxu0 %v5165_v63  ;;  %2261 = vmatpush1.bf16.msra.mxu1 %v5168_v0  ;;  %v5254_v63 = vld [vmem:[#allocation7 + $0x10c] ss:$16 sps:$4 sm:$0xff]   ;;  %v5249_v0 = vld [vmem:[#allocation7 + $0x100] ss:$16 sps:$4 sm:$0xff]  }
 0x2cc   :  { %2180 = vmatprep.subr.bf16.mxu0 %v5173_v2  ;;  %2262 = vmatprep.subr.bf16.mxu1 %v5176_v3  ;;  %v5252_v2 = vld [vmem:[#allocation7 + $0x108] ss:$16 sps:$4 sm:$0xff]   ;;  %v5257_v3 = vld [vmem:[#allocation7 + $0x124] ss:$16 sps:$4 sm:$0xff]  }
 0x2cf   :  { %2181 = vmatpush1.bf16.msra.mxu0 %v5171_v5  ;;  %2263 = vmatpush1.bf16.msra.mxu1 %v5174_v6  ;;  %v5255_v5 = vld [vmem:[#allocation7 + $0x120] ss:$16 sps:$4 sm:$0xff]   ;;  %v5258_v6 = vld [vmem:[#allocation7 + $0x128] ss:$16 sps:$4 sm:$0xff]  }
 0x2d0   :  { %2182 = vmatprep.subr.bf16.mxu0 %v5179_v7  ;;  %2264 = vmatprep.subr.bf16.mxu1 %v5182_v8  ;;  %v5263_v7 = vld [vmem:[#allocation7 + $0x144] ss:$16 sps:$4 sm:$0xff]   ;;  %v5266_v8 = vld [vmem:[#allocation7 + $0x14c] ss:$16 sps:$4 sm:$0xff]  }
 0x2d3   :  { %2183 = vmatpush1.bf16.msra.mxu0 %v5177_v10  ;;  %2265 = vmatpush1.bf16.msra.mxu1 %v5180_v11  ;;  %v5264_v10 = vld [vmem:[#allocation7 + $0x148] ss:$16 sps:$4 sm:$0xff]   ;;  %v5269_v11 = vld [vmem:[#allocation7 + $0x164] ss:$16 sps:$4 sm:$0xff]  }
 0x2d4   :  { %2184 = vmatprep.subr.bf16.mxu0 %v5185_v12  ;;  %2266 = vmatprep.subr.bf16.mxu1 %v5188_v13  ;;  %v5272_v12 = vld [vmem:[#allocation7 + $0x16c] ss:$16 sps:$4 sm:$0xff]   ;;  %v5267_v13 = vld [vmem:[#allocation7 + $0x160] ss:$16 sps:$4 sm:$0xff]  }
 0x2d7   :  { %2185 = vmatpush1.bf16.msra.mxu0 %v5183_v60  ;;  %2267 = vmatpush1.bf16.msra.mxu1 %v5186_v14  ;;  %v5270_v60 = vld [vmem:[#allocation7 + $0x168] ss:$16 sps:$4 sm:$0xff]   ;;  %v5275_v14 = vld [vmem:[#allocation7 + $0x184] ss:$16 sps:$4 sm:$0xff]  }
 0x2d8   :  { %2186 = vmatprep.subr.bf16.mxu0 %v5191_v15  ;;  %2268 = vmatprep.subr.bf16.mxu1 %v5194_v16  ;;  %v5278_v15 = vld [vmem:[#allocation7 + $0x18c] ss:$16 sps:$4 sm:$0xff]   ;;  %v5273_v16 = vld [vmem:[#allocation7 + $0x180] ss:$16 sps:$4 sm:$0xff]  }
 0x2db   :  { %2187 = vmatpush1.bf16.msra.mxu0 %v5189_v1  ;;  %2269 = vmatpush1.bf16.msra.mxu1 %v5192_v17  ;;  %v5276_v1 = vld [vmem:[#allocation7 + $0x188] ss:$16 sps:$4 sm:$0xff]   ;;  %v5281_v17 = vld [vmem:[#allocation7 + $0x1a4] ss:$16 sps:$4 sm:$0xff]  }
 0x2dc   :  { %2188 = vmatprep.subr.bf16.mxu0 %v5197_v18  ;;  %2270 = vmatprep.subr.bf16.mxu1 %v5200_v19  ;;  %v5284_v18 = vld [vmem:[#allocation7 + $0x1ac] ss:$16 sps:$4 sm:$0xff]   ;;  %v5279_v19 = vld [vmem:[#allocation7 + $0x1a0] ss:$16 sps:$4 sm:$0xff]  }
 0x2df   :  { %2189 = vmatpush1.bf16.msra.mxu0 %v5195_v25  ;;  %2271 = vmatpush1.bf16.msra.mxu1 %v5198_v26  ;;  %v5282_v25 = vld [vmem:[#allocation7 + $0x1a8] ss:$16 sps:$4 sm:$0xff]   ;;  %v5287_v26 = vld [vmem:[#allocation7 + $0x1c4] ss:$16 sps:$4 sm:$0xff]  }
 0x2e0   :  { %3079 = vmatprep.subr.bf16.mxu0 %v5203_v27  ;;  %3161 = vmatprep.subr.bf16.mxu1 %v5206_v28  ;;  %v5290_v27 = vld [vmem:[#allocation7 + $0x1cc] ss:$16 sps:$4 sm:$0xff]   ;;  %v5285_v28 = vld [vmem:[#allocation7 + $0x1c0] ss:$16 sps:$4 sm:$0xff]  }
 0x2e2   :  { %2191 = vmatmul.mubr.bf16.vlgmr.msra.gmra.mrb[4].mxu0 %v1325_v34  ;;  %2273 = vmatmul.mubr.bf16.vlgmr.msra.gmra.mrb[12].mxu1 %v1325_v34  ;;  %v5291_v34 = vld [vmem:[#allocation7 + $0x1e0] ss:$16 sps:$4 sm:$0xff]  }
 0x2e3   :  { %3080 = vmatpush1.bf16.msra.mxu0 %v5201_v31  ;;  %3162 = vmatpush1.bf16.msra.mxu1 %v5204_v32  ;;  %v5293_v31 = vld [vmem:[#allocation7 + $0x1e4] ss:$16 sps:$4 sm:$0xff]   ;;  %v5296_v32 = vld [vmem:[#allocation7 + $0x1ec] ss:$16 sps:$4 sm:$0xff]  }
 0x2e4   :  { %3081 = vmatprep.subr.bf16.mxu0 %v5209_v35  ;;  %3163 = vmatprep.subr.bf16.mxu1 %v5212_v36  ;;  %v5294_v35 = vld [vmem:[#allocation7 + $0x1e8] ss:$16 sps:$4 sm:$0xff]   ;;  %v5299_v36 = vld [vmem:[#allocation7 + $0x204] ss:$16 sps:$4 sm:$0xff]  }
 0x2e7   :  { %3082 = vmatpush1.bf16.msra.mxu0 %v5207_v37  ;;  %3164 = vmatpush1.bf16.msra.mxu1 %v5210_v38  ;;  %v5302_v37 = vld [vmem:[#allocation7 + $0x20c] ss:$16 sps:$4 sm:$0xff]   ;;  %v6042_v38 = vld [vmem:[%s6102_s8] sm:$0xf] }
 0x2e8   :  { %3083 = vmatprep.subr.bf16.mxu0 %v5215_v21  ;;  %3165 = vmatprep.subr.bf16.mxu1 %v5218_v39  ;;  %v1460_v21 = vrot.slane %v6042_v38, %v6001_v23  ;;  %v1464_v39 = vrot.slane %v6042_v38, %v6004_v24 }
 0x2eb   :  { %3084 = vmatpush1.bf16.msra.mxu0 %v5213_v40  ;;  %3166 = vmatpush1.bf16.msra.mxu1 %v5216_v41  ;;  %v1472_v40 = vrot.slane %v6042_v38, %v6011_v33 }
 0x2ec   :  { %3085 = vmatprep.subr.bf16.mxu0 %v5221_v22  ;;  %3167 = vmatprep.subr.bf16.mxu1 %v5224_v42 }
 0x2ef   :  { %3086 = vmatpush1.bf16.msra.mxu0 %v5219_v44  ;;  %3168 = vmatpush1.bf16.msra.mxu1 %v5222_v45 }
 0x2f0   :  { %3087 = vmatprep.subr.bf16.mxu0 %v5227_v43  ;;  %3169 = vmatprep.subr.bf16.mxu1 %v5230_v46 }
 0x2f3   :  { %3088 = vmatpush1.bf16.msra.mxu0 %v5225_v47  ;;  %3170 = vmatpush1.bf16.msra.mxu1 %v5228_v48 }
 0x2f4   :  { %3089 = vmatprep.subr.bf16.mxu0 %v5233_v49  ;;  %3171 = vmatprep.subr.bf16.mxu1 %v5236_v50 }
 0x2f7   :  { %3090 = vmatpush1.bf16.msra.mxu0 %v5231_v51  ;;  %3172 = vmatpush1.bf16.msra.mxu1 %v5234_v52 }
 0x2f8   :  { %3091 = vmatprep.subr.bf16.mxu0 %v5239_v53  ;;  %3173 = vmatprep.subr.bf16.mxu1 %v5242_v54 }
 0x2fb   :  { %3092 = vmatpush1.bf16.msra.mxu0 %v5237_v55  ;;  %3174 = vmatpush1.bf16.msra.mxu1 %v5240_v56  ;;  %v5297_v55 = vld [vmem:[#allocation7 + $0x200] ss:$16 sps:$4 sm:$0xff]   ;;  %v5300_v56 = vld [vmem:[#allocation7 + $0x208] ss:$16 sps:$4 sm:$0xff]  }
 0x2fc   :  { %3093 = vmatprep.subr.bf16.mxu0 %v5245_v57  ;;  %3175 = vmatprep.subr.bf16.mxu1 %v5248_v58  ;;  %v5305_v58 = vld [vmem:[#allocation7 + $0x224] ss:$16 sps:$4 sm:$0xff]  }
 0x2ff   :  { %3094 = vmatpush1.bf16.msra.mxu0 %v5243_v59  ;;  %3176 = vmatpush1.bf16.msra.mxu1 %v5246_v61  ;;  %v5308_v59 = vld [vmem:[#allocation7 + $0x22c] ss:$16 sps:$4 sm:$0xff]  }
 0x300   :  { %3095 = vmatprep.subr.bf16.mxu0 %v5251_v62  ;;  %3177 = vmatprep.subr.bf16.mxu1 %v5254_v63  ;;  %v5303_v62 = vld [vmem:[#allocation7 + $0x220] ss:$16 sps:$4 sm:$0xff]   ;;  %v5306_v63 = vld [vmem:[#allocation7 + $0x228] ss:$16 sps:$4 sm:$0xff]  }
 0x303   :  { %3096 = vmatpush1.bf16.msra.mxu0 %v5249_v0  ;;  %3178 = vmatpush1.bf16.msra.mxu1 %v5252_v2  ;;  %v5311_v0 = vld [vmem:[#allocation7 + $0x244] ss:$16 sps:$4 sm:$0xff]   ;;  %v5314_v2 = vld [vmem:[#allocation7 + $0x24c] ss:$16 sps:$4 sm:$0xff]  }
 0x304   :  { %3097 = vmatprep.subr.bf16.mxu0 %v5257_v3  ;;  %3179 = vmatprep.subr.bf16.mxu1 %v5260_v4  ;;  %v5309_v3 = vld [vmem:[#allocation7 + $0x240] ss:$16 sps:$4 sm:$0xff]   ;;  %v5312_v4 = vld [vmem:[#allocation7 + $0x248] ss:$16 sps:$4 sm:$0xff]  }
 0x307   :  { %3098 = vmatpush1.bf16.msra.mxu0 %v5255_v5  ;;  %3180 = vmatpush1.bf16.msra.mxu1 %v5258_v6  ;;  %v5317_v5 = vld [vmem:[#allocation7 + $0x264] ss:$16 sps:$4 sm:$0xff]   ;;  %v5320_v6 = vld [vmem:[#allocation7 + $0x26c] ss:$16 sps:$4 sm:$0xff]  }
 0x308   :  { %3099 = vmatprep.subr.bf16.mxu0 %v5263_v7  ;;  %3181 = vmatprep.subr.bf16.mxu1 %v5266_v8  ;;  %v5315_v7 = vld [vmem:[#allocation7 + $0x260] ss:$16 sps:$4 sm:$0xff]   ;;  %v5318_v8 = vld [vmem:[#allocation7 + $0x268] ss:$16 sps:$4 sm:$0xff]  }
 0x30b   :  { %3100 = vmatpush1.bf16.msra.mxu0 %v5261_v9  ;;  %3182 = vmatpush1.bf16.msra.mxu1 %v5264_v10  ;;  %v5323_v9 = vld [vmem:[#allocation7 + $0x284] ss:$16 sps:$4 sm:$0xff]   ;;  %v5326_v10 = vld [vmem:[#allocation7 + $0x28c] ss:$16 sps:$4 sm:$0xff]  }
 0x30c   :  { %3101 = vmatprep.subr.bf16.mxu0 %v5269_v11  ;;  %3183 = vmatprep.subr.bf16.mxu1 %v5272_v12  ;;  %v5321_v11 = vld [vmem:[#allocation7 + $0x280] ss:$16 sps:$4 sm:$0xff]   ;;  %v5324_v12 = vld [vmem:[#allocation7 + $0x288] ss:$16 sps:$4 sm:$0xff]  }
 0x30f   :  { %3102 = vmatpush1.bf16.msra.mxu0 %v5267_v13  ;;  %3184 = vmatpush1.bf16.msra.mxu1 %v5270_v60  ;;  %v5329_v13 = vld [vmem:[#allocation7 + $0x2a4] ss:$16 sps:$4 sm:$0xff]   ;;  %v5332_v60 = vld [vmem:[#allocation7 + $0x2ac] ss:$16 sps:$4 sm:$0xff]  }
 0x310   :  { %3103 = vmatprep.subr.bf16.mxu0 %v5275_v14  ;;  %3185 = vmatprep.subr.bf16.mxu1 %v5278_v15  ;;  %v5327_v14 = vld [vmem:[#allocation7 + $0x2a0] ss:$16 sps:$4 sm:$0xff]   ;;  %v5330_v15 = vld [vmem:[#allocation7 + $0x2a8] ss:$16 sps:$4 sm:$0xff]  }
 0x313   :  { %3104 = vmatpush1.bf16.msra.mxu0 %v5273_v16  ;;  %3186 = vmatpush1.bf16.msra.mxu1 %v5276_v1  ;;  %v5335_v16 = vld [vmem:[#allocation7 + $0x2c4] ss:$16 sps:$4 sm:$0xff]   ;;  %v5338_v1 = vld [vmem:[#allocation7 + $0x2cc] ss:$16 sps:$4 sm:$0xff]  }
 0x314   :  { %3105 = vmatprep.subr.bf16.mxu0 %v5281_v17  ;;  %3187 = vmatprep.subr.bf16.mxu1 %v5284_v18  ;;  %v5333_v17 = vld [vmem:[#allocation7 + $0x2c0] ss:$16 sps:$4 sm:$0xff]   ;;  %v5336_v18 = vld [vmem:[#allocation7 + $0x2c8] ss:$16 sps:$4 sm:$0xff]  }
 0x317   :  { %3106 = vmatpush1.bf16.msra.mxu0 %v5279_v19  ;;  %3188 = vmatpush1.bf16.msra.mxu1 %v5282_v25  ;;  %v5341_v19 = vld [vmem:[#allocation7 + $0x2e4] ss:$16 sps:$4 sm:$0xff]   ;;  %v5344_v25 = vld [vmem:[#allocation7 + $0x2ec] ss:$16 sps:$4 sm:$0xff]  }
 0x318   :  { %3107 = vmatprep.subr.bf16.mxu0 %v5287_v26  ;;  %3189 = vmatprep.subr.bf16.mxu1 %v5290_v27  ;;  %v5339_v26 = vld [vmem:[#allocation7 + $0x2e0] ss:$16 sps:$4 sm:$0xff]   ;;  %v5342_v27 = vld [vmem:[#allocation7 + $0x2e8] ss:$16 sps:$4 sm:$0xff]  }
 0x31b   :  { %3108 = vmatpush1.bf16.msra.mxu0 %v5285_v28  ;;  %3190 = vmatpush1.bf16.msra.mxu1 %v5288_v30  ;;  %v5347_v28 = vld [vmem:[#allocation7 + $0x304] ss:$16 sps:$4 sm:$0xff]   ;;  %v5350_v30 = vld [vmem:[#allocation7 + $0x30c] ss:$16 sps:$4 sm:$0xff]  }
 0x31c   :  { %3109 = vmatprep.subr.bf16.mxu0 %v5293_v31  ;;  %3191 = vmatprep.subr.bf16.mxu1 %v5296_v32  ;;  %v5345_v31 = vld [vmem:[#allocation7 + $0x300] ss:$16 sps:$4 sm:$0xff]   ;;  %v5348_v32 = vld [vmem:[#allocation7 + $0x308] ss:$16 sps:$4 sm:$0xff]  }
 0x31f   :  { %3110 = vmatpush1.bf16.msra.mxu0 %v5291_v34  ;;  %3192 = vmatpush1.bf16.msra.mxu1 %v5294_v35  ;;  %v5353_v34 = vld [vmem:[#allocation7 + $0x324] ss:$16 sps:$4 sm:$0xff]   ;;  %v5356_v35 = vld [vmem:[#allocation7 + $0x32c] ss:$16 sps:$4 sm:$0xff]  }
 0x320   :  { %3120 = vmatprep.subr.bf16.mxu0 %v5299_v36  ;;  %3202 = vmatprep.subr.bf16.mxu1 %v5302_v37  ;;  %v5351_v36 = vld [vmem:[#allocation7 + $0x320] ss:$16 sps:$4 sm:$0xff]   ;;  %v5354_v37 = vld [vmem:[#allocation7 + $0x328] ss:$16 sps:$4 sm:$0xff]  }
 0x3b5   :  { %v2192_v41 = vpop.f32.mrb[4].mxu0  ;;  %v6050_v22 = vpop.f32.mrb[12].mxu1 }
 0x3b6   :  { %v4738_v42 = vadd.f32 %v2192_v41, %v1460_v21  ;;  %v2194_v44 = vpop.f32.mrb[5].mxu0  ;;  %v2276_v45 = vpop.f32.mrb[13].mxu1  ;;  %v5359_v21 = vld [vmem:[#allocation7 + $0x344] ss:$16 sps:$4 sm:$0xff]   ;;  %v5360_v41 = vld [vmem:[#allocation7 + $0x348] ss:$16 sps:$4 sm:$0xff]  }
 0x3b7   :  { %v4739_v43 = vadd.f32 %v2194_v44, %v1464_v39  ;;  %v4741_v46 = vadd.f32 %v2276_v45, %v1472_v40  ;;  %v2196_v47 = vpop.f32.mrb[6].mxu0  ;;  %v2278_v48 = vpop.f32.mrb[14].mxu1  ;;  %v5362_v39 = vld [vmem:[#allocation7 + $0x34c] ss:$16 sps:$4 sm:$0xff]   ;;  %v5357_v40 = vld [vmem:[#allocation7 + $0x340] ss:$16 sps:$4 sm:$0xff]   ;;  %v1468_v45 = vrot.slane %v6042_v38, %v6018_v29 }
 0x3b8   :  { %v2197_v49 = vpop.f32.mrb[7].mxu0  ;;  %v2279_v50 = vpop.f32.mrb[15].mxu1  ;;  %5569 = vtanh.f32 %v4738_v42  ;;  %v5365_v42 = vld [vmem:[#allocation7 + $0x364] ss:$16 sps:$4 sm:$0xff]   ;;  %v5368_v44 = vld [vmem:[#allocation7 + $0x36c] ss:$16 sps:$4 sm:$0xff]  }
 0x3b9   :  { %5571 = vtanh.f32 %v4739_v43  ;;  %v5363_v43 = vld [vmem:[#allocation7 + $0x360] ss:$16 sps:$4 sm:$0xff]   ;;  %v5371_v47 = vld [vmem:[#allocation7 + $0x384] ss:$16 sps:$4 sm:$0xff]   ;;  %v5374_v48 = vld [vmem:[#allocation7 + $0x38c] ss:$16 sps:$4 sm:$0xff]   ;;  %v4740_v49 = vadd.f32 %v6050_v22, %v1468_v45 }
 0x3ba   :  { %5573 = vtanh.f32 %v4741_v46  ;;  %v5366_v46 = vld [vmem:[#allocation7 + $0x368] ss:$16 sps:$4 sm:$0xff]   ;;  %v5369_v50 = vld [vmem:[#allocation7 + $0x380] ss:$16 sps:$4 sm:$0xff]   ;;  %v5497_v45 = vld [vmem:[#allocation10 + $0x24] ss:$8 sps:$4 sm:$0xff]  }
 0x3bb   :  { %5575 = vtanh.f32 %v4740_v49  ;;  %v5375_v38 = vld [vmem:[#allocation7 + $0x3a0] ss:$16 sps:$4 sm:$0xff]  }
 0x3bc   :  { %v5381_v22 = vld [vmem:[#allocation7 + $0x3c0] ss:$16 sps:$4 sm:$0xff]  }
 0x3bd   :  { %v5501_v49 = vld [vmem:[#allocation10 + $0x40] ss:$8 sps:$4 sm:$0xff]  }
 0x3c2   :  { %v5570_v51 = vpop.eup %5569 }
 0x3c3   :  { %v5572_v52 = vpop.eup %5571  ;;  %v2285_v57 = vpack.c.bf16 %v5570_v51, %v5570_v51  ;;  %v5372_v51 = vld [vmem:[#allocation7 + $0x388] ss:$16 sps:$4 sm:$0xff]  }
 0x3c4   :  { %v5574_v53 = vpop.eup %5573  ;;  %v2286_v54 = vpack.c.bf16 %v5572_v52, %v5572_v52  ;;  %v5377_v52 = vld [vmem:[#allocation7 + $0x3a4] ss:$16 sps:$4 sm:$0xff]  }
 0x3c5   :  { %v2288_v61 = vpack.c.bf16 %v5574_v53, %v5574_v53  ;;  %v5380_v53 = vld [vmem:[#allocation7 + $0x3ac] ss:$16 sps:$4 sm:$0xff]  }
 0x3c6   :  { %3111 = vmatprep.mubr.bf16.mxu0 %v2286_v54  ;;  %3193 = vmatprep.mubr.bf16.mxu1 %v2286_v54  ;;  %v5378_v54 = vld [vmem:[#allocation7 + $0x3a8] ss:$16 sps:$4 sm:$0xff]  }
 0x3c7   :  { %3112 = vmatmul.mubr.bf16.vlgmr.msra.gmra.mrb[8].mxu0 %v2285_v57  ;;  %3194 = vmatmul.mubr.bf16.vlgmr.msra.gmra.mrb[16].mxu1 %v2285_v57  ;;  %v5384_v57 = vld [vmem:[#allocation7 + $0x3c8] ss:$16 sps:$4 sm:$0xff]  }
 0x3c8   :  { %3121 = vmatpush1.bf16.msra.mxu0 %v5297_v55  ;;  %3203 = vmatpush1.bf16.msra.mxu1 %v5300_v56  ;;  %v5383_v55 = vld [vmem:[#allocation7 + $0x3c4] ss:$16 sps:$4 sm:$0xff]   ;;  %v5386_v56 = vld [vmem:[#allocation7 + $0x3cc] ss:$16 sps:$4 sm:$0xff]  }
 0x3c9   :  { %3152 = vmatprep.mubr.bf16.mxu0 %v2288_v61  ;;  %3234 = vmatprep.mubr.bf16.mxu1 %v2288_v61  ;;  %v5387_v61 = vld [vmem:[#allocation7 + $0x3e0] ss:$16 sps:$4 sm:$0xff]  }
 0x3ca   :  { %3122 = vmatprep.subr.bf16.mxu0 %v5305_v58  ;;  %3204 = vmatprep.subr.bf16.mxu1 %v5308_v59  ;;  %v5389_v58 = vld [vmem:[#allocation7 + $0x3e4] ss:$16 sps:$4 sm:$0xff]   ;;  %v5392_v59 = vld [vmem:[#allocation7 + $0x3ec] ss:$16 sps:$4 sm:$0xff]  }
 0x3cc   :  { %3123 = vmatpush1.bf16.msra.mxu0 %v5303_v62  ;;  %3205 = vmatpush1.bf16.msra.mxu1 %v5306_v63  ;;  %v5390_v62 = vld [vmem:[#allocation7 + $0x3e8] ss:$16 sps:$4 sm:$0xff]   ;;  %v5395_v63 = vld [vmem:[#allocation9 + $0x4] ss:$8 sps:$4 sm:$0xff]  }
 0x3cd   :  { %3124 = vmatprep.subr.bf16.mxu0 %v5311_v0  ;;  %3206 = vmatprep.subr.bf16.mxu1 %v5314_v2  ;;  %v5576_v0 = vpop.eup %5575  ;;  %v5393_v2 = vld [vmem:[#allocation9] ss:$8 sps:$4 sm:$0xff]  }
 0x3d0   :  { %3125 = vmatpush1.bf16.msra.mxu0 %v5309_v3  ;;  %3207 = vmatpush1.bf16.msra.mxu1 %v5312_v4  ;;  %v2287_v3 = vpack.c.bf16 %v5576_v0, %v5576_v0  ;;  %v5398_v4 = vld [vmem:[#allocation9 + $0x14] ss:$8 sps:$4 sm:$0xff]  }
 0x3d1   :  { %3126 = vmatprep.subr.bf16.mxu0 %v5317_v5  ;;  %3208 = vmatprep.subr.bf16.mxu1 %v5320_v6  ;;  %v5396_v5 = vld [vmem:[#allocation9 + $0x10] ss:$8 sps:$4 sm:$0xff]   ;;  %v5401_v6 = vld [vmem:[#allocation9 + $0x24] ss:$8 sps:$4 sm:$0xff]  }
 0x3d4   :  { %3127 = vmatpush1.bf16.msra.mxu0 %v5315_v7  ;;  %3209 = vmatpush1.bf16.msra.mxu1 %v5318_v8  ;;  %v5399_v7 = vld [vmem:[#allocation9 + $0x20] ss:$8 sps:$4 sm:$0xff]   ;;  %v5404_v8 = vld [vmem:[#allocation9 + $0x34] ss:$8 sps:$4 sm:$0xff]  }
 0x3d5   :  { %3128 = vmatprep.subr.bf16.mxu0 %v5323_v9  ;;  %3210 = vmatprep.subr.bf16.mxu1 %v5326_v10  ;;  %v5402_v9 = vld [vmem:[#allocation9 + $0x30] ss:$8 sps:$4 sm:$0xff]   ;;  %v5407_v10 = vld [vmem:[#allocation9 + $0x44] ss:$8 sps:$4 sm:$0xff]  }
 0x3d8   :  { %3129 = vmatpush1.bf16.msra.mxu0 %v5321_v11  ;;  %3211 = vmatpush1.bf16.msra.mxu1 %v5324_v12  ;;  %v5405_v11 = vld [vmem:[#allocation9 + $0x40] ss:$8 sps:$4 sm:$0xff]   ;;  %v5410_v12 = vld [vmem:[#allocation9 + $0x54] ss:$8 sps:$4 sm:$0xff]  }
 0x3d9   :  { %3130 = vmatprep.subr.bf16.mxu0 %v5329_v13  ;;  %3212 = vmatprep.subr.bf16.mxu1 %v5332_v60  ;;  %v5408_v13 = vld [vmem:[#allocation9 + $0x50] ss:$8 sps:$4 sm:$0xff]   ;;  %v5413_v60 = vld [vmem:[#allocation9 + $0x64] ss:$8 sps:$4 sm:$0xff]  }
 0x3dc   :  { %3131 = vmatpush1.bf16.msra.mxu0 %v5327_v14  ;;  %3213 = vmatpush1.bf16.msra.mxu1 %v5330_v15  ;;  %v5411_v14 = vld [vmem:[#allocation9 + $0x60] ss:$8 sps:$4 sm:$0xff]   ;;  %v5416_v15 = vld [vmem:[#allocation9 + $0x74] ss:$8 sps:$4 sm:$0xff]  }
 0x3dd   :  { %3132 = vmatprep.subr.bf16.mxu0 %v5335_v16  ;;  %3214 = vmatprep.subr.bf16.mxu1 %v5338_v1  ;;  %v5414_v16 = vld [vmem:[#allocation9 + $0x70] ss:$8 sps:$4 sm:$0xff]   ;;  %v5419_v1 = vld [vmem:[#allocation9 + $0x84] ss:$8 sps:$4 sm:$0xff]  }
 0x3e0   :  { %3133 = vmatpush1.bf16.msra.mxu0 %v5333_v17  ;;  %3215 = vmatpush1.bf16.msra.mxu1 %v5336_v18  ;;  %v5417_v17 = vld [vmem:[#allocation9 + $0x80] ss:$8 sps:$4 sm:$0xff]   ;;  %v5422_v18 = vld [vmem:[#allocation9 + $0x94] ss:$8 sps:$4 sm:$0xff]  }
 0x3e1   :  { %3134 = vmatprep.subr.bf16.mxu0 %v5341_v19  ;;  %3216 = vmatprep.subr.bf16.mxu1 %v5344_v25  ;;  %v5420_v19 = vld [vmem:[#allocation9 + $0x90] ss:$8 sps:$4 sm:$0xff]   ;;  %v5425_v25 = vld [vmem:[#allocation9 + $0xa4] ss:$8 sps:$4 sm:$0xff]  }
 0x3e4   :  { %3135 = vmatpush1.bf16.msra.mxu0 %v5339_v26  ;;  %3217 = vmatpush1.bf16.msra.mxu1 %v5342_v27  ;;  %v5423_v26 = vld [vmem:[#allocation9 + $0xa0] ss:$8 sps:$4 sm:$0xff]   ;;  %v5428_v27 = vld [vmem:[#allocation9 + $0xb4] ss:$8 sps:$4 sm:$0xff]  }
 0x3e5   :  { %3136 = vmatprep.subr.bf16.mxu0 %v5347_v28  ;;  %3218 = vmatprep.subr.bf16.mxu1 %v5350_v30  ;;  %v5426_v28 = vld [vmem:[#allocation9 + $0xb0] ss:$8 sps:$4 sm:$0xff]   ;;  %v5431_v30 = vld [vmem:[#allocation9 + $0xc4] ss:$8 sps:$4 sm:$0xff]  }
 0x3e8   :  { %3137 = vmatpush1.bf16.msra.mxu0 %v5345_v31  ;;  %3219 = vmatpush1.bf16.msra.mxu1 %v5348_v32  ;;  %v5429_v31 = vld [vmem:[#allocation9 + $0xc0] ss:$8 sps:$4 sm:$0xff]   ;;  %v5434_v32 = vld [vmem:[#allocation9 + $0xd4] ss:$8 sps:$4 sm:$0xff]  }
 0x3e9   :  { %3138 = vmatprep.subr.bf16.mxu0 %v5353_v34  ;;  %3220 = vmatprep.subr.bf16.mxu1 %v5356_v35  ;;  %v5432_v34 = vld [vmem:[#allocation9 + $0xd0] ss:$8 sps:$4 sm:$0xff]   ;;  %v5437_v35 = vld [vmem:[#allocation9 + $0xe4] ss:$8 sps:$4 sm:$0xff]  }
 0x3ec   :  { %3139 = vmatpush1.bf16.msra.mxu0 %v5351_v36  ;;  %3221 = vmatpush1.bf16.msra.mxu1 %v5354_v37  ;;  %v5435_v36 = vld [vmem:[#allocation9 + $0xe0] ss:$8 sps:$4 sm:$0xff]   ;;  %v5440_v37 = vld [vmem:[#allocation9 + $0xf4] ss:$8 sps:$4 sm:$0xff]  }
 0x3ed   :  { %3140 = vmatprep.subr.bf16.mxu0 %v5359_v21  ;;  %3222 = vmatprep.subr.bf16.mxu1 %v5362_v39  ;;  %v5438_v21 = vld [vmem:[#allocation9 + $0xf0] ss:$8 sps:$4 sm:$0xff]   ;;  %v5443_v39 = vld [vmem:[#allocation9 + $0x104] ss:$8 sps:$4 sm:$0xff]  }
 0x3f0   :  { %3141 = vmatpush1.bf16.msra.mxu0 %v5357_v40  ;;  %3223 = vmatpush1.bf16.msra.mxu1 %v5360_v41  ;;  %v5489_v40 = vld [vmem:[#allocation10] ss:$8 sps:$4 sm:$0xff]   ;;  %v5491_v41 = vld [vmem:[#allocation10 + $0x4] ss:$8 sps:$4 sm:$0xff]  }
 0x3f1   :  { %3142 = vmatprep.subr.bf16.mxu0 %v5365_v42  ;;  %3224 = vmatprep.subr.bf16.mxu1 %v5368_v44  ;;  %v5494_v42 = vld [vmem:[#allocation10 + $0x14] ss:$8 sps:$4 sm:$0xff]   ;;  %v5492_v44 = vld [vmem:[#allocation10 + $0x10] ss:$8 sps:$4 sm:$0xff]  }
 0x3f4   :  { %3143 = vmatpush1.bf16.msra.mxu0 %v5363_v43  ;;  %3225 = vmatpush1.bf16.msra.mxu1 %v5366_v46  ;;  %v5495_v43 = vld [vmem:[#allocation10 + $0x20] ss:$8 sps:$4 sm:$0xff]   ;;  %v5500_v46 = vld [vmem:[#allocation10 + $0x34] ss:$8 sps:$4 sm:$0xff]  }
 0x3f5   :  { %3144 = vmatprep.subr.bf16.mxu0 %v5371_v47  ;;  %3226 = vmatprep.subr.bf16.mxu1 %v5374_v48  ;;  %v5498_v47 = vld [vmem:[#allocation10 + $0x30] ss:$8 sps:$4 sm:$0xff]   ;;  %v5503_v48 = vld [vmem:[#allocation10 + $0x44] ss:$8 sps:$4 sm:$0xff]  }
 0x3f8   :  { %3145 = vmatpush1.bf16.msra.mxu0 %v5369_v50  ;;  %3227 = vmatpush1.bf16.msra.mxu1 %v5372_v51  ;;  %v5506_v50 = vld [vmem:[#allocation10 + $0x54] ss:$8 sps:$4 sm:$0xff]   ;;  %v5504_v51 = vld [vmem:[#allocation10 + $0x50] ss:$8 sps:$4 sm:$0xff]  }
 0x3f9   :  { %3146 = vmatprep.subr.bf16.mxu0 %v5377_v52  ;;  %3228 = vmatprep.subr.bf16.mxu1 %v5380_v53  ;;  %v5509_v52 = vld [vmem:[#allocation10 + $0x64] ss:$8 sps:$4 sm:$0xff]   ;;  %v5507_v53 = vld [vmem:[#allocation10 + $0x60] ss:$8 sps:$4 sm:$0xff]  }
 0x3fc   :  { %3147 = vmatpush1.bf16.msra.mxu0 %v5375_v38  ;;  %3229 = vmatpush1.bf16.msra.mxu1 %v5378_v54  ;;  %v5512_v38 = vld [vmem:[#allocation10 + $0x74] ss:$8 sps:$4 sm:$0xff]   ;;  %v5510_v54 = vld [vmem:[#allocation10 + $0x70] ss:$8 sps:$4 sm:$0xff]  }
 0x3fd   :  { %3148 = vmatprep.subr.bf16.mxu0 %v5383_v55  ;;  %3230 = vmatprep.subr.bf16.mxu1 %v5386_v56  ;;  %v5515_v55 = vld [vmem:[#allocation10 + $0x84] ss:$8 sps:$4 sm:$0xff]   ;;  %v5513_v56 = vld [vmem:[#allocation10 + $0x80] ss:$8 sps:$4 sm:$0xff]  }
 0x400   :  { %3149 = vmatpush1.bf16.msra.mxu0 %v5381_v22  ;;  %3231 = vmatpush1.bf16.msra.mxu1 %v5384_v57  ;;  %v5518_v22 = vld [vmem:[#allocation10 + $0x94] ss:$8 sps:$4 sm:$0xff]   ;;  %v5516_v57 = vld [vmem:[#allocation10 + $0x90] ss:$8 sps:$4 sm:$0xff]  }
 0x401   :  { %3150 = vmatprep.subr.bf16.mxu0 %v5389_v58  ;;  %3232 = vmatprep.subr.bf16.mxu1 %v5392_v59  ;;  %v5521_v58 = vld [vmem:[#allocation10 + $0xa4] ss:$8 sps:$4 sm:$0xff]   ;;  %v6058_v59 = vld [vmem:[%s6103_s9] sm:$0xf] }
 0x402   :  { %v2426_v0 = vrot.slane %v6058_v59, %v6004_v24 }
 0x404   :  { %3151 = vmatpush1.bf16.msra.mxu0 %v5387_v61  ;;  %3233 = vmatpush1.bf16.msra.mxu1 %v5390_v62  ;;  %v5519_v61 = vld [vmem:[#allocation10 + $0xa0] ss:$8 sps:$4 sm:$0xff]   ;;  %v5524_v62 = vld [vmem:[#allocation10 + $0xb4] ss:$8 sps:$4 sm:$0xff]  }
 0x405   :  { %3647 = vmatprep.subr.bf16.mxu0 %v5395_v63  ;;  %3937 = vmatprep.subr.bf16.mxu1 %v5491_v41  ;;  %v2422_v63 = vrot.slane %v6058_v59, %v6001_v23  ;;  %v5465_v41 = vld [vmem:[#allocation9 + $0x180] ss:$8 sps:$4 sm:$0xff]  }
 0x407   :  { %3153 = vmatmul.mubr.bf16.vlgmr.msra.gmra.mrb[8].mxu0 %v2287_v3  ;;  %3235 = vmatmul.mubr.bf16.vlgmr.msra.gmra.mrb[16].mxu1 %v2287_v3  ;;  %v5522_v3 = vld [vmem:[#allocation10 + $0xb0] ss:$8 sps:$4 sm:$0xff]  }
 0x408   :  { %3648 = vmatpush1.bf16.msra.mxu0 %v5393_v2  ;;  %3938 = vmatpush1.bf16.msra.mxu1 %v5489_v40  ;;  %v2434_v2 = vrot.slane %v6058_v59, %v6011_v33  ;;  %v5467_v40 = vld [vmem:[#allocation9 + $0x184] ss:$8 sps:$4 sm:$0xff]  }
 0x409   :  { %3649 = vmatprep.subr.bf16.mxu0 %v5398_v4  ;;  %3939 = vmatprep.subr.bf16.mxu1 %v5494_v42  ;;  %v5470_v42 = vld [vmem:[#allocation9 + $0x194] ss:$8 sps:$4 sm:$0xff]  }
 0x40c   :  { %3650 = vmatpush1.bf16.msra.mxu0 %v5396_v5  ;;  %3940 = vmatpush1.bf16.msra.mxu1 %v5492_v44  ;;  %v5468_v44 = vld [vmem:[#allocation9 + $0x190] ss:$8 sps:$4 sm:$0xff]  }
 0x40d   :  { %3651 = vmatprep.subr.bf16.mxu0 %v5401_v6  ;;  %3941 = vmatprep.subr.bf16.mxu1 %v5497_v45  ;;  %v5473_v45 = vld [vmem:[#allocation9 + $0x1a4] ss:$8 sps:$4 sm:$0xff]  }
 0x410   :  { %3652 = vmatpush1.bf16.msra.mxu0 %v5399_v7  ;;  %3942 = vmatpush1.bf16.msra.mxu1 %v5495_v43  ;;  %v5471_v43 = vld [vmem:[#allocation9 + $0x1a0] ss:$8 sps:$4 sm:$0xff]  }
 0x411   :  { %3653 = vmatprep.subr.bf16.mxu0 %v5404_v8  ;;  %3943 = vmatprep.subr.bf16.mxu1 %v5500_v46  ;;  %v5476_v46 = vld [vmem:[#allocation9 + $0x1b4] ss:$8 sps:$4 sm:$0xff]  }
 0x414   :  { %3654 = vmatpush1.bf16.msra.mxu0 %v5402_v9  ;;  %3944 = vmatpush1.bf16.msra.mxu1 %v5498_v47  ;;  %v2430_v47 = vrot.slane %v6058_v59, %v6018_v29  ;;  %v5486_v29 = vld [vmem:[#allocation9 + $0x1f0] ss:$8 sps:$4 sm:$0xff]   ;;  %v5530_v59 = vld [vmem:[#allocation10 + $0xd4] ss:$8 sps:$4 sm:$0xff]  }
 0x415   :  { %3655 = vmatprep.subr.bf16.mxu0 %v5407_v10  ;;  %3945 = vmatprep.subr.bf16.mxu1 %v5503_v48  ;;  %v5474_v48 = vld [vmem:[#allocation9 + $0x1b0] ss:$8 sps:$4 sm:$0xff]  }
 0x418   :  { %3656 = vmatpush1.bf16.msra.mxu0 %v5405_v11  ;;  %3946 = vmatpush1.bf16.msra.mxu1 %v5501_v49  ;;  %v5479_v49 = vld [vmem:[#allocation9 + $0x1c4] ss:$8 sps:$4 sm:$0xff]  }
 0x419   :  { %3657 = vmatprep.subr.bf16.mxu0 %v5410_v12  ;;  %3947 = vmatprep.subr.bf16.mxu1 %v5506_v50 }
 0x41c   :  { %3658 = vmatpush1.bf16.msra.mxu0 %v5408_v13  ;;  %3948 = vmatpush1.bf16.msra.mxu1 %v5504_v51  ;;  %v5477_v51 = vld [vmem:[#allocation9 + $0x1c0] ss:$8 sps:$4 sm:$0xff]  }
 0x41d   :  { %3659 = vmatprep.subr.bf16.mxu0 %v5413_v60  ;;  %3949 = vmatprep.subr.bf16.mxu1 %v5509_v52  ;;  %v5482_v52 = vld [vmem:[#allocation9 + $0x1d4] ss:$8 sps:$4 sm:$0xff]  }
 0x420   :  { %3660 = vmatpush1.bf16.msra.mxu0 %v5411_v14  ;;  %3950 = vmatpush1.bf16.msra.mxu1 %v5507_v53  ;;  %v5480_v53 = vld [vmem:[#allocation9 + $0x1d0] ss:$8 sps:$4 sm:$0xff]  }
 0x421   :  { %3661 = vmatprep.subr.bf16.mxu0 %v5416_v15  ;;  %3951 = vmatprep.subr.bf16.mxu1 %v5512_v38  ;;  %v5485_v38 = vld [vmem:[#allocation9 + $0x1e4] ss:$8 sps:$4 sm:$0xff]  }
 0x424   :  { %3662 = vmatpush1.bf16.msra.mxu0 %v5414_v16  ;;  %3952 = vmatpush1.bf16.msra.mxu1 %v5510_v54  ;;  %v5483_v54 = vld [vmem:[#allocation9 + $0x1e0] ss:$8 sps:$4 sm:$0xff]  }
 0x425   :  { %3663 = vmatprep.subr.bf16.mxu0 %v5419_v1  ;;  %3953 = vmatprep.subr.bf16.mxu1 %v5515_v55  ;;  %v5441_v1 = vld [vmem:[#allocation9 + $0x100] ss:$8 sps:$4 sm:$0xff]   ;;  %v5488_v55 = vld [vmem:[#allocation9 + $0x1f4] ss:$8 sps:$4 sm:$0xff]  }
 0x428   :  { %3664 = vmatpush1.bf16.msra.mxu0 %v5417_v17  ;;  %3954 = vmatpush1.bf16.msra.mxu1 %v5513_v56 }
 0x429   :  { %3665 = vmatprep.subr.bf16.mxu0 %v5422_v18  ;;  %3955 = vmatprep.subr.bf16.mxu1 %v5518_v22  ;;  %v5446_v18 = vld [vmem:[#allocation9 + $0x114] ss:$8 sps:$4 sm:$0xff]  }
 0x42c   :  { %3666 = vmatpush1.bf16.msra.mxu0 %v5420_v19  ;;  %3956 = vmatpush1.bf16.msra.mxu1 %v5516_v57  ;;  %v5527_v57 = vld [vmem:[#allocation10 + $0xc4] ss:$8 sps:$4 sm:$0xff]  }
 0x42d   :  { %3667 = vmatprep.subr.bf16.mxu0 %v5425_v25  ;;  %3957 = vmatprep.subr.bf16.mxu1 %v5521_v58  ;;  %v5444_v25 = vld [vmem:[#allocation9 + $0x110] ss:$8 sps:$4 sm:$0xff]   ;;  %v5525_v58 = vld [vmem:[#allocation10 + $0xc0] ss:$8 sps:$4 sm:$0xff]  }
 0x430   :  { %3668 = vmatpush1.bf16.msra.mxu0 %v5423_v26  ;;  %3958 = vmatpush1.bf16.msra.mxu1 %v5519_v61  ;;  %v5449_v26 = vld [vmem:[#allocation9 + $0x124] ss:$8 sps:$4 sm:$0xff]   ;;  %v5528_v61 = vld [vmem:[#allocation10 + $0xd0] ss:$8 sps:$4 sm:$0xff]  }
 0x431   :  { %3669 = vmatprep.subr.bf16.mxu0 %v5428_v27  ;;  %3959 = vmatprep.subr.bf16.mxu1 %v5524_v62  ;;  %v5447_v27 = vld [vmem:[#allocation9 + $0x120] ss:$8 sps:$4 sm:$0xff]   ;;  %v5533_v62 = vld [vmem:[#allocation10 + $0xe4] ss:$8 sps:$4 sm:$0xff]  }
 0x434   :  { %3670 = vmatpush1.bf16.msra.mxu0 %v5426_v28  ;;  %3960 = vmatpush1.bf16.msra.mxu1 %v5522_v3  ;;  %v5452_v28 = vld [vmem:[#allocation9 + $0x134] ss:$8 sps:$4 sm:$0xff]   ;;  %v5537_v3 = vld [vmem:[#allocation12 + $0x40] sm:$0xff]  }
 0x435   :  { %3671 = vmatprep.subr.bf16.mxu0 %v5431_v30  ;;  %v5450_v30 = vld [vmem:[#allocation9 + $0x130] ss:$8 sps:$4 sm:$0xff]   ;;  %3961 = vmatprep.subr.bf16.mxu1 %v5527_v57 }
 0x438   :  { %3672 = vmatpush1.bf16.msra.mxu0 %v5429_v31  ;;  %v5455_v31 = vld [vmem:[#allocation9 + $0x144] ss:$8 sps:$4 sm:$0xff]   ;;  %3962 = vmatpush1.bf16.msra.mxu1 %v5525_v58 }
 0x439   :  { %3673 = vmatprep.subr.bf16.mxu0 %v5434_v32  ;;  %v5453_v32 = vld [vmem:[#allocation9 + $0x140] ss:$8 sps:$4 sm:$0xff]   ;;  %3963 = vmatprep.subr.bf16.mxu1 %v5530_v59 }
 0x43c   :  { %3674 = vmatpush1.bf16.msra.mxu0 %v5432_v34  ;;  %v5458_v34 = vld [vmem:[#allocation9 + $0x154] ss:$8 sps:$4 sm:$0xff]   ;;  %3964 = vmatpush1.bf16.msra.mxu1 %v5528_v61 }
 0x43d   :  { %3675 = vmatprep.subr.bf16.mxu0 %v5437_v35  ;;  %v5456_v35 = vld [vmem:[#allocation9 + $0x150] ss:$8 sps:$4 sm:$0xff]   ;;  %3965 = vmatprep.subr.bf16.mxu1 %v5533_v62 }
 0x440   :  { %3676 = vmatpush1.bf16.msra.mxu0 %v5435_v36  ;;  %v5461_v36 = vld [vmem:[#allocation9 + $0x164] ss:$8 sps:$4 sm:$0xff]  }
 0x441   :  { %3677 = vmatprep.subr.bf16.mxu0 %v5440_v37  ;;  %v5459_v37 = vld [vmem:[#allocation9 + $0x160] ss:$8 sps:$4 sm:$0xff]  }
 0x444   :  { %3678 = vmatpush1.bf16.msra.mxu0 %v5438_v21  ;;  %v5464_v21 = vld [vmem:[#allocation9 + $0x174] ss:$8 sps:$4 sm:$0xff]  }
 0x445   :  { %3688 = vmatprep.subr.bf16.mxu0 %v5443_v39  ;;  %v5462_v39 = vld [vmem:[#allocation9 + $0x170] ss:$8 sps:$4 sm:$0xff]  }
 0x4da   :  { %v3154_v4 = vpop.f32.mrb[8].mxu0  ;;  %v6066_v5 = vpop.f32.mrb[16].mxu1 }
 0x4db   :  { %v4742_v6 = vadd.f32 %v3154_v4, %v2422_v63  ;;  %v3156_v7 = vpop.f32.mrb[9].mxu0  ;;  %v3238_v8 = vpop.f32.mrb[17].mxu1  ;;  %v4744_v50 = vadd.f32 %v6066_v5, %v2430_v47  ;;  %v5531_v63 = vld [vmem:[#allocation10 + $0xe0] ss:$8 sps:$4 sm:$0xff]  }
 0x4dc   :  { %v4743_v9 = vadd.f32 %v3156_v7, %v2426_v0  ;;  %v4745_v10 = vadd.f32 %v3238_v8, %v2434_v2  ;;  %v3158_v11 = vpop.f32.mrb[10].mxu0  ;;  %v3240_v12 = vpop.f32.mrb[18].mxu1  ;;  %3966 = vmatpush1.bf16.msra.mxu1 %v5531_v63  ;;  %v5536_v0 = vld [vmem:[#allocation10 + $0xf4] ss:$8 sps:$4 sm:$0xff]   ;;  %v5534_v2 = vld [vmem:[#allocation10 + $0xf0] ss:$8 sps:$4 sm:$0xff]  }
 0x4dd   :  { %v3159_v13 = vpop.f32.mrb[11].mxu0  ;;  %v3241_v60 = vpop.f32.mrb[19].mxu1  ;;  %5577 = vtanh.f32 %v4742_v6  ;;  %3967 = vmatprep.subr.bf16.mxu1 %v5536_v0  ;;  %v3315_v4 = vld [vmem:[%s6104_s10] sm:$0x3] }
 0x4de   :  { %5579 = vtanh.f32 %v4743_v9  ;;  %v3320_v5 = vrot.slane %v3315_v4, %v6001_v23  ;;  %v3324_v6 = vrot.slane %v3315_v4, %v6004_v24 }
 0x4df   :  { %5581 = vtanh.f32 %v4745_v10 }
 0x4e0   :  { %5583 = vtanh.f32 %v4744_v50  ;;  %3968 = vmatpush1.bf16.msra.mxu1 %v5534_v2 }
 0x4e1   :  { %4712 = vmatprep.subr.bf16.mxu1 %v5537_v3  ;;  %v5773_v3 = vmov 0.0  }
 0x4e7   :  { %v5578_v33 = vpop.eup %5577 }
 0x4e8   :  { %v5580_v14 = vpop.eup %5579  ;;  %v3247_v17 = vpack.c.bf16 %v5578_v33, %v5578_v33 }
 0x4e9   :  { %v5582_v15 = vpop.eup %5581  ;;  %v3248_v16 = vpack.c.bf16 %v5580_v14, %v5580_v14  ;;  %v5538_v14 = vld [vmem:[#allocation12] sm:$0xff]  }
 0x4ea   :  { %v3250_v19 = vpack.c.bf16 %v5582_v15, %v5582_v15  ;;  %v5584_v56 = vpop.eup %5583 }
 0x4eb   :  { %3679 = vmatprep.mubr.bf16.mxu0 %v3248_v16  ;;  %v3249_v22 = vpack.c.bf16 %v5584_v56, %v5584_v56  ;;  %v5539_v16 = vld [vmem:[#allocation12 + $0x48] sm:$0xff]  }
 0x4ec   :  { %3680 = vmatmul.mubr.bf16.vlgmr.msra.gmra.mrb[12].mxu0 %v3247_v17  ;;  %v5541_v17 = vld [vmem:[#allocation12 + $0x50] sm:$0xff]  }
 0x4ed   :  { %3689 = vmatpush1.bf16.msra.mxu0 %v5441_v1  ;;  %3720 = vmatprep.mubr.bf16.mxu0 %v3250_v19  ;;  %v5540_v1 = vld [vmem:[#allocation12 + $0x8] sm:$0xff]   ;;  %v5543_v19 = vld [vmem:[#allocation12 + $0x58] sm:$0xff]  }
 0x4ee   :  { %3690 = vmatprep.subr.bf16.mxu0 %v5446_v18  ;;  %v5542_v18 = vld [vmem:[#allocation12 + $0x10] sm:$0xff]  }
 0x4f1   :  { %3691 = vmatpush1.bf16.msra.mxu0 %v5444_v25  ;;  %v5544_v25 = vld [vmem:[#allocation12 + $0x18] sm:$0xff]  }
 0x4f2   :  { %3692 = vmatprep.subr.bf16.mxu0 %v5449_v26  ;;  %v5545_v26 = vld [vmem:[#allocation12 + $0x60] sm:$0xff]  }
 0x4f5   :  { %3693 = vmatpush1.bf16.msra.mxu0 %v5447_v27  ;;  %v5546_v27 = vld [vmem:[#allocation12 + $0x20] sm:$0xff]  }
 0x4f6   :  { %3694 = vmatprep.subr.bf16.mxu0 %v5452_v28  ;;  %v5547_v28 = vld [vmem:[#allocation12 + $0x68] sm:$0xff]  }
 0x4f9   :  { %3695 = vmatpush1.bf16.msra.mxu0 %v5450_v30  ;;  %v5548_v30 = vld [vmem:[#allocation12 + $0x28] sm:$0xff]  }
 0x4fa   :  { %3696 = vmatprep.subr.bf16.mxu0 %v5455_v31  ;;  %v5549_v31 = vld [vmem:[#allocation12 + $0x70] sm:$0xff]  }
 0x4fd   :  { %3697 = vmatpush1.bf16.msra.mxu0 %v5453_v32  ;;  %v5550_v32 = vld [vmem:[#allocation12 + $0x30] sm:$0xff]  }
 0x4fe   :  { %3698 = vmatprep.subr.bf16.mxu0 %v5458_v34  ;;  %v5551_v34 = vld [vmem:[#allocation12 + $0x78] sm:$0xff]  }
 0x501   :  { %3699 = vmatpush1.bf16.msra.mxu0 %v5456_v35  ;;  %v5552_v35 = vld [vmem:[#allocation12 + $0x38] sm:$0xff]  }
 0x502   :  { %3700 = vmatprep.subr.bf16.mxu0 %v5461_v36  ;;  %v3765_v36 = vld [vmem:[%s6106_s12] sm:$0x3] }
 0x505   :  { %3701 = vmatpush1.bf16.msra.mxu0 %v5459_v37  ;;  %v3770_v37 = vrot.slane %v3765_v36, %v6001_v23  ;;  %v4157_v23 = vld [vmem:[%s6109_s15] sm:$0xf] }
 0x506   :  { %3702 = vmatprep.subr.bf16.mxu0 %v5464_v21  ;;  %v3774_v21 = vrot.slane %v3765_v36, %v6004_v24  ;;  %v4694_v24 = vld [vmem:[%s6108_s14] ss:$0 sm:$0xff] }
 0x509   :  { %3703 = vmatpush1.bf16.msra.mxu0 %v5462_v39 }
 0x50a   :  { %3704 = vmatprep.subr.bf16.mxu0 %v5467_v40 }
 0x50d   :  { %3705 = vmatpush1.bf16.msra.mxu0 %v5465_v41 }
 0x50e   :  { %3706 = vmatprep.subr.bf16.mxu0 %v5470_v42 }
 0x511   :  { %3707 = vmatpush1.bf16.msra.mxu0 %v5468_v44 }
 0x512   :  { %3708 = vmatprep.subr.bf16.mxu0 %v5473_v45 }
 0x515   :  { %3709 = vmatpush1.bf16.msra.mxu0 %v5471_v43 }
 0x516   :  { %3710 = vmatprep.subr.bf16.mxu0 %v5476_v46 }
 0x519   :  { %3711 = vmatpush1.bf16.msra.mxu0 %v5474_v48 }
 0x51a   :  { %3712 = vmatprep.subr.bf16.mxu0 %v5479_v49 }
 0x51d   :  { %3713 = vmatpush1.bf16.msra.mxu0 %v5477_v51  ;;  %v4161_v51 = vand.u32 127, %v171_v20 }
 0x51e   :  { %3714 = vmatprep.subr.bf16.mxu0 %v5482_v52 }
 0x51f   :  { %vm4162_vm1 = vcmp.lt.s32.totalorder %v4161_v51, 16  ;;  %vm4185_vm3 = vcmp.eq.s32.totalorder %v4161_v51, 17 }
 0x521   :  { %3715 = vmatpush1.bf16.msra.mxu0 %v5480_v53  ;;  %v4158_v53 = vunpack.c.l.bf16 %v4157_v23 }
 0x522   :  { %3716 = vmatprep.subr.bf16.mxu0 %v5485_v38 }
 0x525   :  { %3717 = vmatpush1.bf16.msra.mxu0 %v5483_v54 }
 0x526   :  { %3718 = vmatprep.subr.bf16.mxu0 %v5488_v55 }
 0x529   :  { %3719 = vmatpush1.bf16.msra.mxu0 %v5486_v29 }
 0x52c   :  { %3721 = vmatmul.mubr.bf16.vlgmr.msra.gmra.mrb[12].mxu0 %v3249_v22  ;;  %v4174_v22 = vld [vmem:[%s6110_s16] sm:$0xff] }
 0x52d   :  { %4176 = vperm.xlu1 %4791, %v4174_v22  }
 0x5ac   :  { %v4177_v62 = vpop.permute.xlu1 %4176 }
 0x5ad   :  { %vm4178_vm2 = vcmp.eq.s32.totalorder %v4161_v51, %v4177_v62 }
 0x5ae   :  { %v4711_v4 = vsel %vm4178_vm2, 1.0, %v5773_v3 }
 0x5ff   :  { %v3722_v7 = vpop.f32.mrb[12].mxu0 }
 0x600   :  { %v4746_v8 = vadd.f32 %v3722_v7, %v3320_v5  ;;  %v3724_v9 = vpop.f32.mrb[13].mxu0 }
 0x601   :  { %v4747_v10 = vadd.f32 %v3724_v9, %v3324_v6  ;;  %v3726_v11 = vpop.f32.mrb[14].mxu0 }
 0x602   :  { %5585 = vtanh.f32 %v4746_v8  ;;  %v3727_v12 = vpop.f32.mrb[15].mxu0 }
 0x603   :  { %5587 = vtanh.f32 %v4747_v10 }
 0x60c   :  { %v5586_v13 = vpop.eup %5585 }
 0x60d   :  { %v5588_v60 = vpop.eup %5587  ;;  %v3731_v15 = vpack.c.bf16 %v5586_v13, %v5586_v13 }
 0x60e   :  { %v3732_v33 = vpack.c.bf16 %v5588_v60, %v5588_v60 }
 0x610   :  { %3969 = vmatprep.mubr.bf16.mxu1 %v3732_v33 }
 0x611   :  { %3970 = vmatmul.mubr.bf16.vlgmr.msra.gmra.mrb[20].mxu1 %v3731_v15 }
 0x612   :  { %4713 = vmatpush3.bf16.msra.mxu1 %v5538_v14 }
 0x613   :  { %4714 = vmatprep.subr.bf16.mxu1 %v5539_v16 }
 0x616   :  { %4715 = vmatpush3.bf16.msra.mxu1 %v5540_v1 }
 0x617   :  { %4716 = vmatprep.subr.bf16.mxu1 %v5541_v17 }
 0x61a   :  { %4717 = vmatpush3.bf16.msra.mxu1 %v5542_v18 }
 0x61b   :  { %4718 = vmatprep.subr.bf16.mxu1 %v5543_v19 }
 0x61e   :  { %4719 = vmatpush3.bf16.msra.mxu1 %v5544_v25 }
 0x61f   :  { %4720 = vmatprep.subr.bf16.mxu1 %v5545_v26 }
 0x622   :  { %4721 = vmatpush3.bf16.msra.mxu1 %v5546_v27 }
 0x623   :  { %4722 = vmatprep.subr.bf16.mxu1 %v5547_v28 }
 0x626   :  { %4723 = vmatpush3.bf16.msra.mxu1 %v5548_v30 }
 0x627   :  { %4724 = vmatprep.subr.bf16.mxu1 %v5549_v31 }
 0x62a   :  { %4725 = vmatpush3.bf16.msra.mxu1 %v5550_v32 }
 0x62b   :  { %4726 = vmatprep.subr.bf16.mxu1 %v5551_v34 }
 0x62e   :  { %4727 = vmatpush3.bf16.msra.mxu1 %v5552_v35 }
 0x6e4   :  { %v3971_v39 = vpop.f32.mrb[20].mxu1 }
 0x6e5   :  { %v3972_v40 = vadd.f32 %v3971_v39, %v3770_v37  ;;  %v3973_v41 = vpop.f32.mrb[21].mxu1 }
 0x6e6   :  { %v3974_v42 = vadd.f32 %v3973_v41, %v3774_v21  ;;  %v3975_v44 = vpop.f32.mrb[22].mxu1 }
 0x6e7   :  { %5589 = vtanh.f32 %v3972_v40  ;;  %v3976_v45 = vpop.f32.mrb[23].mxu1 }
 0x6e8   :  { %5591 = vtanh.f32 %v3974_v42 }
 0x6f1   :  { %v5590_v43 = vpop.eup %5589 }
 0x6f2   :  { %v5592_v46 = vpop.eup %5591  ;;  %v3980_v48 = vpack.c.bf16 %v5590_v43, %v5590_v43 }
 0x6f3   :  { %v3981_v47 = vpack.c.bf16 %v5592_v46, %v5592_v46 }
 0x6f5   :  { %4149 = vmatprep.mubr.bf16.mxu1 %v3981_v47 }
 0x6f6   :  { %4150 = vmatmul.mubr.bf16.vlgmr.msra.gmra.mrb[24].mxu1 %v3980_v48 }
 0x7c9   :  { %v4728_v49 = vpop.f32.mrb[24].mxu1 }
 0x7ca   :  { %v4729_v50 = vpop.f32.mrb[25].mxu1 }
 0x7cb   :  { %v4730_v52 = vadd.f32 %v4729_v50, %v4728_v49  ;;  %v4731_v38 = vpop.f32.mrb[26].mxu1 }
 0x7cc   :  { %v4732_v54 = vpop.f32.mrb[27].mxu1 }
 0x7cd   :  { %v4152_v55 = vadd.f32 %v4730_v52, %v4694_v24 }
 0x7cf   :  { %v4159_v29 = vadd.f32 %v4158_v53, %v4152_v55 }
 0x7d1   :  { %v4163_v56 = vsel %vm4162_vm1, %v4159_v29, -1e+30 }
 0x7d2   :  { %4164 = vmax.xlane.f32.xlu0 %v4163_v56 }
 0x85f   :  { %v4165_v57 = vpop.xlane.xlu0 %4164 }
 0x860   :  { %v4166_v58 = vsub.f32 %v4163_v56, %v4165_v57 }
 0x862   :  { %v4167_v59 = vmul.f32 1.442695, %v4166_v58 }
 0x864   :  { %5593 = vpow2.f32 %v4167_v59 }
 0x86e   :  { %v5594_v61 = vpop.eup %5593 }
 0x86f   :  { %4169 = vadd.xlane.f32.xlu0 %v5594_v61 }
 0x8fc   :  { %v4170_v20 = vpop.xlane.xlu0 %4169 }
 0x8fd   :  { %5595 = vlog2.f32 %v4170_v20 }
 0x907   :  { %v5596_v63 = vpop.eup %5595 }
 0x908   :  { %v4172_v0 = vmul.f32 0.6931472, %v5596_v63 }
 0x90a   :  { %v4173_v2 = vadd.f32 %v4172_v0, %v4165_v57 }
 0x90c   :  { %v4181_v5 = vsub.f32 %v4159_v29, %v4173_v2 }
 0x90e   :  { %v4182_v6 = vmul.f32 %v4711_v4, %v4181_v5 }
 0x910   :  { %4183 = vadd.xlane.f32.xlu1 %v4182_v6 }
 0x99d   :  { %v4184_v7 = vpop.xlane.xlu1 %4183 }
 0x99e   :  { %v4186_v8 = vsel %vm4185_vm3, %v4184_v7, %v4159_v29 }
 0x99f   :  { %4187 = vst [vmem:[%s6111_s17] sm:$0xff] %v4186_v8 }
 0x9a0   :  { %4192 = vsyncpa [#allocation3], 1 }
 0x9a1   :  { %4193 = vsyncpa [#allocation5], 1 }
 0x9a2   :  { %4194 = vsyncpa [#allocation8], 1 }
 0x9a3   :  { %4195 = vsyncpa [#allocation11], 1 }

// kernel: actor_critic_forward.1
= control target key start
LH: loop header
LB: loop body
LE: loop exit
PB: predicated region body
PF: predicated region fallthrough
CT: control target
= control target key end

     0   :  { %s6094_s0 = inlined_call_operand.vmem [shape: bf16[8,64], index: 0, kind: input, shape index: {}]   ;;  %s6095_s1 = inlined_call_operand.hbm [shape: bf16[64,512], index: 1, kind: input, shape index: {}]   ;;  %s6096_s2 = inlined_call_operand.hbm [shape: bf16[512,512], index: 2, kind: input, shape index: {}]   ;;  %s6097_s3 = inlined_call_operand.hbm [shape: bf16[512,512], index: 3, kind: input, shape index: {}]   ;;  %s6098_s4 = inlined_call_operand.hbm [shape: bf16[512,512], index: 4, kind: input, shape index: {}]   ;;  %s6099_s5 = inlined_call_operand.hbm [shape: bf16[512,256], index: 5, kind: input, shape index: {}]   ;;  %s6100_s6 = inlined_call_operand.vmem [shape: f32[1,512], index: 6, kind: input, shape index: {}]   ;;  %s6101_s7 = inlined_call_operand.vmem [shape: f32[1,512], index: 7, kind: input, shape index: {}]   ;;  %s6102_s8 = inlined_call_operand.vmem [shape: f32[1,512], index: 8, kind: input, shape index: {}]   ;;  %s6103_s9 = inlined_call_operand.vmem [shape: f32[1,512], index: 9, kind: input, shape index: {}]   ;;  %s6104_s10 = inlined_call_operand.vmem [shape: f32[1,256], index: 10, kind: input, shape index: {}]   ;;  %s6105_s11 = inlined_call_operand.hbm [shape: bf16[256,256], index: 11, kind: input, shape index: {}]   ;;  %s6106_s12 = inlined_call_operand.vmem [shape: f32[1,256], index: 12, kind: input, shape index: {}]   ;;  %s6107_s13 = inlined_call_operand.hbm [shape: bf16[256,128], index: 13, kind: input, shape index: {}]   ;;  %s6108_s14 = inlined_call_operand.vmem [shape: f32[1,128], index: 14, kind: input, shape index: {}]   ;;  %s6109_s15 = inlined_call_operand.vmem [shape: bf16[8,128], index: 15, kind: input, shape index: {}]   ;;  %s6110_s16 = inlined_call_operand.vmem [shape: s32[8,1], index: 16, kind: input, shape index: {}]   ;;  %s6111_s17 = inlined_call_operand.vmem [shape: f32[8,128], index: 17, kind: output, shape index: {}]  }
   0x1   :  { %6114 = sst [smem:[#allocation17_spill]] %s6094_s0 }
   0x2   :  { %6115 = sst [smem:[#allocation18_spill]] %s6095_s1 }
   0x3   :  { %22 = vsyncpa [#allocation3], 0 }
   0x4   :  { %23 = vsyncpa [#allocation5], 0 }
   0x5   :  { %24 = vsyncpa [#allocation8], 0 }
   0x6   :  { %25 = vsyncpa [#allocation11], 0  ;;  %s5759_s24 = smov [#allocation4]   ;;  %s5760_s26 = smov [#allocation7]  }
   0x7   :  { %s45_s25 = sshll.u32 %s5759_s24, 4  ;;  %s69_s27 = sshll.u32 %s5760_s26, 4  ;;  %s46_s25 = int_to_ptr.vmem [resolvable:$true] %s45_s25  ;;  %s5864_s27 = int_to_ptr.vmem [resolvable:$true] %s69_s27 }
   0x8   :  { %s5597_s0 = scalar_lea.hbm %s6096_s2, 16384 }
   0x9   :  { %p5598_p0 = scmp.ne.s32.totalorder %s6096_s2, %s5597_s0  ;;  %p5601_p1 = scmp.lt.u32.totalorder %s5597_s0, %s6096_s2 }
   0xb   :  { %p5603_p2 = pnand %p5601_p1, %p5598_p0 }
   0xd   :  { %5606 = shalt.err (!%p5603_p2)
}
   0xe   :  { %s5607_s20 = scalar_lea.vmem %s46_s25, 16384  ;;  %p5612_p4 = scmp.lt.s32.totalorder %s46_s25, %s46_s25 }
   0xf   :  { %p5608_p3 = scmp.ne.s32.totalorder %s46_s25, %s5607_s20  ;;  %p5613_p5 = scmp.lt.s32.totalorder %s5607_s20, %s5607_s20 }
  0x11   :  { %p5614_p6 = por %p5613_p5, %p5612_p4 }
  0x13   :  { %p5615_p7 = pnand %p5614_p6, %p5608_p3 }
  0x15   :  { %5618 = shalt.err (!%p5615_p7)
}
  0x16   :  { %s5761_s21 = smov 256   ;;  %s5762_s22 = smov 16  }
  0x17   :  { %51 = dma.hbm_to_vmem [thread:$0]  %s6096_s2, 16384, %s46_s25, [#allocation5], %s5761_s21, %s5761_s21, %s5762_s22  }
  0x18   :  { %s5619_s29 = scalar_lea.hbm %s6098_s4, 16384 }
  0x19   :  { %p5620_p8 = scmp.ne.s32.totalorder %s6098_s4, %s5619_s29  ;;  %p5623_p9 = scmp.lt.u32.totalorder %s5619_s29, %s6098_s4 }
  0x1b   :  { %p5625_p10 = pnand %p5623_p9, %p5620_p8 }
  0x1d   :  { %5628 = shalt.err (!%p5625_p10)
}
  0x1e   :  { %s5629_s1 = scalar_lea.vmem %s5864_s27, 16384  ;;  %p5634_p12 = scmp.lt.s32.totalorder %s5864_s27, %s5864_s27 }
  0x1f   :  { %p5630_p11 = scmp.ne.s32.totalorder %s5864_s27, %s5629_s1  ;;  %p5635_p13 = scmp.lt.s32.totalorder %s5629_s1, %s5629_s1 }
  0x21   :  { %p5636_p0 = por %p5635_p13, %p5634_p12 }
  0x23   :  { %p5637_p1 = pnand %p5636_p0, %p5630_p11 }
  0x25   :  { %5640 = shalt.err (!%p5637_p1)
}
  0x26   :  { %75 = dma.hbm_to_vmem [thread:$0]  %s6098_s4, 16384, %s5864_s27, [#allocation8], %s5761_s21, %s5761_s21, %s5762_s22  }
  0x27   :  { %s5763_s20 = smov [#allocation10]   ;;  %s5764_s24 = smov [#allocation2]  }
  0x28   :  { %s103_s23 = sshll.u32 %s5763_s20, 4  ;;  %s33_s26 = sshll.u32 %s5764_s24, 4  ;;  %s104_s23 = int_to_ptr.vmem [resolvable:$true] %s103_s23  ;;  %s5901_s26 = int_to_ptr.vmem [resolvable:$true] %s33_s26 }
  0x29   :  { %s5641_s0 = scalar_lea.hbm %s6105_s11, 4096 }
  0x2a   :  { %p5642_p2 = scmp.ne.s32.totalorder %s6105_s11, %s5641_s0  ;;  %p5645_p3 = scmp.lt.u32.totalorder %s5641_s0, %s6105_s11 }
  0x2c   :  { %p5647_p4 = pnand %p5645_p3, %p5642_p2 }
  0x2e   :  { %5650 = shalt.err (!%p5647_p4)
}
  0x2f   :  { %s5651_s4 = scalar_lea.vmem %s104_s23, 4096  ;;  %p5656_p6 = scmp.lt.s32.totalorder %s104_s23, %s104_s23 }
  0x30   :  { %p5652_p5 = scmp.ne.s32.totalorder %s104_s23, %s5651_s4  ;;  %p5657_p7 = scmp.lt.s32.totalorder %s5651_s4, %s5651_s4 }
  0x32   :  { %p5658_p8 = por %p5657_p7, %p5656_p6 }
  0x34   :  { %p5659_p9 = pnand %p5658_p8, %p5652_p5 }
  0x36   :  { %5662 = shalt.err (!%p5659_p9)
}
  0x37   :  { %s6113_s27 = smov 128   ;;  %s5766_s2 = smov 8  }
  0x38   :  { %109 = dma.hbm_to_vmem [thread:$0]  %s6105_s11, 4096, %s104_s23, [#allocation11], %s6113_s27, %s6113_s27, %s5766_s2  }
  0x39   :  { %s6116_s29 = sld [smem:[#allocation18_spill]] }
  0x3f   :  { %s5663_s0 = scalar_lea.hbm %s6116_s29, 2048 }
  0x40   :  { %p5664_p10 = scmp.ne.s32.totalorder %s6116_s29, %s5663_s0  ;;  %p5667_p11 = scmp.lt.u32.totalorder %s5663_s0, %s6116_s29 }
  0x42   :  { %p5669_p12 = pnand %p5667_p11, %p5664_p10 }
  0x44   :  { %5672 = shalt.err (!%p5669_p12)
}
  0x45   :  { %s5673_s4 = scalar_lea.vmem %s5901_s26, 2048  ;;  %p5678_p0 = scmp.lt.s32.totalorder %s5901_s26, %s5901_s26 }
  0x46   :  { %p5674_p13 = scmp.ne.s32.totalorder %s5901_s26, %s5673_s4  ;;  %p5679_p1 = scmp.lt.s32.totalorder %s5673_s4, %s5673_s4 }
  0x48   :  { %p5680_p2 = por %p5679_p1, %p5678_p0 }
  0x4a   :  { %p5681_p3 = pnand %p5680_p2, %p5674_p13 }
  0x4c   :  { %5684 = shalt.err (!%p5681_p3)
}
  0x4d   :  { %39 = dma.hbm_to_vmem [thread:$0]  %s6116_s29, 2048, %s5901_s26, [#allocation3], %s5761_s21, %s5761_s21, %s5762_s22  }
  0x4e   :  { %s5767_s25 = smov [#allocation6]   ;;  %s5768_s24 = smov [#allocation9]  }
  0x4f   :  { %s57_s20 = sshll.u32 %s5767_s25, 4  ;;  %s81_s28 = sshll.u32 %s5768_s24, 4  ;;  %s58_s20 = int_to_ptr.vmem [resolvable:$true] %s57_s20  ;;  %s5938_s28 = int_to_ptr.vmem [resolvable:$true] %s81_s28 }
  0x50   :  { %s5685_s18 = scalar_lea.hbm %s6097_s3, 16384 }
  0x51   :  { %p5686_p4 = scmp.ne.s32.totalorder %s6097_s3, %s5685_s18  ;;  %p5689_p5 = scmp.lt.u32.totalorder %s5685_s18, %s6097_s3 }
  0x53   :  { %p5691_p6 = pnand %p5689_p5, %p5686_p4 }
  0x55   :  { %5694 = shalt.err (!%p5691_p6)
}
  0x56   :  { %s5695_s26 = scalar_lea.vmem %s58_s20, 16384  ;;  %p5700_p8 = scmp.lt.s32.totalorder %s58_s20, %s58_s20 }
  0x57   :  { %p5696_p7 = scmp.ne.s32.totalorder %s58_s20, %s5695_s26  ;;  %p5701_p9 = scmp.lt.s32.totalorder %s5695_s26, %s5695_s26 }
  0x59   :  { %p5702_p10 = por %p5701_p9, %p5700_p8 }
  0x5b   :  { %p5703_p11 = pnand %p5702_p10, %p5696_p7 }
  0x5d   :  { %5706 = shalt.err (!%p5703_p11)
}
  0x5e   :  { %63 = dma.hbm_to_vmem [thread:$0]  %s6097_s3, 16384, %s58_s20, [#allocation5], %s5761_s21, %s5761_s21, %s5762_s22  }
  0x5f   :  { %s5707_s27 = scalar_lea.hbm %s6099_s5, 8192 }
  0x60   :  { %p5708_p12 = scmp.ne.s32.totalorder %s6099_s5, %s5707_s27  ;;  %p5711_p13 = scmp.lt.u32.totalorder %s5707_s27, %s6099_s5 }
  0x62   :  { %p5713_p0 = pnand %p5711_p13, %p5708_p12 }
  0x64   :  { %5716 = shalt.err (!%p5713_p0)
}
  0x65   :  { %s5717_s19 = scalar_lea.vmem %s5938_s28, 8192  ;;  %p5722_p2 = scmp.lt.s32.totalorder %s5938_s28, %s5938_s28 }
  0x66   :  { %p5718_p1 = scmp.ne.s32.totalorder %s5938_s28, %s5717_s19  ;;  %p5723_p3 = scmp.lt.s32.totalorder %s5717_s19, %s5717_s19 }
  0x68   :  { %p5724_p4 = por %p5723_p3, %p5722_p2 }
  0x6a   :  { %p5725_p5 = pnand %p5724_p4, %p5718_p1 }
  0x6c   :  { %5728 = shalt.err (!%p5725_p5)
}
  0x6d   :  { %s6117_s3 = smov 128   ;;  %s5769_s20 = smov [#allocation12]  }
  0x6e   :  { %87 = dma.hbm_to_vmem [thread:$0]  %s6099_s5, 8192, %s5938_s28, [#allocation8], %s6117_s3, %s6117_s3, %s5766_s2  }
  0x6f   :  { %s117_s1 = sshll.u32 %s5769_s20, 4  ;;  %s5729_s29 = scalar_lea.hbm %s6107_s13, 2048  ;;  %s118_s1 = int_to_ptr.vmem [resolvable:$true] %s117_s1 }
  0x70   :  { %p5730_p6 = scmp.ne.s32.totalorder %s6107_s13, %s5729_s29  ;;  %p5733_p7 = scmp.lt.u32.totalorder %s5729_s29, %s6107_s13 }
  0x72   :  { %p5735_p8 = pnand %p5733_p7, %p5730_p6 }
  0x74   :  { %5738 = shalt.err (!%p5735_p8)
}
  0x75   :  { %s5739_s24 = scalar_lea.vmem %s118_s1, 2048  ;;  %p5744_p10 = scmp.lt.s32.totalorder %s118_s1, %s118_s1 }
  0x76   :  { %p5740_p9 = scmp.ne.s32.totalorder %s118_s1, %s5739_s24  ;;  %p5745_p11 = scmp.lt.s32.totalorder %s5739_s24, %s5739_s24 }
  0x78   :  { %p5746_p12 = por %p5745_p11, %p5744_p10 }
  0x7a   :  { %p5747_p13 = pnand %p5746_p12, %p5740_p9 }
  0x7c   :  { %5750 = shalt.err (!%p5747_p13)
}
  0x7d   :  { %s5770_s5 = smov 64   ;;  %s5771_s2 = smov 4  }
  0x7e   :  { %123 = dma.hbm_to_vmem [thread:$0]  %s6107_s13, 2048, %s118_s1, [#allocation11], %s5770_s5, %s5770_s5, %s5771_s2  }
  0x7f   :  { %5751 = dma.done.wait [#allocation3], 2048  }
  0x80   :  { %5752 = vsyncadd [#allocation3], 4294965248 }
  0x81   :  { %5753 = dma.done.wait [#allocation5], 32768  }
  0x82   :  { %5754 = vsyncadd [#allocation5], 4294934528 }
  0x83   :  { %5755 = dma.done.wait [#allocation8], 24576  }
  0x84   :  { %5756 = vsyncadd [#allocation8], 4294942720 }
  0x85   :  { %5757 = dma.done.wait [#allocation11], 6144  }
  0x86   :  { %5758 = vsyncadd [#allocation11], 4294961152  ;;  %v5772_v0 = vmov 0   ;;  %v4793_v1 = vld [vmem:[#allocation2 + $0x4] ss:$16 sps:$4 sm:$0xff]   ;;  %s6118_s18 = sld [smem:[#allocation17_spill]] }
  0x87   :  { %307 = vmatprep.mubr.bf16.mxu1 %v5772_v0  ;;  %4791 = vset.pattern.permute.xlu1 %v5772_v0  ;;  %v4795_v2 = vld [vmem:[#allocation2] ss:$16 sps:$4 sm:$0xff]   ;;  %v4796_v3 = vld [vmem:[#allocation2 + $0x24] ss:$16 sps:$4 sm:$0xff]   ;;  %v4807_v10 = vld [vmem:[#allocation2 + $0xc] ss:$16 sps:$4 sm:$0xff]  }
  0x88   :  { %4792 = vset.pattern.permute.xlu0 %v5772_v0  ;;  %275 = vmatprep.subr.bf16.mxu1 %v4793_v1  ;;  %v4798_v4 = vld [vmem:[#allocation2 + $0x20] ss:$16 sps:$4 sm:$0xff]   ;;  %v4799_v5 = vld [vmem:[#allocation2 + $0x44] ss:$16 sps:$4 sm:$0xff]   ;;  %vm271_vm0 = vcmask 523264  }
  0x89   :  { %276 = vmatpush1.bf16.msra.mxu1 %v4795_v2  ;;  %v4801_v6 = vld [vmem:[#allocation2 + $0x40] ss:$16 sps:$4 sm:$0xff]   ;;  %v4802_v7 = vld [vmem:[#allocation2 + $0x64] ss:$16 sps:$4 sm:$0xff]   ;;  %v4805_v14 = vld [vmem:[#allocation2 + $0x8] ss:$16 sps:$4 sm:$0xff]  }
  0x8a   :  { %277 = vmatprep.subr.bf16.mxu1 %v4796_v3  ;;  %v4804_v8 = vld [vmem:[#allocation2 + $0x60] ss:$16 sps:$4 sm:$0xff]   ;;  %v4817_v9 = vld [vmem:[#allocation4 + $0x4] ss:$16 sps:$4 sm:$0xff]   ;;  %v4810_v15 = vld [vmem:[#allocation2 + $0x2c] ss:$16 sps:$4 sm:$0xff]  }
  0x8b   :  { %1155 = vmatprep.subr.bf16.mxu0 %v4817_v9  ;;  %v4822_v12 = vld [vmem:[#allocation4] ss:$16 sps:$4 sm:$0xff]   ;;  %v4823_v13 = vld [vmem:[#allocation4 + $0x24] ss:$16 sps:$4 sm:$0xff]   ;;  %v4808_v18 = vld [vmem:[#allocation2 + $0x28] ss:$16 sps:$4 sm:$0xff]  }
  0x8c   :  { %v152_v11 = vld [vmem:[%s6118_s18] sm:$0xf]  ;;  %1156 = vmatpush1.bf16.msra.mxu0 %v4822_v12  ;;  %v4829_v17 = vld [vmem:[#allocation4 + $0x44] ss:$16 sps:$4 sm:$0xff]   ;;  %v4813_v19 = vld [vmem:[#allocation2 + $0x4c] ss:$16 sps:$4 sm:$0xff]  }
  0x8d   :  { %278 = vmatpush1.bf16.msra.mxu1 %v4798_v4  ;;  %1157 = vmatprep.subr.bf16.mxu0 %v4823_v13  ;;  %v4828_v16 = vld [vmem:[#allocation4 + $0x20] ss:$16 sps:$4 sm:$0xff]   ;;  %v4835_v21 = vld [vmem:[#allocation4 + $0x64] ss:$16 sps:$4 sm:$0xff]   ;;  %v4811_v22 = vld [vmem:[#allocation2 + $0x48] ss:$16 sps:$4 sm:$0xff]  }
  0x8e   :  { %279 = vmatprep.subr.bf16.mxu1 %v4799_v5  ;;  %v4834_v20 = vld [vmem:[#allocation4 + $0x40] ss:$16 sps:$4 sm:$0xff]   ;;  %v4816_v23 = vld [vmem:[#allocation2 + $0x6c] ss:$16 sps:$4 sm:$0xff]   ;;  %v4841_v25 = vld [vmem:[#allocation4 + $0x84] ss:$16 sps:$4 sm:$0xff]  }
  0x8f   :  { %v4840_v24 = vld [vmem:[#allocation4 + $0x60] ss:$16 sps:$4 sm:$0xff]   ;;  %v4814_v26 = vld [vmem:[#allocation2 + $0x68] ss:$16 sps:$4 sm:$0xff]   ;;  %v4821_v27 = vld [vmem:[#allocation4 + $0xc] ss:$16 sps:$4 sm:$0xff]  }
  0x90   :  { %1158 = vmatpush1.bf16.msra.mxu0 %v4828_v16  ;;  %v4846_v28 = vld [vmem:[#allocation4 + $0x80] ss:$16 sps:$4 sm:$0xff]   ;;  %v4847_v29 = vld [vmem:[#allocation4 + $0xa4] ss:$16 sps:$4 sm:$0xff]   ;;  %v4819_v30 = vld [vmem:[#allocation4 + $0x8] ss:$16 sps:$4 sm:$0xff]  }
  0x91   :  { %280 = vmatpush1.bf16.msra.mxu1 %v4801_v6  ;;  %1159 = vmatprep.subr.bf16.mxu0 %v4829_v17  ;;  %v4827_v31 = vld [vmem:[#allocation4 + $0x2c] ss:$16 sps:$4 sm:$0xff]   ;;  %v4852_v32 = vld [vmem:[#allocation4 + $0xa0] ss:$16 sps:$4 sm:$0xff]   ;;  %v4853_v33 = vld [vmem:[#allocation4 + $0xc4] ss:$16 sps:$4 sm:$0xff]  }
  0x92   :  { %281 = vmatprep.subr.bf16.mxu1 %v4802_v7  ;;  %v4825_v34 = vld [vmem:[#allocation4 + $0x28] ss:$16 sps:$4 sm:$0xff]   ;;  %v4833_v35 = vld [vmem:[#allocation4 + $0x4c] ss:$16 sps:$4 sm:$0xff]   ;;  %v4858_v36 = vld [vmem:[#allocation4 + $0xc0] ss:$16 sps:$4 sm:$0xff]  }
  0x93   :  { %v4859_v37 = vld [vmem:[#allocation4 + $0xe4] ss:$16 sps:$4 sm:$0xff]   ;;  %v4831_v38 = vld [vmem:[#allocation4 + $0x48] ss:$16 sps:$4 sm:$0xff]   ;;  %v4839_v39 = vld [vmem:[#allocation4 + $0x6c] ss:$16 sps:$4 sm:$0xff]  }
  0x94   :  { %1160 = vmatpush1.bf16.msra.mxu0 %v4834_v20  ;;  %v4864_v40 = vld [vmem:[#allocation4 + $0xe0] ss:$16 sps:$4 sm:$0xff]   ;;  %v4865_v41 = vld [vmem:[#allocation4 + $0x104] ss:$16 sps:$4 sm:$0xff]   ;;  %v4837_v42 = vld [vmem:[#allocation4 + $0x68] ss:$16 sps:$4 sm:$0xff]   ;;  %v171_v20 = vlaneseq }
  0x95   :  { %282 = vmatpush1.bf16.msra.mxu1 %v4804_v8  ;;  %1161 = vmatprep.subr.bf16.mxu0 %v4835_v21  ;;  %v4845_v43 = vld [vmem:[#allocation4 + $0x8c] ss:$16 sps:$4 sm:$0xff]   ;;  %v4870_v44 = vld [vmem:[#allocation4 + $0x100] ss:$16 sps:$4 sm:$0xff]   ;;  %v4871_v45 = vld [vmem:[#allocation4 + $0x124] ss:$16 sps:$4 sm:$0xff]  }
  0x96   :  { %316 = vmatprep.subr.bf16.mxu1 %v4807_v10  ;;  %v4843_v46 = vld [vmem:[#allocation4 + $0x88] ss:$16 sps:$4 sm:$0xff]   ;;  %v4851_v47 = vld [vmem:[#allocation4 + $0xac] ss:$16 sps:$4 sm:$0xff]   ;;  %v4876_v48 = vld [vmem:[#allocation4 + $0x120] ss:$16 sps:$4 sm:$0xff]  }
  0x97   :  { %v4877_v49 = vld [vmem:[#allocation4 + $0x144] ss:$16 sps:$4 sm:$0xff]   ;;  %v4849_v50 = vld [vmem:[#allocation4 + $0xa8] ss:$16 sps:$4 sm:$0xff]   ;;  %v4857_v51 = vld [vmem:[#allocation4 + $0xcc] ss:$16 sps:$4 sm:$0xff]  }
  0x98   :  { %4212 = vmatmul.mubr.msk.bf16.vlgmr.msra.gmra.mrb[0].mxu1 %vm271_vm0, %v152_v11  ;;  %1162 = vmatpush1.bf16.msra.mxu0 %v4840_v24  ;;  %v4882_v52 = vld [vmem:[#allocation4 + $0x140] ss:$16 sps:$4 sm:$0xff]   ;;  %v4883_v53 = vld [vmem:[#allocation4 + $0x164] ss:$16 sps:$4 sm:$0xff]   ;;  %v4855_v54 = vld [vmem:[#allocation4 + $0xc8] ss:$16 sps:$4 sm:$0xff]  }
  0x99   :  { %317 = vmatpush1.bf16.msra.mxu1 %v4805_v14  ;;  %348 = vmatprep.mubr.bf16.mxu1 %v5772_v0  ;;  %v4863_v55 = vld [vmem:[#allocation4 + $0xec] ss:$16 sps:$4 sm:$0xff]   ;;  %v4888_v56 = vld [vmem:[#allocation4 + $0x160] ss:$16 sps:$4 sm:$0xff]   ;;  %v4861_v57 = vld [vmem:[#allocation4 + $0xe8] ss:$16 sps:$4 sm:$0xff]  }
  0x9a   :  { %318 = vmatprep.subr.bf16.mxu1 %v4810_v15  ;;  %1163 = vmatprep.subr.bf16.mxu0 %v4841_v25  ;;  %v4869_v58 = vld [vmem:[#allocation4 + $0x10c] ss:$16 sps:$4 sm:$0xff]   ;;  %v4867_v59 = vld [vmem:[#allocation4 + $0x108] ss:$16 sps:$4 sm:$0xff]   ;;  %v4889_v2 = vld [vmem:[#allocation4 + $0x184] ss:$16 sps:$4 sm:$0xff]  }
  0x9b   :  { %v4875_v60 = vld [vmem:[#allocation4 + $0x12c] ss:$16 sps:$4 sm:$0xff]   ;;  %v4873_v61 = vld [vmem:[#allocation4 + $0x128] ss:$16 sps:$4 sm:$0xff]   ;;  %v4894_v5 = vld [vmem:[#allocation4 + $0x180] ss:$16 sps:$4 sm:$0xff]  }
  0x9c   :  { %1164 = vmatpush1.bf16.msra.mxu0 %v4846_v28  ;;  %v4881_v62 = vld [vmem:[#allocation4 + $0x14c] ss:$16 sps:$4 sm:$0xff]   ;;  %v4879_v63 = vld [vmem:[#allocation4 + $0x148] ss:$16 sps:$4 sm:$0xff]   ;;  %v4895_v6 = vld [vmem:[#allocation4 + $0x1a4] ss:$16 sps:$4 sm:$0xff]  }
  0x9d   :  { %319 = vmatpush1.bf16.msra.mxu1 %v4808_v18  ;;  %1165 = vmatprep.subr.bf16.mxu0 %v4847_v29  ;;  %v4887_v0 = vld [vmem:[#allocation4 + $0x16c] ss:$16 sps:$4 sm:$0xff]   ;;  %v4885_v1 = vld [vmem:[#allocation4 + $0x168] ss:$16 sps:$4 sm:$0xff]   ;;  %v4900_v9 = vld [vmem:[#allocation4 + $0x1a0] ss:$16 sps:$4 sm:$0xff]  }
  0x9e   :  { %320 = vmatprep.subr.bf16.mxu1 %v4813_v19  ;;  %v4893_v3 = vld [vmem:[#allocation4 + $0x18c] ss:$16 sps:$4 sm:$0xff]   ;;  %v4891_v4 = vld [vmem:[#allocation4 + $0x188] ss:$16 sps:$4 sm:$0xff]   ;;  %v4901_v10 = vld [vmem:[#allocation4 + $0x1c4] ss:$16 sps:$4 sm:$0xff]  }
  0x9f   :  { %v4899_v7 = vld [vmem:[#allocation4 + $0x1ac] ss:$16 sps:$4 sm:$0xff]   ;;  %v4897_v8 = vld [vmem:[#allocation4 + $0x1a8] ss:$16 sps:$4 sm:$0xff]   ;;  %v4906_v13 = vld [vmem:[#allocation4 + $0x1c0] ss:$16 sps:$4 sm:$0xff]  }
  0xa0   :  { %1166 = vmatpush1.bf16.msra.mxu0 %v4852_v32  ;;  %v4903_v12 = vld [vmem:[#allocation4 + $0x1c8] ss:$16 sps:$4 sm:$0xff]   ;;  %v4907_v14 = vld [vmem:[#allocation4 + $0x1e4] ss:$16 sps:$4 sm:$0xff]   ;;  %v4911_v15 = vld [vmem:[#allocation4 + $0x1ec] ss:$16 sps:$4 sm:$0xff]  }
  0xa1   :  { %321 = vmatpush1.bf16.msra.mxu1 %v4811_v22  ;;  %1167 = vmatprep.subr.bf16.mxu0 %v4853_v33  ;;  %v4909_v16 = vld [vmem:[#allocation4 + $0x1e8] ss:$16 sps:$4 sm:$0xff]   ;;  %v4912_v17 = vld [vmem:[#allocation4 + $0x1e0] ss:$16 sps:$4 sm:$0xff]   ;;  %v4915_v18 = vld [vmem:[#allocation4 + $0x204] ss:$16 sps:$4 sm:$0xff]  }
  0xa2   :  { %322 = vmatprep.subr.bf16.mxu1 %v4816_v23  ;;  %v4918_v19 = vld [vmem:[#allocation4 + $0x20c] ss:$16 sps:$4 sm:$0xff]   ;;  %v5993_v21 = vshrl.u32 %v171_v20, 7  ;;  %v5998_v22 = vld [vmem:[%s6100_s6] sm:$0xf] }
  0xa4   :  { %1168 = vmatpush1.bf16.msra.mxu0 %v4858_v36  ;;  %v6001_v23 = vsub.s32 0, %v5993_v21  ;;  %v6004_v24 = vsub.s32 1, %v5993_v21  ;;  %v6011_v33 = vsub.s32 3, %v5993_v21 }
  0xa5   :  { %323 = vmatpush1.bf16.msra.mxu1 %v4814_v26  ;;  %1169 = vmatprep.subr.bf16.mxu0 %v4859_v37 }
  0xa6   :  { %1237 = vmatprep.subr.bf16.mxu1 %v4821_v27  ;;  %v174_v25 = vrot.slane %v5998_v22, %v6001_v23  ;;  %v178_v26 = vrot.slane %v5998_v22, %v6004_v24  ;;  %v186_v36 = vrot.slane %v5998_v22, %v6011_v33 }
  0xa8   :  { %4213 = vmatmul.mubr.msk.bf16.vlgmr.msra.gmra.mrb[4].mxu1 %vm271_vm0, %v152_v11  ;;  %1170 = vmatpush1.bf16.msra.mxu0 %v4864_v40  ;;  %v4905_v11 = vld [vmem:[#allocation4 + $0x1cc] ss:$16 sps:$4 sm:$0xff]  }
  0xa9   :  { %1238 = vmatpush1.bf16.msra.mxu1 %v4819_v30  ;;  %1171 = vmatprep.subr.bf16.mxu0 %v4865_v41  ;;  %v4921_v41 = vld [vmem:[#allocation4 + $0x224] ss:$16 sps:$4 sm:$0xff]  }
  0xaa   :  { %1239 = vmatprep.subr.bf16.mxu1 %v4827_v31 }
  0xac   :  { %1172 = vmatpush1.bf16.msra.mxu0 %v4870_v44 }
  0xad   :  { %1240 = vmatpush1.bf16.msra.mxu1 %v4825_v34  ;;  %1173 = vmatprep.subr.bf16.mxu0 %v4871_v45 }
  0xae   :  { %1241 = vmatprep.subr.bf16.mxu1 %v4833_v35 }
  0xb0   :  { %1174 = vmatpush1.bf16.msra.mxu0 %v4876_v48  ;;  %v4922_v48 = vld [vmem:[#allocation4 + $0x228] ss:$16 sps:$4 sm:$0xff]  }
  0xb1   :  { %1242 = vmatpush1.bf16.msra.mxu1 %v4831_v38  ;;  %1175 = vmatprep.subr.bf16.mxu0 %v4877_v49  ;;  %v4913_v38 = vld [vmem:[#allocation4 + $0x200] ss:$16 sps:$4 sm:$0xff]  }
  0xb2   :  { %1243 = vmatprep.subr.bf16.mxu1 %v4839_v39  ;;  %v4916_v39 = vld [vmem:[#allocation4 + $0x208] ss:$16 sps:$4 sm:$0xff]  }
  0xb4   :  { %1176 = vmatpush1.bf16.msra.mxu0 %v4882_v52  ;;  %v4925_v52 = vld [vmem:[#allocation4 + $0x240] ss:$16 sps:$4 sm:$0xff]  }
  0xb5   :  { %1244 = vmatpush1.bf16.msra.mxu1 %v4837_v42  ;;  %1177 = vmatprep.subr.bf16.mxu0 %v4883_v53  ;;  %v4924_v42 = vld [vmem:[#allocation4 + $0x22c] ss:$16 sps:$4 sm:$0xff]   ;;  %v4928_v53 = vld [vmem:[#allocation4 + $0x248] ss:$16 sps:$4 sm:$0xff]  }
  0xb6   :  { %1245 = vmatprep.subr.bf16.mxu1 %v4845_v43 }
  0xb8   :  { %1178 = vmatpush1.bf16.msra.mxu0 %v4888_v56  ;;  %v4931_v56 = vld [vmem:[#allocation4 + $0x260] ss:$16 sps:$4 sm:$0xff]  }
  0xb9   :  { %1246 = vmatpush1.bf16.msra.mxu1 %v4843_v46  ;;  %1179 = vmatprep.subr.bf16.mxu0 %v4889_v2  ;;  %v4943_v2 = vld [vmem:[#allocation4 + $0x2a0] ss:$16 sps:$4 sm:$0xff]  }
  0xba   :  { %1247 = vmatprep.subr.bf16.mxu1 %v4851_v47  ;;  %v4919_v47 = vld [vmem:[#allocation4 + $0x220] ss:$16 sps:$4 sm:$0xff]  }
  0xbc   :  { %1180 = vmatpush1.bf16.msra.mxu0 %v4894_v5  ;;  %v4954_v5 = vld [vmem:[#allocation4 + $0x2cc] ss:$16 sps:$4 sm:$0xff]  }
  0xbd   :  { %1248 = vmatpush1.bf16.msra.mxu1 %v4849_v50  ;;  %1181 = vmatprep.subr.bf16.mxu0 %v4895_v6  ;;  %v4927_v50 = vld [vmem:[#allocation4 + $0x244] ss:$16 sps:$4 sm:$0xff]   ;;  %v4949_v6 = vld [vmem:[#allocation4 + $0x2c0] ss:$16 sps:$4 sm:$0xff]  }
  0xbe   :  { %1249 = vmatprep.subr.bf16.mxu1 %v4857_v51  ;;  %v4930_v51 = vld [vmem:[#allocation4 + $0x24c] ss:$16 sps:$4 sm:$0xff]  }
  0xc0   :  { %1182 = vmatpush1.bf16.msra.mxu0 %v4900_v9  ;;  %v4960_v9 = vld [vmem:[#allocation4 + $0x2ec] ss:$16 sps:$4 sm:$0xff]  }
  0xc1   :  { %1250 = vmatpush1.bf16.msra.mxu1 %v4855_v54  ;;  %1183 = vmatprep.subr.bf16.mxu0 %v4901_v10  ;;  %v4933_v54 = vld [vmem:[#allocation4 + $0x264] ss:$16 sps:$4 sm:$0xff]   ;;  %v4955_v10 = vld [vmem:[#allocation4 + $0x2e0] ss:$16 sps:$4 sm:$0xff]  }
  0xc2   :  { %1251 = vmatprep.subr.bf16.mxu1 %v4863_v55  ;;  %v4936_v55 = vld [vmem:[#allocation4 + $0x26c] ss:$16 sps:$4 sm:$0xff]  }
  0xc4   :  { %1184 = vmatpush1.bf16.msra.mxu0 %v4906_v13  ;;  %v4966_v13 = vld [vmem:[#allocation4 + $0x30c] ss:$16 sps:$4 sm:$0xff]  }
  0xc5   :  { %1252 = vmatpush1.bf16.msra.mxu1 %v4861_v57  ;;  %1185 = vmatprep.subr.bf16.mxu0 %v4907_v14  ;;  %v4934_v57 = vld [vmem:[#allocation4 + $0x268] ss:$16 sps:$4 sm:$0xff]   ;;  %v4961_v14 = vld [vmem:[#allocation4 + $0x300] ss:$16 sps:$4 sm:$0xff]  }
  0xc6   :  { %1253 = vmatprep.subr.bf16.mxu1 %v4869_v58  ;;  %v4939_v58 = vld [vmem:[#allocation4 + $0x284] ss:$16 sps:$4 sm:$0xff]  }
  0xc8   :  { %1186 = vmatpush1.bf16.msra.mxu0 %v4912_v17  ;;  %v4972_v17 = vld [vmem:[#allocation4 + $0x32c] ss:$16 sps:$4 sm:$0xff]  }
  0xc9   :  { %1254 = vmatpush1.bf16.msra.mxu1 %v4867_v59  ;;  %1196 = vmatprep.subr.bf16.mxu0 %v4915_v18  ;;  %v4942_v59 = vld [vmem:[#allocation4 + $0x28c] ss:$16 sps:$4 sm:$0xff]   ;;  %v4967_v18 = vld [vmem:[#allocation4 + $0x320] ss:$16 sps:$4 sm:$0xff]  }
  0xca   :  { %1255 = vmatprep.subr.bf16.mxu1 %v4875_v60 }
  0xcd   :  { %1256 = vmatpush1.bf16.msra.mxu1 %v4873_v61  ;;  %v4937_v61 = vld [vmem:[#allocation4 + $0x280] ss:$16 sps:$4 sm:$0xff]  }
  0xce   :  { %1257 = vmatprep.subr.bf16.mxu1 %v4881_v62  ;;  %v4940_v62 = vld [vmem:[#allocation4 + $0x288] ss:$16 sps:$4 sm:$0xff]  }
  0xd1   :  { %1258 = vmatpush1.bf16.msra.mxu1 %v4879_v63 }
  0xd2   :  { %1259 = vmatprep.subr.bf16.mxu1 %v4887_v0  ;;  %v4945_v0 = vld [vmem:[#allocation4 + $0x2a4] ss:$16 sps:$4 sm:$0xff]  }
  0xd5   :  { %1260 = vmatpush1.bf16.msra.mxu1 %v4885_v1  ;;  %v4948_v1 = vld [vmem:[#allocation4 + $0x2ac] ss:$16 sps:$4 sm:$0xff]  }
  0xd6   :  { %1261 = vmatprep.subr.bf16.mxu1 %v4893_v3  ;;  %v4946_v3 = vld [vmem:[#allocation4 + $0x2a8] ss:$16 sps:$4 sm:$0xff]  }
  0xd9   :  { %1262 = vmatpush1.bf16.msra.mxu1 %v4891_v4  ;;  %v4951_v4 = vld [vmem:[#allocation4 + $0x2c4] ss:$16 sps:$4 sm:$0xff]  }
  0xda   :  { %1263 = vmatprep.subr.bf16.mxu1 %v4899_v7  ;;  %v4952_v7 = vld [vmem:[#allocation4 + $0x2c8] ss:$16 sps:$4 sm:$0xff]  }
  0xdd   :  { %1264 = vmatpush1.bf16.msra.mxu1 %v4897_v8  ;;  %v4957_v8 = vld [vmem:[#allocation4 + $0x2e4] ss:$16 sps:$4 sm:$0xff]  }
  0xde   :  { %1265 = vmatprep.subr.bf16.mxu1 %v4905_v11  ;;  %v4958_v11 = vld [vmem:[#allocation4 + $0x2e8] ss:$16 sps:$4 sm:$0xff]  }
  0xe1   :  { %1266 = vmatpush1.bf16.msra.mxu1 %v4903_v12  ;;  %v4963_v12 = vld [vmem:[#allocation4 + $0x304] ss:$16 sps:$4 sm:$0xff]  }
  0xe2   :  { %1267 = vmatprep.subr.bf16.mxu1 %v4911_v15  ;;  %v4964_v15 = vld [vmem:[#allocation4 + $0x308] ss:$16 sps:$4 sm:$0xff]  }
  0xe5   :  { %1268 = vmatpush1.bf16.msra.mxu1 %v4909_v16  ;;  %v4969_v16 = vld [vmem:[#allocation4 + $0x324] ss:$16 sps:$4 sm:$0xff]  }
  0xe6   :  { %1278 = vmatprep.subr.bf16.mxu1 %v4918_v19  ;;  %v4970_v19 = vld [vmem:[#allocation4 + $0x328] ss:$16 sps:$4 sm:$0xff]  }
 0x16b   :  { %v309_v27 = vpop.f32.mrb[0].mxu1 }
 0x16c   :  { %v310_v28 = vadd.f32 %v309_v27, %v174_v25  ;;  %v311_v29 = vpop.f32.mrb[1].mxu1  ;;  %v4975_v25 = vld [vmem:[#allocation4 + $0x344] ss:$16 sps:$4 sm:$0xff]   ;;  %v4973_v27 = vld [vmem:[#allocation4 + $0x340] ss:$16 sps:$4 sm:$0xff]  }
 0x16d   :  { %v312_v30 = vadd.f32 %v311_v29, %v178_v26  ;;  %v313_v31 = vpop.f32.mrb[2].mxu1  ;;  %v4978_v26 = vld [vmem:[#allocation4 + $0x34c] ss:$16 sps:$4 sm:$0xff]   ;;  %v6018_v29 = vsub.s32 2, %v5993_v21  ;;  %v4985_v21 = vld [vmem:[#allocation4 + $0x380] ss:$16 sps:$4 sm:$0xff]  }
 0x16e   :  { %5553 = vtanh.f32 %v310_v28  ;;  %v314_v32 = vpop.f32.mrb[3].mxu1  ;;  %v4976_v28 = vld [vmem:[#allocation4 + $0x348] ss:$16 sps:$4 sm:$0xff]   ;;  %v4984_v31 = vld [vmem:[#allocation4 + $0x36c] ss:$16 sps:$4 sm:$0xff]  }
 0x16f   :  { %5555 = vtanh.f32 %v312_v30  ;;  %v4981_v30 = vld [vmem:[#allocation4 + $0x364] ss:$16 sps:$4 sm:$0xff]   ;;  %v182_v32 = vrot.slane %v5998_v22, %v6018_v29  ;;  %v4991_v22 = vld [vmem:[#allocation4 + $0x3a0] ss:$16 sps:$4 sm:$0xff]  }
 0x178   :  { %v5554_v34 = vpop.eup %5553 }
 0x179   :  { %v5556_v35 = vpop.eup %5555  ;;  %v361_v40 = vpack.c.bf16 %v5554_v34, %v5554_v34  ;;  %v4979_v34 = vld [vmem:[#allocation4 + $0x360] ss:$16 sps:$4 sm:$0xff]  }
 0x17a   :  { %v362_v37 = vpack.c.bf16 %v5556_v35, %v5556_v35  ;;  %v4982_v35 = vld [vmem:[#allocation4 + $0x368] ss:$16 sps:$4 sm:$0xff]  }
 0x17b   :  { %v6015_v43 = vpop.f32.mrb[4].mxu1 }
 0x17c   :  { %1187 = vmatprep.mubr.bf16.mxu0 %v362_v37  ;;  %1269 = vmatprep.mubr.bf16.mxu1 %v362_v37  ;;  %v352_v44 = vpop.f32.mrb[5].mxu1  ;;  %v4990_v37 = vld [vmem:[#allocation4 + $0x38c] ss:$16 sps:$4 sm:$0xff]  }
 0x17d   :  { %1188 = vmatmul.mubr.bf16.vlgmr.msra.gmra.mrb[0].mxu0 %v361_v40  ;;  %1270 = vmatmul.mubr.bf16.vlgmr.msra.gmra.mrb[8].mxu1 %v361_v40  ;;  %v353_v45 = vadd.f32 %v352_v44, %v186_v36  ;;  %v354_v46 = vpop.f32.mrb[6].mxu1  ;;  %v4987_v36 = vld [vmem:[#allocation4 + $0x384] ss:$16 sps:$4 sm:$0xff]  }
 0x17e   :  { %1197 = vmatpush1.bf16.msra.mxu0 %v4913_v38  ;;  %1279 = vmatpush1.bf16.msra.mxu1 %v4916_v39  ;;  %v355_v49 = vpop.f32.mrb[7].mxu1  ;;  %v351_v38 = vadd.f32 %v6015_v43, %v182_v32  ;;  %v4988_v39 = vld [vmem:[#allocation4 + $0x388] ss:$16 sps:$4 sm:$0xff]   ;;  %v4993_v40 = vld [vmem:[#allocation4 + $0x3a4] ss:$16 sps:$4 sm:$0xff]  }
 0x17f   :  { %1198 = vmatprep.subr.bf16.mxu0 %v4921_v41  ;;  %1280 = vmatprep.subr.bf16.mxu1 %v4924_v42  ;;  %5557 = vtanh.f32 %v353_v45  ;;  %v4996_v41 = vld [vmem:[#allocation4 + $0x3ac] ss:$16 sps:$4 sm:$0xff]   ;;  %v4994_v42 = vld [vmem:[#allocation4 + $0x3a8] ss:$16 sps:$4 sm:$0xff]   ;;  %v4999_v44 = vld [vmem:[#allocation4 + $0x3c4] ss:$16 sps:$4 sm:$0xff]  }
 0x180   :  { %5559 = vtanh.f32 %v351_v38  ;;  %v5002_v45 = vld [vmem:[#allocation4 + $0x3cc] ss:$16 sps:$4 sm:$0xff]   ;;  %v4997_v43 = vld [vmem:[#allocation4 + $0x3c0] ss:$16 sps:$4 sm:$0xff]   ;;  %v5000_v46 = vld [vmem:[#allocation4 + $0x3c8] ss:$16 sps:$4 sm:$0xff]  }
 0x181   :  { %v5003_v49 = vld [vmem:[#allocation4 + $0x3e0] ss:$16 sps:$4 sm:$0xff]   ;;  %v5068_v32 = vld [vmem:[#allocation6 + $0x12c] ss:$16 sps:$4 sm:$0xff]  }
 0x182   :  { %1199 = vmatpush1.bf16.msra.mxu0 %v4919_v47  ;;  %1281 = vmatpush1.bf16.msra.mxu1 %v4922_v48  ;;  %v5005_v47 = vld [vmem:[#allocation4 + $0x3e4] ss:$16 sps:$4 sm:$0xff]   ;;  %v5008_v48 = vld [vmem:[#allocation4 + $0x3ec] ss:$16 sps:$4 sm:$0xff]   ;;  %v5069_v38 = vld [vmem:[#allocation6 + $0x140] ss:$16 sps:$4 sm:$0xff]  }
 0x183   :  { %1200 = vmatprep.subr.bf16.mxu0 %v4927_v50  ;;  %1282 = vmatprep.subr.bf16.mxu1 %v4930_v51  ;;  %v5006_v50 = vld [vmem:[#allocation4 + $0x3e8] ss:$16 sps:$4 sm:$0xff]   ;;  %v5011_v51 = vld [vmem:[#allocation6 + $0x4] ss:$16 sps:$4 sm:$0xff]  }
 0x186   :  { %1201 = vmatpush1.bf16.msra.mxu0 %v4925_v52  ;;  %1283 = vmatpush1.bf16.msra.mxu1 %v4928_v53  ;;  %v5014_v52 = vld [vmem:[#allocation6 + $0xc] ss:$16 sps:$4 sm:$0xff]  }
 0x187   :  { %1202 = vmatprep.subr.bf16.mxu0 %v4933_v54  ;;  %1284 = vmatprep.subr.bf16.mxu1 %v4936_v55  ;;  %v5009_v54 = vld [vmem:[#allocation6] ss:$16 sps:$4 sm:$0xff]   ;;  %v5012_v55 = vld [vmem:[#allocation6 + $0x8] ss:$16 sps:$4 sm:$0xff]  }
 0x189   :  { %v5558_v60 = vpop.eup %5557 }
 0x18a   :  { %1203 = vmatpush1.bf16.msra.mxu0 %v4931_v56  ;;  %1285 = vmatpush1.bf16.msra.mxu1 %v4934_v57  ;;  %v364_v63 = vpack.c.bf16 %v5558_v60, %v5558_v60  ;;  %v5560_v53 = vpop.eup %5559  ;;  %v5017_v57 = vld [vmem:[#allocation6 + $0x24] ss:$16 sps:$4 sm:$0xff]   ;;  %v5018_v60 = vld [vmem:[#allocation6 + $0x28] ss:$16 sps:$4 sm:$0xff]  }
 0x18b   :  { %1204 = vmatprep.subr.bf16.mxu0 %v4939_v58  ;;  %1286 = vmatprep.subr.bf16.mxu1 %v4942_v59  ;;  %v363_v56 = vpack.c.bf16 %v5560_v53, %v5560_v53  ;;  %v5020_v58 = vld [vmem:[#allocation6 + $0x2c] ss:$16 sps:$4 sm:$0xff]   ;;  %v5015_v59 = vld [vmem:[#allocation6 + $0x20] ss:$16 sps:$4 sm:$0xff]   ;;  %v5096_v53 = vld [vmem:[#allocation6 + $0x1c8] ss:$16 sps:$4 sm:$0xff]  }
 0x18c   :  { %1228 = vmatprep.mubr.bf16.mxu0 %v364_v63  ;;  %1310 = vmatprep.mubr.bf16.mxu1 %v364_v63  ;;  %v5021_v63 = vld [vmem:[#allocation6 + $0x40] ss:$16 sps:$4 sm:$0xff]  }
 0x18e   :  { %1205 = vmatpush1.bf16.msra.mxu0 %v4937_v61  ;;  %1287 = vmatpush1.bf16.msra.mxu1 %v4940_v62  ;;  %v5023_v61 = vld [vmem:[#allocation6 + $0x44] ss:$16 sps:$4 sm:$0xff]   ;;  %v5026_v62 = vld [vmem:[#allocation6 + $0x4c] ss:$16 sps:$4 sm:$0xff]  }
 0x18f   :  { %1206 = vmatprep.subr.bf16.mxu0 %v4945_v0  ;;  %1288 = vmatprep.subr.bf16.mxu1 %v4948_v1  ;;  %v5024_v0 = vld [vmem:[#allocation6 + $0x48] ss:$16 sps:$4 sm:$0xff]   ;;  %v5029_v1 = vld [vmem:[#allocation6 + $0x64] ss:$16 sps:$4 sm:$0xff]  }
 0x192   :  { %1207 = vmatpush1.bf16.msra.mxu0 %v4943_v2  ;;  %1289 = vmatpush1.bf16.msra.mxu1 %v4946_v3  ;;  %v5032_v2 = vld [vmem:[#allocation6 + $0x6c] ss:$16 sps:$4 sm:$0xff]   ;;  %v5027_v3 = vld [vmem:[#allocation6 + $0x60] ss:$16 sps:$4 sm:$0xff]  }
 0x193   :  { %1208 = vmatprep.subr.bf16.mxu0 %v4951_v4  ;;  %1290 = vmatprep.subr.bf16.mxu1 %v4954_v5  ;;  %v5030_v4 = vld [vmem:[#allocation6 + $0x68] ss:$16 sps:$4 sm:$0xff]   ;;  %v5035_v5 = vld [vmem:[#allocation6 + $0x84] ss:$16 sps:$4 sm:$0xff]  }
 0x196   :  { %1209 = vmatpush1.bf16.msra.mxu0 %v4949_v6  ;;  %1291 = vmatpush1.bf16.msra.mxu1 %v4952_v7  ;;  %v5038_v6 = vld [vmem:[#allocation6 + $0x8c] ss:$16 sps:$4 sm:$0xff]   ;;  %v5033_v7 = vld [vmem:[#allocation6 + $0x80] ss:$16 sps:$4 sm:$0xff]  }
 0x197   :  { %1210 = vmatprep.subr.bf16.mxu0 %v4957_v8  ;;  %1292 = vmatprep.subr.bf16.mxu1 %v4960_v9  ;;  %v5036_v8 = vld [vmem:[#allocation6 + $0x88] ss:$16 sps:$4 sm:$0xff]   ;;  %v5041_v9 = vld [vmem:[#allocation6 + $0xa4] ss:$16 sps:$4 sm:$0xff]  }
 0x19a   :  { %1211 = vmatpush1.bf16.msra.mxu0 %v4955_v10  ;;  %1293 = vmatpush1.bf16.msra.mxu1 %v4958_v11  ;;  %v5044_v10 = vld [vmem:[#allocation6 + $0xac] ss:$16 sps:$4 sm:$0xff]   ;;  %v5039_v11 = vld [vmem:[#allocation6 + $0xa0] ss:$16 sps:$4 sm:$0xff]  }
 0x19b   :  { %1212 = vmatprep.subr.bf16.mxu0 %v4963_v12  ;;  %1294 = vmatprep.subr.bf16.mxu1 %v4966_v13  ;;  %v5042_v12 = vld [vmem:[#allocation6 + $0xa8] ss:$16 sps:$4 sm:$0xff]   ;;  %v5047_v13 = vld [vmem:[#allocation6 + $0xc4] ss:$16 sps:$4 sm:$0xff]  }
 0x19e   :  { %1213 = vmatpush1.bf16.msra.mxu0 %v4961_v14  ;;  %1295 = vmatpush1.bf16.msra.mxu1 %v4964_v15  ;;  %v5050_v14 = vld [vmem:[#allocation6 + $0xcc] ss:$16 sps:$4 sm:$0xff]   ;;  %v5045_v15 = vld [vmem:[#allocation6 + $0xc0] ss:$16 sps:$4 sm:$0xff]  }
 0x19f   :  { %1214 = vmatprep.subr.bf16.mxu0 %v4969_v16  ;;  %1296 = vmatprep.subr.bf16.mxu1 %v4972_v17  ;;  %v5048_v16 = vld [vmem:[#allocation6 + $0xc8] ss:$16 sps:$4 sm:$0xff]   ;;  %v5053_v17 = vld [vmem:[#allocation6 + $0xe4] ss:$16 sps:$4 sm:$0xff]  }
 0x1a2   :  { %1215 = vmatpush1.bf16.msra.mxu0 %v4967_v18  ;;  %1297 = vmatpush1.bf16.msra.mxu1 %v4970_v19  ;;  %v5056_v18 = vld [vmem:[#allocation6 + $0xec] ss:$16 sps:$4 sm:$0xff]   ;;  %v5051_v19 = vld [vmem:[#allocation6 + $0xe0] ss:$16 sps:$4 sm:$0xff]  }
 0x1a3   :  { %1216 = vmatprep.subr.bf16.mxu0 %v4975_v25  ;;  %1298 = vmatprep.subr.bf16.mxu1 %v4978_v26  ;;  %v5054_v25 = vld [vmem:[#allocation6 + $0xe8] ss:$16 sps:$4 sm:$0xff]   ;;  %v5059_v26 = vld [vmem:[#allocation6 + $0x104] ss:$16 sps:$4 sm:$0xff]  }
 0x1a6   :  { %1217 = vmatpush1.bf16.msra.mxu0 %v4973_v27  ;;  %1299 = vmatpush1.bf16.msra.mxu1 %v4976_v28  ;;  %v5062_v27 = vld [vmem:[#allocation6 + $0x10c] ss:$16 sps:$4 sm:$0xff]   ;;  %v5057_v28 = vld [vmem:[#allocation6 + $0x100] ss:$16 sps:$4 sm:$0xff]  }
 0x1a7   :  { %1218 = vmatprep.subr.bf16.mxu0 %v4981_v30  ;;  %1300 = vmatprep.subr.bf16.mxu1 %v4984_v31  ;;  %v5060_v30 = vld [vmem:[#allocation6 + $0x108] ss:$16 sps:$4 sm:$0xff]   ;;  %v5065_v31 = vld [vmem:[#allocation6 + $0x124] ss:$16 sps:$4 sm:$0xff]  }
 0x1aa   :  { %1219 = vmatpush1.bf16.msra.mxu0 %v4979_v34  ;;  %1301 = vmatpush1.bf16.msra.mxu1 %v4982_v35  ;;  %v5063_v34 = vld [vmem:[#allocation6 + $0x120] ss:$16 sps:$4 sm:$0xff]   ;;  %v5066_v35 = vld [vmem:[#allocation6 + $0x128] ss:$16 sps:$4 sm:$0xff]  }
 0x1ab   :  { %1220 = vmatprep.subr.bf16.mxu0 %v4987_v36  ;;  %1302 = vmatprep.subr.bf16.mxu1 %v4990_v37  ;;  %v5071_v36 = vld [vmem:[#allocation6 + $0x144] ss:$16 sps:$4 sm:$0xff]   ;;  %v5074_v37 = vld [vmem:[#allocation6 + $0x14c] ss:$16 sps:$4 sm:$0xff]  }
 0x1ae   :  { %1221 = vmatpush1.bf16.msra.mxu0 %v4985_v21  ;;  %1303 = vmatpush1.bf16.msra.mxu1 %v4988_v39  ;;  %v5072_v21 = vld [vmem:[#allocation6 + $0x148] ss:$16 sps:$4 sm:$0xff]   ;;  %v5077_v39 = vld [vmem:[#allocation6 + $0x164] ss:$16 sps:$4 sm:$0xff]  }
 0x1af   :  { %1222 = vmatprep.subr.bf16.mxu0 %v4993_v40  ;;  %1304 = vmatprep.subr.bf16.mxu1 %v4996_v41  ;;  %v5080_v40 = vld [vmem:[#allocation6 + $0x16c] ss:$16 sps:$4 sm:$0xff]   ;;  %v5075_v41 = vld [vmem:[#allocation6 + $0x160] ss:$16 sps:$4 sm:$0xff]  }
 0x1b2   :  { %1223 = vmatpush1.bf16.msra.mxu0 %v4991_v22  ;;  %1305 = vmatpush1.bf16.msra.mxu1 %v4994_v42  ;;  %v5078_v22 = vld [vmem:[#allocation6 + $0x168] ss:$16 sps:$4 sm:$0xff]   ;;  %v5083_v42 = vld [vmem:[#allocation6 + $0x184] ss:$16 sps:$4 sm:$0xff]  }
 0x1b3   :  { %1224 = vmatprep.subr.bf16.mxu0 %v4999_v44  ;;  %1306 = vmatprep.subr.bf16.mxu1 %v5002_v45  ;;  %v5086_v44 = vld [vmem:[#allocation6 + $0x18c] ss:$16 sps:$4 sm:$0xff]   ;;  %v5081_v45 = vld [vmem:[#allocation6 + $0x180] ss:$16 sps:$4 sm:$0xff]  }
 0x1b6   :  { %1225 = vmatpush1.bf16.msra.mxu0 %v4997_v43  ;;  %1307 = vmatpush1.bf16.msra.mxu1 %v5000_v46  ;;  %v5084_v43 = vld [vmem:[#allocation6 + $0x188] ss:$16 sps:$4 sm:$0xff]   ;;  %v5089_v46 = vld [vmem:[#allocation6 + $0x1a4] ss:$16 sps:$4 sm:$0xff]  }
 0x1b7   :  { %1226 = vmatprep.subr.bf16.mxu0 %v5005_v47  ;;  %1308 = vmatprep.subr.bf16.mxu1 %v5008_v48  ;;  %v5092_v47 = vld [vmem:[#allocation6 + $0x1ac] ss:$16 sps:$4 sm:$0xff]   ;;  %v5087_v48 = vld [vmem:[#allocation6 + $0x1a0] ss:$16 sps:$4 sm:$0xff]  }
 0x1ba   :  { %1227 = vmatpush1.bf16.msra.mxu0 %v5003_v49  ;;  %1309 = vmatpush1.bf16.msra.mxu1 %v5006_v50  ;;  %v5090_v49 = vld [vmem:[#allocation6 + $0x1a8] ss:$16 sps:$4 sm:$0xff]   ;;  %v5095_v50 = vld [vmem:[#allocation6 + $0x1c4] ss:$16 sps:$4 sm:$0xff]  }
 0x1bb   :  { %2117 = vmatprep.subr.bf16.mxu0 %v5011_v51  ;;  %2199 = vmatprep.subr.bf16.mxu1 %v5014_v52  ;;  %v5098_v51 = vld [vmem:[#allocation6 + $0x1cc] ss:$16 sps:$4 sm:$0xff]   ;;  %v5093_v52 = vld [vmem:[#allocation6 + $0x1c0] ss:$16 sps:$4 sm:$0xff]  }
 0x1bd   :  { %1229 = vmatmul.mubr.bf16.vlgmr.msra.gmra.mrb[0].mxu0 %v363_v56  ;;  %1311 = vmatmul.mubr.bf16.vlgmr.msra.gmra.mrb[8].mxu1 %v363_v56  ;;  %v5099_v56 = vld [vmem:[#allocation6 + $0x1e0] ss:$16 sps:$4 sm:$0xff]  }
 0x1be   :  { %2118 = vmatpush1.bf16.msra.mxu0 %v5009_v54  ;;  %2200 = vmatpush1.bf16.msra.mxu1 %v5012_v55  ;;  %v5101_v54 = vld [vmem:[#allocation6 + $0x1e4] ss:$16 sps:$4 sm:$0xff]   ;;  %v5104_v55 = vld [vmem:[#allocation6 + $0x1ec] ss:$16 sps:$4 sm:$0xff]  }
 0x1bf   :  { %2119 = vmatprep.subr.bf16.mxu0 %v5017_v57  ;;  %2201 = vmatprep.subr.bf16.mxu1 %v5020_v58  ;;  %v5102_v57 = vld [vmem:[#allocation6 + $0x1e8] ss:$16 sps:$4 sm:$0xff]   ;;  %v5107_v58 = vld [vmem:[#allocation6 + $0x204] ss:$16 sps:$4 sm:$0xff]  }
 0x1c2   :  { %2120 = vmatpush1.bf16.msra.mxu0 %v5015_v59  ;;  %2202 = vmatpush1.bf16.msra.mxu1 %v5018_v60  ;;  %v5110_v59 = vld [vmem:[#allocation6 + $0x20c] ss:$16 sps:$4 sm:$0xff]   ;;  %v6026_v60 = vld [vmem:[%s6101_s7] sm:$0xf] }
 0x1c3   :  { %2121 = vmatprep.subr.bf16.mxu0 %v5023_v61  ;;  %2203 = vmatprep.subr.bf16.mxu1 %v5026_v62  ;;  %v498_v61 = vrot.slane %v6026_v60, %v6001_v23  ;;  %v502_v62 = vrot.slane %v6026_v60, %v6004_v24 }
 0x1c6   :  { %2122 = vmatpush1.bf16.msra.mxu0 %v5021_v63  ;;  %2204 = vmatpush1.bf16.msra.mxu1 %v5024_v0  ;;  %v510_v63 = vrot.slane %v6026_v60, %v6011_v33 }
 0x1c7   :  { %2123 = vmatprep.subr.bf16.mxu0 %v5029_v1  ;;  %2205 = vmatprep.subr.bf16.mxu1 %v5032_v2 }
 0x1ca   :  { %2124 = vmatpush1.bf16.msra.mxu0 %v5027_v3  ;;  %2206 = vmatpush1.bf16.msra.mxu1 %v5030_v4 }
 0x1cb   :  { %2125 = vmatprep.subr.bf16.mxu0 %v5035_v5  ;;  %2207 = vmatprep.subr.bf16.mxu1 %v5038_v6 }
 0x1ce   :  { %2126 = vmatpush1.bf16.msra.mxu0 %v5033_v7  ;;  %2208 = vmatpush1.bf16.msra.mxu1 %v5036_v8 }
 0x1cf   :  { %2127 = vmatprep.subr.bf16.mxu0 %v5041_v9  ;;  %2209 = vmatprep.subr.bf16.mxu1 %v5044_v10 }
 0x1d2   :  { %2128 = vmatpush1.bf16.msra.mxu0 %v5039_v11  ;;  %2210 = vmatpush1.bf16.msra.mxu1 %v5042_v12 }
 0x1d3   :  { %2129 = vmatprep.subr.bf16.mxu0 %v5047_v13  ;;  %2211 = vmatprep.subr.bf16.mxu1 %v5050_v14 }
 0x1d6   :  { %2130 = vmatpush1.bf16.msra.mxu0 %v5045_v15  ;;  %2212 = vmatpush1.bf16.msra.mxu1 %v5048_v16  ;;  %v5105_v15 = vld [vmem:[#allocation6 + $0x200] ss:$16 sps:$4 sm:$0xff]   ;;  %v5108_v16 = vld [vmem:[#allocation6 + $0x208] ss:$16 sps:$4 sm:$0xff]  }
 0x1d7   :  { %2131 = vmatprep.subr.bf16.mxu0 %v5053_v17  ;;  %2213 = vmatprep.subr.bf16.mxu1 %v5056_v18  ;;  %v5113_v18 = vld [vmem:[#allocation6 + $0x224] ss:$16 sps:$4 sm:$0xff]  }
 0x1da   :  { %2132 = vmatpush1.bf16.msra.mxu0 %v5051_v19  ;;  %2214 = vmatpush1.bf16.msra.mxu1 %v5054_v25  ;;  %v5116_v19 = vld [vmem:[#allocation6 + $0x22c] ss:$16 sps:$4 sm:$0xff]  }
 0x1db   :  { %2133 = vmatprep.subr.bf16.mxu0 %v5059_v26  ;;  %2215 = vmatprep.subr.bf16.mxu1 %v5062_v27  ;;  %v5111_v26 = vld [vmem:[#allocation6 + $0x220] ss:$16 sps:$4 sm:$0xff]   ;;  %v5114_v27 = vld [vmem:[#allocation6 + $0x228] ss:$16 sps:$4 sm:$0xff]  }
 0x1de   :  { %2134 = vmatpush1.bf16.msra.mxu0 %v5057_v28  ;;  %2216 = vmatpush1.bf16.msra.mxu1 %v5060_v30  ;;  %v5119_v28 = vld [vmem:[#allocation6 + $0x244] ss:$16 sps:$4 sm:$0xff]   ;;  %v5122_v30 = vld [vmem:[#allocation6 + $0x24c] ss:$16 sps:$4 sm:$0xff]  }
 0x1df   :  { %2135 = vmatprep.subr.bf16.mxu0 %v5065_v31  ;;  %2217 = vmatprep.subr.bf16.mxu1 %v5068_v32  ;;  %v5117_v31 = vld [vmem:[#allocation6 + $0x240] ss:$16 sps:$4 sm:$0xff]   ;;  %v5120_v32 = vld [vmem:[#allocation6 + $0x248] ss:$16 sps:$4 sm:$0xff]  }
 0x1e2   :  { %2136 = vmatpush1.bf16.msra.mxu0 %v5063_v34  ;;  %2218 = vmatpush1.bf16.msra.mxu1 %v5066_v35  ;;  %v5125_v34 = vld [vmem:[#allocation6 + $0x264] ss:$16 sps:$4 sm:$0xff]   ;;  %v5128_v35 = vld [vmem:[#allocation6 + $0x26c] ss:$16 sps:$4 sm:$0xff]  }
 0x1e3   :  { %2137 = vmatprep.subr.bf16.mxu0 %v5071_v36  ;;  %2219 = vmatprep.subr.bf16.mxu1 %v5074_v37  ;;  %v5123_v36 = vld [vmem:[#allocation6 + $0x260] ss:$16 sps:$4 sm:$0xff]   ;;  %v5126_v37 = vld [vmem:[#allocation6 + $0x268] ss:$16 sps:$4 sm:$0xff]  }
 0x1e6   :  { %2138 = vmatpush1.bf16.msra.mxu0 %v5069_v38  ;;  %2220 = vmatpush1.bf16.msra.mxu1 %v5072_v21  ;;  %v5131_v38 = vld [vmem:[#allocation6 + $0x284] ss:$16 sps:$4 sm:$0xff]   ;;  %v5134_v21 = vld [vmem:[#allocation6 + $0x28c] ss:$16 sps:$4 sm:$0xff]  }
 0x1e7   :  { %2139 = vmatprep.subr.bf16.mxu0 %v5077_v39  ;;  %2221 = vmatprep.subr.bf16.mxu1 %v5080_v40  ;;  %v5129_v39 = vld [vmem:[#allocation6 + $0x280] ss:$16 sps:$4 sm:$0xff]   ;;  %v5132_v40 = vld [vmem:[#allocation6 + $0x288] ss:$16 sps:$4 sm:$0xff]  }
 0x1ea   :  { %2140 = vmatpush1.bf16.msra.mxu0 %v5075_v41  ;;  %2222 = vmatpush1.bf16.msra.mxu1 %v5078_v22  ;;  %v5137_v41 = vld [vmem:[#allocation6 + $0x2a4] ss:$16 sps:$4 sm:$0xff]   ;;  %v5140_v22 = vld [vmem:[#allocation6 + $0x2ac] ss:$16 sps:$4 sm:$0xff]  }
 0x1eb   :  { %2141 = vmatprep.subr.bf16.mxu0 %v5083_v42  ;;  %2223 = vmatprep.subr.bf16.mxu1 %v5086_v44  ;;  %v5135_v42 = vld [vmem:[#allocation6 + $0x2a0] ss:$16 sps:$4 sm:$0xff]   ;;  %v5138_v44 = vld [vmem:[#allocation6 + $0x2a8] ss:$16 sps:$4 sm:$0xff]  }
 0x1ee   :  { %2142 = vmatpush1.bf16.msra.mxu0 %v5081_v45  ;;  %2224 = vmatpush1.bf16.msra.mxu1 %v5084_v43  ;;  %v5143_v45 = vld [vmem:[#allocation6 + $0x2c4] ss:$16 sps:$4 sm:$0xff]   ;;  %v5146_v43 = vld [vmem:[#allocation6 + $0x2cc] ss:$16 sps:$4 sm:$0xff]  }
 0x1ef   :  { %2143 = vmatprep.subr.bf16.mxu0 %v5089_v46  ;;  %2225 = vmatprep.subr.bf16.mxu1 %v5092_v47  ;;  %v5141_v46 = vld [vmem:[#allocation6 + $0x2c0] ss:$16 sps:$4 sm:$0xff]   ;;  %v5144_v47 = vld [vmem:[#allocation6 + $0x2c8] ss:$16 sps:$4 sm:$0xff]  }
 0x1f2   :  { %2144 = vmatpush1.bf16.msra.mxu0 %v5087_v48  ;;  %2226 = vmatpush1.bf16.msra.mxu1 %v5090_v49  ;;  %v5149_v48 = vld [vmem:[#allocation6 + $0x2e4] ss:$16 sps:$4 sm:$0xff]   ;;  %v5152_v49 = vld [vmem:[#allocation6 + $0x2ec] ss:$16 sps:$4 sm:$0xff]  }
 0x1f3   :  { %2145 = vmatprep.subr.bf16.mxu0 %v5095_v50  ;;  %2227 = vmatprep.subr.bf16.mxu1 %v5098_v51  ;;  %v5147_v50 = vld [vmem:[#allocation6 + $0x2e0] ss:$16 sps:$4 sm:$0xff]   ;;  %v5150_v51 = vld [vmem:[#allocation6 + $0x2e8] ss:$16 sps:$4 sm:$0xff]  }
 0x1f6   :  { %2146 = vmatpush1.bf16.msra.mxu0 %v5093_v52  ;;  %2228 = vmatpush1.bf16.msra.mxu1 %v5096_v53  ;;  %v5155_v52 = vld [vmem:[#allocation6 + $0x304] ss:$16 sps:$4 sm:$0xff]   ;;  %v5158_v53 = vld [vmem:[#allocation6 + $0x30c] ss:$16 sps:$4 sm:$0xff]  }
 0x1f7   :  { %2147 = vmatprep.subr.bf16.mxu0 %v5101_v54  ;;  %2229 = vmatprep.subr.bf16.mxu1 %v5104_v55  ;;  %v5153_v54 = vld [vmem:[#allocation6 + $0x300] ss:$16 sps:$4 sm:$0xff]   ;;  %v5156_v55 = vld [vmem:[#allocation6 + $0x308] ss:$16 sps:$4 sm:$0xff]  }
 0x1fa   :  { %2148 = vmatpush1.bf16.msra.mxu0 %v5099_v56  ;;  %2230 = vmatpush1.bf16.msra.mxu1 %v5102_v57  ;;  %v5161_v56 = vld [vmem:[#allocation6 + $0x324] ss:$16 sps:$4 sm:$0xff]   ;;  %v5164_v57 = vld [vmem:[#allocation6 + $0x32c] ss:$16 sps:$4 sm:$0xff]  }
 0x1fb   :  { %2158 = vmatprep.subr.bf16.mxu0 %v5107_v58  ;;  %2240 = vmatprep.subr.bf16.mxu1 %v5110_v59  ;;  %v5159_v58 = vld [vmem:[#allocation6 + $0x320] ss:$16 sps:$4 sm:$0xff]   ;;  %v5162_v59 = vld [vmem:[#allocation6 + $0x328] ss:$16 sps:$4 sm:$0xff]  }
 0x290   :  { %v1230_v0 = vpop.f32.mrb[0].mxu0  ;;  %v6034_v1 = vpop.f32.mrb[8].mxu1 }
 0x291   :  { %v4734_v2 = vadd.f32 %v1230_v0, %v498_v61  ;;  %v1232_v3 = vpop.f32.mrb[1].mxu0  ;;  %v1314_v4 = vpop.f32.mrb[9].mxu1  ;;  %v5167_v61 = vld [vmem:[#allocation6 + $0x344] ss:$16 sps:$4 sm:$0xff]   ;;  %v5168_v0 = vld [vmem:[#allocation6 + $0x348] ss:$16 sps:$4 sm:$0xff]  }
 0x292   :  { %v4735_v5 = vadd.f32 %v1232_v3, %v502_v62  ;;  %v4737_v6 = vadd.f32 %v1314_v4, %v510_v63  ;;  %v1234_v7 = vpop.f32.mrb[2].mxu0  ;;  %v1316_v8 = vpop.f32.mrb[10].mxu1  ;;  %v5170_v62 = vld [vmem:[#allocation6 + $0x34c] ss:$16 sps:$4 sm:$0xff]   ;;  %v5165_v63 = vld [vmem:[#allocation6 + $0x340] ss:$16 sps:$4 sm:$0xff]   ;;  %v506_v4 = vrot.slane %v6026_v60, %v6018_v29 }
 0x293   :  { %v1235_v9 = vpop.f32.mrb[3].mxu0  ;;  %v1317_v10 = vpop.f32.mrb[11].mxu1  ;;  %5561 = vtanh.f32 %v4734_v2  ;;  %v5173_v2 = vld [vmem:[#allocation6 + $0x364] ss:$16 sps:$4 sm:$0xff]   ;;  %v5176_v3 = vld [vmem:[#allocation6 + $0x36c] ss:$16 sps:$4 sm:$0xff]  }
 0x294   :  { %5563 = vtanh.f32 %v4735_v5  ;;  %v5171_v5 = vld [vmem:[#allocation6 + $0x360] ss:$16 sps:$4 sm:$0xff]   ;;  %v5179_v7 = vld [vmem:[#allocation6 + $0x384] ss:$16 sps:$4 sm:$0xff]   ;;  %v5182_v8 = vld [vmem:[#allocation6 + $0x38c] ss:$16 sps:$4 sm:$0xff]   ;;  %v4736_v9 = vadd.f32 %v6034_v1, %v506_v4 }
 0x295   :  { %5565 = vtanh.f32 %v4737_v6  ;;  %v5174_v6 = vld [vmem:[#allocation6 + $0x368] ss:$16 sps:$4 sm:$0xff]   ;;  %v5177_v10 = vld [vmem:[#allocation6 + $0x380] ss:$16 sps:$4 sm:$0xff]   ;;  %v5260_v4 = vld [vmem:[#allocation7 + $0x12c] ss:$16 sps:$4 sm:$0xff]  }
 0x296   :  { %5567 = vtanh.f32 %v4736_v9  ;;  %v5183_v60 = vld [vmem:[#allocation6 + $0x3a0] ss:$16 sps:$4 sm:$0xff]  }
 0x297   :  { %v5189_v1 = vld [vmem:[#allocation6 + $0x3c0] ss:$16 sps:$4 sm:$0xff]  }
 0x298   :  { %v5261_v9 = vld [vmem:[#allocation7 + $0x140] ss:$16 sps:$4 sm:$0xff]  }
 0x29d   :  { %v5562_v11 = vpop.eup %5561 }
 0x29e   :  { %v5564_v12 = vpop.eup %5563  ;;  %v1323_v17 = vpack.c.bf16 %v5562_v11, %v5562_v11  ;;  %v5180_v11 = vld [vmem:[#allocation6 + $0x388] ss:$16 sps:$4 sm:$0xff]  }
 0x29f   :  { %v5566_v13 = vpop.eup %5565  ;;  %v1324_v14 = vpack.c.bf16 %v5564_v12, %v5564_v12  ;;  %v5185_v12 = vld [vmem:[#allocation6 + $0x3a4] ss:$16 sps:$4 sm:$0xff]  }
 0x2a0   :  { %v1326_v25 = vpack.c.bf16 %v5566_v13, %v5566_v13  ;;  %v5188_v13 = vld [vmem:[#allocation6 + $0x3ac] ss:$16 sps:$4 sm:$0xff]  }
 0x2a1   :  { %2149 = vmatprep.mubr.bf16.mxu0 %v1324_v14  ;;  %2231 = vmatprep.mubr.bf16.mxu1 %v1324_v14  ;;  %v5186_v14 = vld [vmem:[#allocation6 + $0x3a8] ss:$16 sps:$4 sm:$0xff]  }
 0x2a2   :  { %2150 = vmatmul.mubr.bf16.vlgmr.msra.gmra.mrb[4].mxu0 %v1323_v17  ;;  %2232 = vmatmul.mubr.bf16.vlgmr.msra.gmra.mrb[12].mxu1 %v1323_v17  ;;  %v5192_v17 = vld [vmem:[#allocation6 + $0x3c8] ss:$16 sps:$4 sm:$0xff]  }
 0x2a3   :  { %2159 = vmatpush1.bf16.msra.mxu0 %v5105_v15  ;;  %2241 = vmatpush1.bf16.msra.mxu1 %v5108_v16  ;;  %v5191_v15 = vld [vmem:[#allocation6 + $0x3c4] ss:$16 sps:$4 sm:$0xff]   ;;  %v5194_v16 = vld [vmem:[#allocation6 + $0x3cc] ss:$16 sps:$4 sm:$0xff]  }
 0x2a4   :  { %2190 = vmatprep.mubr.bf16.mxu0 %v1326_v25  ;;  %2272 = vmatprep.mubr.bf16.mxu1 %v1326_v25  ;;  %v5195_v25 = vld [vmem:[#allocation6 + $0x3e0] ss:$16 sps:$4 sm:$0xff]  }
 0x2a5   :  { %2160 = vmatprep.subr.bf16.mxu0 %v5113_v18  ;;  %2242 = vmatprep.subr.bf16.mxu1 %v5116_v19  ;;  %v5197_v18 = vld [vmem:[#allocation6 + $0x3e4] ss:$16 sps:$4 sm:$0xff]   ;;  %v5200_v19 = vld [vmem:[#allocation6 + $0x3ec] ss:$16 sps:$4 sm:$0xff]  }
 0x2a7   :  { %2161 = vmatpush1.bf16.msra.mxu0 %v5111_v26  ;;  %2243 = vmatpush1.bf16.msra.mxu1 %v5114_v27  ;;  %v5198_v26 = vld [vmem:[#allocation6 + $0x3e8] ss:$16 sps:$4 sm:$0xff]   ;;  %v5203_v27 = vld [vmem:[#allocation7 + $0x4] ss:$16 sps:$4 sm:$0xff]  }
 0x2a8   :  { %2162 = vmatprep.subr.bf16.mxu0 %v5119_v28  ;;  %2244 = vmatprep.subr.bf16.mxu1 %v5122_v30  ;;  %v5206_v28 = vld [vmem:[#allocation7 + $0xc] ss:$16 sps:$4 sm:$0xff]   ;;  %v5568_v30 = vpop.eup %5567 }
 0x2ab   :  { %2163 = vmatpush1.bf16.msra.mxu0 %v5117_v31  ;;  %2245 = vmatpush1.bf16.msra.mxu1 %v5120_v32  ;;  %v5201_v31 = vld [vmem:[#allocation7] ss:$16 sps:$4 sm:$0xff]   ;;  %v5204_v32 = vld [vmem:[#allocation7 + $0x8] ss:$16 sps:$4 sm:$0xff]  }
 0x2ac   :  { %2164 = vmatprep.subr.bf16.mxu0 %v5125_v34  ;;  %2246 = vmatprep.subr.bf16.mxu1 %v5128_v35  ;;  %v1325_v34 = vpack.c.bf16 %v5568_v30, %v5568_v30  ;;  %v5209_v35 = vld [vmem:[#allocation7 + $0x24] ss:$16 sps:$4 sm:$0xff]   ;;  %v5288_v30 = vld [vmem:[#allocation7 + $0x1c8] ss:$16 sps:$4 sm:$0xff]  }
 0x2af   :  { %2165 = vmatpush1.bf16.msra.mxu0 %v5123_v36  ;;  %2247 = vmatpush1.bf16.msra.mxu1 %v5126_v37  ;;  %v5212_v36 = vld [vmem:[#allocation7 + $0x2c] ss:$16 sps:$4 sm:$0xff]   ;;  %v5207_v37 = vld [vmem:[#allocation7 + $0x20] ss:$16 sps:$4 sm:$0xff]  }
 0x2b0   :  { %2166 = vmatprep.subr.bf16.mxu0 %v5131_v38  ;;  %2248 = vmatprep.subr.bf16.mxu1 %v5134_v21  ;;  %v5210_v38 = vld [vmem:[#allocation7 + $0x28] ss:$16 sps:$4 sm:$0xff]   ;;  %v5215_v21 = vld [vmem:[#allocation7 + $0x44] ss:$16 sps:$4 sm:$0xff]  }
 0x2b3   :  { %2167 = vmatpush1.bf16.msra.mxu0 %v5129_v39  ;;  %2249 = vmatpush1.bf16.msra.mxu1 %v5132_v40  ;;  %v5218_v39 = vld [vmem:[#allocation7 + $0x4c] ss:$16 sps:$4 sm:$0xff]   ;;  %v5213_v40 = vld [vmem:[#allocation7 + $0x40] ss:$16 sps:$4 sm:$0xff]  }
 0x2b4   :  { %2168 = vmatprep.subr.bf16.mxu0 %v5137_v41  ;;  %2250 = vmatprep.subr.bf16.mxu1 %v5140_v22  ;;  %v5216_v41 = vld [vmem:[#allocation7 + $0x48] ss:$16 sps:$4 sm:$0xff]   ;;  %v5221_v22 = vld [vmem:[#allocation7 + $0x64] ss:$16 sps:$4 sm:$0xff]  }
 0x2b7   :  { %2169 = vmatpush1.bf16.msra.mxu0 %v5135_v42  ;;  %2251 = vmatpush1.bf16.msra.mxu1 %v5138_v44  ;;  %v5224_v42 = vld [vmem:[#allocation7 + $0x6c] ss:$16 sps:$4 sm:$0xff]   ;;  %v5219_v44 = vld [vmem:[#allocation7 + $0x60] ss:$16 sps:$4 sm:$0xff]  }
 0x2b8   :  { %2170 = vmatprep.subr.bf16.mxu0 %v5143_v45  ;;  %2252 = vmatprep.subr.bf16.mxu1 %v5146_v43  ;;  %v5222_v45 = vld [vmem:[#allocation7 + $0x68] ss:$16 sps:$4 sm:$0xff]   ;;  %v5227_v43 = vld [vmem:[#allocation7 + $0x84] ss:$16 sps:$4 sm:$0xff]  }
 0x2bb   :  { %2171 = vmatpush1.bf16.msra.mxu0 %v5141_v46  ;;  %2253 = vmatpush1.bf16.msra.mxu1 %v5144_v47  ;;  %v5230_v46 = vld [vmem:[#allocation7 + $0x8c] ss:$16 sps:$4 sm:$0xff]   ;;  %v5225_v47 = vld [vmem:[#allocation7 + $0x80] ss:$16 sps:$4 sm:$0xff]  }
 0x2bc   :  { %2172 = vmatprep.subr.bf16.mxu0 %v5149_v48  ;;  %2254 = vmatprep.subr.bf16.mxu1 %v5152_v49  ;;  %v5228_v48 = vld [vmem:[#allocation7 + $0x88] ss:$16 sps:$4 sm:$0xff]   ;;  %v5233_v49 = vld [vmem:[#allocation7 + $0xa4] ss:$16 sps:$4 sm:$0xff]  }
 0x2bf   :  { %2173 = vmatpush1.bf16.msra.mxu0 %v5147_v50  ;;  %2255 = vmatpush1.bf16.msra.mxu1 %v5150_v51  ;;  %v5236_v50 = vld [vmem:[#allocation7 + $0xac] ss:$16 sps:$4 sm:$0xff]   ;;  %v5231_v51 = vld [vmem:[#allocation7 + $0xa0] ss:$16 sps:$4 sm:$0xff]  }
 0x2c0   :  { %2174 = vmatprep.subr.bf16.mxu0 %v5155_v52  ;;  %2256 = vmatprep.subr.bf16.mxu1 %v5158_v53  ;;  %v5234_v52 = vld [vmem:[#allocation7 + $0xa8] ss:$16 sps:$4 sm:$0xff]   ;;  %v5239_v53 = vld [vmem:[#allocation7 + $0xc4] ss:$16 sps:$4 sm:$0xff]  }
 0x2c3   :  { %2175 = vmatpush1.bf16.msra.mxu0 %v5153_v54  ;;  %2257 = vmatpush1.bf16.msra.mxu1 %v5156_v55  ;;  %v5242_v54 = vld [vmem:[#allocation7 + $0xcc] ss:$16 sps:$4 sm:$0xff]   ;;  %v5237_v55 = vld [vmem:[#allocation7 + $0xc0] ss:$16 sps:$4 sm:$0xff]  }
 0x2c4   :  { %2176 = vmatprep.subr.bf16.mxu0 %v5161_v56  ;;  %2258 = vmatprep.subr.bf16.mxu1 %v5164_v57  ;;  %v5240_v56 = vld [vmem:[#allocation7 + $0xc8] ss:$16 sps:$4 sm:$0xff]   ;;  %v5245_v57 = vld [vmem:[#allocation7 + $0xe4] ss:$16 sps:$4 sm:$0xff]  }
 0x2c7   :  { %2177 = vmatpush1.bf16.msra.mxu0 %v5159_v58  ;;  %2259 = vmatpush1.bf16.msra.mxu1 %v5162_v59  ;;  %v5248_v58 = vld [vmem:[#allocation7 + $0xec] ss:$16 sps:$4 sm:$0xff]   ;;  %v5243_v59 = vld [vmem:[#allocation7 + $0xe0] ss:$16 sps:$4 sm:$0xff]  }
 0x2c8   :  { %2178 = vmatprep.subr.bf16.mxu0 %v5167_v61  ;;  %2260 = vmatprep.subr.bf16.mxu1 %v5170_v62  ;;  %v5246_v61 = vld [vmem:[#allocation7 + $0xe8] ss:$16 sps:$4 sm:$0xff]   ;;  %v5251_v62 = vld [vmem:[#allocation7 + $0x104] ss:$16 sps:$4 sm:$0xff]  }
 0x2cb   :  { %2179 = vmatpush1.bf16.msra.mxu0 %v5165_v63  ;;  %2261 = vmatpush1.bf16.msra.mxu1 %v5168_v0  ;;  %v5254_v63 = vld [vmem:[#allocation7 + $0x10c] ss:$16 sps:$4 sm:$0xff]   ;;  %v5249_v0 = vld [vmem:[#allocation7 + $0x100] ss:$16 sps:$4 sm:$0xff]  }
 0x2cc   :  { %2180 = vmatprep.subr.bf16.mxu0 %v5173_v2  ;;  %2262 = vmatprep.subr.bf16.mxu1 %v5176_v3  ;;  %v5252_v2 = vld [vmem:[#allocation7 + $0x108] ss:$16 sps:$4 sm:$0xff]   ;;  %v5257_v3 = vld [vmem:[#allocation7 + $0x124] ss:$16 sps:$4 sm:$0xff]  }
 0x2cf   :  { %2181 = vmatpush1.bf16.msra.mxu0 %v5171_v5  ;;  %2263 = vmatpush1.bf16.msra.mxu1 %v5174_v6  ;;  %v5255_v5 = vld [vmem:[#allocation7 + $0x120] ss:$16 sps:$4 sm:$0xff]   ;;  %v5258_v6 = vld [vmem:[#allocation7 + $0x128] ss:$16 sps:$4 sm:$0xff]  }
 0x2d0   :  { %2182 = vmatprep.subr.bf16.mxu0 %v5179_v7  ;;  %2264 = vmatprep.subr.bf16.mxu1 %v5182_v8  ;;  %v5263_v7 = vld [vmem:[#allocation7 + $0x144] ss:$16 sps:$4 sm:$0xff]   ;;  %v5266_v8 = vld [vmem:[#allocation7 + $0x14c] ss:$16 sps:$4 sm:$0xff]  }
 0x2d3   :  { %2183 = vmatpush1.bf16.msra.mxu0 %v5177_v10  ;;  %2265 = vmatpush1.bf16.msra.mxu1 %v5180_v11  ;;  %v5264_v10 = vld [vmem:[#allocation7 + $0x148] ss:$16 sps:$4 sm:$0xff]   ;;  %v5269_v11 = vld [vmem:[#allocation7 + $0x164] ss:$16 sps:$4 sm:$0xff]  }
 0x2d4   :  { %2184 = vmatprep.subr.bf16.mxu0 %v5185_v12  ;;  %2266 = vmatprep.subr.bf16.mxu1 %v5188_v13  ;;  %v5272_v12 = vld [vmem:[#allocation7 + $0x16c] ss:$16 sps:$4 sm:$0xff]   ;;  %v5267_v13 = vld [vmem:[#allocation7 + $0x160] ss:$16 sps:$4 sm:$0xff]  }
 0x2d7   :  { %2185 = vmatpush1.bf16.msra.mxu0 %v5183_v60  ;;  %2267 = vmatpush1.bf16.msra.mxu1 %v5186_v14  ;;  %v5270_v60 = vld [vmem:[#allocation7 + $0x168] ss:$16 sps:$4 sm:$0xff]   ;;  %v5275_v14 = vld [vmem:[#allocation7 + $0x184] ss:$16 sps:$4 sm:$0xff]  }
 0x2d8   :  { %2186 = vmatprep.subr.bf16.mxu0 %v5191_v15  ;;  %2268 = vmatprep.subr.bf16.mxu1 %v5194_v16  ;;  %v5278_v15 = vld [vmem:[#allocation7 + $0x18c] ss:$16 sps:$4 sm:$0xff]   ;;  %v5273_v16 = vld [vmem:[#allocation7 + $0x180] ss:$16 sps:$4 sm:$0xff]  }
 0x2db   :  { %2187 = vmatpush1.bf16.msra.mxu0 %v5189_v1  ;;  %2269 = vmatpush1.bf16.msra.mxu1 %v5192_v17  ;;  %v5276_v1 = vld [vmem:[#allocation7 + $0x188] ss:$16 sps:$4 sm:$0xff]   ;;  %v5281_v17 = vld [vmem:[#allocation7 + $0x1a4] ss:$16 sps:$4 sm:$0xff]  }
 0x2dc   :  { %2188 = vmatprep.subr.bf16.mxu0 %v5197_v18  ;;  %2270 = vmatprep.subr.bf16.mxu1 %v5200_v19  ;;  %v5284_v18 = vld [vmem:[#allocation7 + $0x1ac] ss:$16 sps:$4 sm:$0xff]   ;;  %v5279_v19 = vld [vmem:[#allocation7 + $0x1a0] ss:$16 sps:$4 sm:$0xff]  }
 0x2df   :  { %2189 = vmatpush1.bf16.msra.mxu0 %v5195_v25  ;;  %2271 = vmatpush1.bf16.msra.mxu1 %v5198_v26  ;;  %v5282_v25 = vld [vmem:[#allocation7 + $0x1a8] ss:$16 sps:$4 sm:$0xff]   ;;  %v5287_v26 = vld [vmem:[#allocation7 + $0x1c4] ss:$16 sps:$4 sm:$0xff]  }
 0x2e0   :  { %3079 = vmatprep.subr.bf16.mxu0 %v5203_v27  ;;  %3161 = vmatprep.subr.bf16.mxu1 %v5206_v28  ;;  %v5290_v27 = vld [vmem:[#allocation7 + $0x1cc] ss:$16 sps:$4 sm:$0xff]   ;;  %v5285_v28 = vld [vmem:[#allocation7 + $0x1c0] ss:$16 sps:$4 sm:$0xff]  }
 0x2e2   :  { %2191 = vmatmul.mubr.bf16.vlgmr.msra.gmra.mrb[4].mxu0 %v1325_v34  ;;  %2273 = vmatmul.mubr.bf16.vlgmr.msra.gmra.mrb[12].mxu1 %v1325_v34  ;;  %v5291_v34 = vld [vmem:[#allocation7 + $0x1e0] ss:$16 sps:$4 sm:$0xff]  }
 0x2e3   :  { %3080 = vmatpush1.bf16.msra.mxu0 %v5201_v31  ;;  %3162 = vmatpush1.bf16.msra.mxu1 %v5204_v32  ;;  %v5293_v31 = vld [vmem:[#allocation7 + $0x1e4] ss:$16 sps:$4 sm:$0xff]   ;;  %v5296_v32 = vld [vmem:[#allocation7 + $0x1ec] ss:$16 sps:$4 sm:$0xff]  }
 0x2e4   :  { %3081 = vmatprep.subr.bf16.mxu0 %v5209_v35  ;;  %3163 = vmatprep.subr.bf16.mxu1 %v5212_v36  ;;  %v5294_v35 = vld [vmem:[#allocation7 + $0x1e8] ss:$16 sps:$4 sm:$0xff]   ;;  %v5299_v36 = vld [vmem:[#allocation7 + $0x204] ss:$16 sps:$4 sm:$0xff]  }
 0x2e7   :  { %3082 = vmatpush1.bf16.msra.mxu0 %v5207_v37  ;;  %3164 = vmatpush1.bf16.msra.mxu1 %v5210_v38  ;;  %v5302_v37 = vld [vmem:[#allocation7 + $0x20c] ss:$16 sps:$4 sm:$0xff]   ;;  %v6042_v38 = vld [vmem:[%s6102_s8] sm:$0xf] }
 0x2e8   :  { %3083 = vmatprep.subr.bf16.mxu0 %v5215_v21  ;;  %3165 = vmatprep.subr.bf16.mxu1 %v5218_v39  ;;  %v1460_v21 = vrot.slane %v6042_v38, %v6001_v23  ;;  %v1464_v39 = vrot.slane %v6042_v38, %v6004_v24 }
 0x2eb   :  { %3084 = vmatpush1.bf16.msra.mxu0 %v5213_v40  ;;  %3166 = vmatpush1.bf16.msra.mxu1 %v5216_v41  ;;  %v1472_v40 = vrot.slane %v6042_v38, %v6011_v33 }
 0x2ec   :  { %3085 = vmatprep.subr.bf16.mxu0 %v5221_v22  ;;  %3167 = vmatprep.subr.bf16.mxu1 %v5224_v42 }
 0x2ef   :  { %3086 = vmatpush1.bf16.msra.mxu0 %v5219_v44  ;;  %3168 = vmatpush1.bf16.msra.mxu1 %v5222_v45 }
 0x2f0   :  { %3087 = vmatprep.subr.bf16.mxu0 %v5227_v43  ;;  %3169 = vmatprep.subr.bf16.mxu1 %v5230_v46 }
 0x2f3   :  { %3088 = vmatpush1.bf16.msra.mxu0 %v5225_v47  ;;  %3170 = vmatpush1.bf16.msra.mxu1 %v5228_v48 }
 0x2f4   :  { %3089 = vmatprep.subr.bf16.mxu0 %v5233_v49  ;;  %3171 = vmatprep.subr.bf16.mxu1 %v5236_v50 }
 0x2f7   :  { %3090 = vmatpush1.bf16.msra.mxu0 %v5231_v51  ;;  %3172 = vmatpush1.bf16.msra.mxu1 %v5234_v52 }
 0x2f8   :  { %3091 = vmatprep.subr.bf16.mxu0 %v5239_v53  ;;  %3173 = vmatprep.subr.bf16.mxu1 %v5242_v54 }
 0x2fb   :  { %3092 = vmatpush1.bf16.msra.mxu0 %v5237_v55  ;;  %3174 = vmatpush1.bf16.msra.mxu1 %v5240_v56  ;;  %v5297_v55 = vld [vmem:[#allocation7 + $0x200] ss:$16 sps:$4 sm:$0xff]   ;;  %v5300_v56 = vld [vmem:[#allocation7 + $0x208] ss:$16 sps:$4 sm:$0xff]  }
 0x2fc   :  { %3093 = vmatprep.subr.bf16.mxu0 %v5245_v57  ;;  %3175 = vmatprep.subr.bf16.mxu1 %v5248_v58  ;;  %v5305_v58 = vld [vmem:[#allocation7 + $0x224] ss:$16 sps:$4 sm:$0xff]  }
 0x2ff   :  { %3094 = vmatpush1.bf16.msra.mxu0 %v5243_v59  ;;  %3176 = vmatpush1.bf16.msra.mxu1 %v5246_v61  ;;  %v5308_v59 = vld [vmem:[#allocation7 + $0x22c] ss:$16 sps:$4 sm:$0xff]  }
 0x300   :  { %3095 = vmatprep.subr.bf16.mxu0 %v5251_v62  ;;  %3177 = vmatprep.subr.bf16.mxu1 %v5254_v63  ;;  %v5303_v62 = vld [vmem:[#allocation7 + $0x220] ss:$16 sps:$4 sm:$0xff]   ;;  %v5306_v63 = vld [vmem:[#allocation7 + $0x228] ss:$16 sps:$4 sm:$0xff]  }
 0x303   :  { %3096 = vmatpush1.bf16.msra.mxu0 %v5249_v0  ;;  %3178 = vmatpush1.bf16.msra.mxu1 %v5252_v2  ;;  %v5311_v0 = vld [vmem:[#allocation7 + $0x244] ss:$16 sps:$4 sm:$0xff]   ;;  %v5314_v2 = vld [vmem:[#allocation7 + $0x24c] ss:$16 sps:$4 sm:$0xff]  }
 0x304   :  { %3097 = vmatprep.subr.bf16.mxu0 %v5257_v3  ;;  %3179 = vmatprep.subr.bf16.mxu1 %v5260_v4  ;;  %v5309_v3 = vld [vmem:[#allocation7 + $0x240] ss:$16 sps:$4 sm:$0xff]   ;;  %v5312_v4 = vld [vmem:[#allocation7 + $0x248] ss:$16 sps:$4 sm:$0xff]  }
 0x307   :  { %3098 = vmatpush1.bf16.msra.mxu0 %v5255_v5  ;;  %3180 = vmatpush1.bf16.msra.mxu1 %v5258_v6  ;;  %v5317_v5 = vld [vmem:[#allocation7 + $0x264] ss:$16 sps:$4 sm:$0xff]   ;;  %v5320_v6 = vld [vmem:[#allocation7 + $0x26c] ss:$16 sps:$4 sm:$0xff]  }
 0x308   :  { %3099 = vmatprep.subr.bf16.mxu0 %v5263_v7  ;;  %3181 = vmatprep.subr.bf16.mxu1 %v5266_v8  ;;  %v5315_v7 = vld [vmem:[#allocation7 + $0x260] ss:$16 sps:$4 sm:$0xff]   ;;  %v5318_v8 = vld [vmem:[#allocation7 + $0x268] ss:$16 sps:$4 sm:$0xff]  }
 0x30b   :  { %3100 = vmatpush1.bf16.msra.mxu0 %v5261_v9  ;;  %3182 = vmatpush1.bf16.msra.mxu1 %v5264_v10  ;;  %v5323_v9 = vld [vmem:[#allocation7 + $0x284] ss:$16 sps:$4 sm:$0xff]   ;;  %v5326_v10 = vld [vmem:[#allocation7 + $0x28c] ss:$16 sps:$4 sm:$0xff]  }
 0x30c   :  { %3101 = vmatprep.subr.bf16.mxu0 %v5269_v11  ;;  %3183 = vmatprep.subr.bf16.mxu1 %v5272_v12  ;;  %v5321_v11 = vld [vmem:[#allocation7 + $0x280] ss:$16 sps:$4 sm:$0xff]   ;;  %v5324_v12 = vld [vmem:[#allocation7 + $0x288] ss:$16 sps:$4 sm:$0xff]  }
 0x30f   :  { %3102 = vmatpush1.bf16.msra.mxu0 %v5267_v13  ;;  %3184 = vmatpush1.bf16.msra.mxu1 %v5270_v60  ;;  %v5329_v13 = vld [vmem:[#allocation7 + $0x2a4] ss:$16 sps:$4 sm:$0xff]   ;;  %v5332_v60 = vld [vmem:[#allocation7 + $0x2ac] ss:$16 sps:$4 sm:$0xff]  }
 0x310   :  { %3103 = vmatprep.subr.bf16.mxu0 %v5275_v14  ;;  %3185 = vmatprep.subr.bf16.mxu1 %v5278_v15  ;;  %v5327_v14 = vld [vmem:[#allocation7 + $0x2a0] ss:$16 sps:$4 sm:$0xff]   ;;  %v5330_v15 = vld [vmem:[#allocation7 + $0x2a8] ss:$16 sps:$4 sm:$0xff]  }
 0x313   :  { %3104 = vmatpush1.bf16.msra.mxu0 %v5273_v16  ;;  %3186 = vmatpush1.bf16.msra.mxu1 %v5276_v1  ;;  %v5335_v16 = vld [vmem:[#allocation7 + $0x2c4] ss:$16 sps:$4 sm:$0xff]   ;;  %v5338_v1 = vld [vmem:[#allocation7 + $0x2cc] ss:$16 sps:$4 sm:$0xff]  }
 0x314   :  { %3105 = vmatprep.subr.bf16.mxu0 %v5281_v17  ;;  %3187 = vmatprep.subr.bf16.mxu1 %v5284_v18  ;;  %v5333_v17 = vld [vmem:[#allocation7 + $0x2c0] ss:$16 sps:$4 sm:$0xff]   ;;  %v5336_v18 = vld [vmem:[#allocation7 + $0x2c8] ss:$16 sps:$4 sm:$0xff]  }
 0x317   :  { %3106 = vmatpush1.bf16.msra.mxu0 %v5279_v19  ;;  %3188 = vmatpush1.bf16.msra.mxu1 %v5282_v25  ;;  %v5341_v19 = vld [vmem:[#allocation7 + $0x2e4] ss:$16 sps:$4 sm:$0xff]   ;;  %v5344_v25 = vld [vmem:[#allocation7 + $0x2ec] ss:$16 sps:$4 sm:$0xff]  }
 0x318   :  { %3107 = vmatprep.subr.bf16.mxu0 %v5287_v26  ;;  %3189 = vmatprep.subr.bf16.mxu1 %v5290_v27  ;;  %v5339_v26 = vld [vmem:[#allocation7 + $0x2e0] ss:$16 sps:$4 sm:$0xff]   ;;  %v5342_v27 = vld [vmem:[#allocation7 + $0x2e8] ss:$16 sps:$4 sm:$0xff]  }
 0x31b   :  { %3108 = vmatpush1.bf16.msra.mxu0 %v5285_v28  ;;  %3190 = vmatpush1.bf16.msra.mxu1 %v5288_v30  ;;  %v5347_v28 = vld [vmem:[#allocation7 + $0x304] ss:$16 sps:$4 sm:$0xff]   ;;  %v5350_v30 = vld [vmem:[#allocation7 + $0x30c] ss:$16 sps:$4 sm:$0xff]  }
 0x31c   :  { %3109 = vmatprep.subr.bf16.mxu0 %v5293_v31  ;;  %3191 = vmatprep.subr.bf16.mxu1 %v5296_v32  ;;  %v5345_v31 = vld [vmem:[#allocation7 + $0x300] ss:$16 sps:$4 sm:$0xff]   ;;  %v5348_v32 = vld [vmem:[#allocation7 + $0x308] ss:$16 sps:$4 sm:$0xff]  }
 0x31f   :  { %3110 = vmatpush1.bf16.msra.mxu0 %v5291_v34  ;;  %3192 = vmatpush1.bf16.msra.mxu1 %v5294_v35  ;;  %v5353_v34 = vld [vmem:[#allocation7 + $0x324] ss:$16 sps:$4 sm:$0xff]   ;;  %v5356_v35 = vld [vmem:[#allocation7 + $0x32c] ss:$16 sps:$4 sm:$0xff]  }
 0x320   :  { %3120 = vmatprep.subr.bf16.mxu0 %v5299_v36  ;;  %3202 = vmatprep.subr.bf16.mxu1 %v5302_v37  ;;  %v5351_v36 = vld [vmem:[#allocation7 + $0x320] ss:$16 sps:$4 sm:$0xff]   ;;  %v5354_v37 = vld [vmem:[#allocation7 + $0x328] ss:$16 sps:$4 sm:$0xff]  }
 0x3b5   :  { %v2192_v41 = vpop.f32.mrb[4].mxu0  ;;  %v6050_v22 = vpop.f32.mrb[12].mxu1 }
 0x3b6   :  { %v4738_v42 = vadd.f32 %v2192_v41, %v1460_v21  ;;  %v2194_v44 = vpop.f32.mrb[5].mxu0  ;;  %v2276_v45 = vpop.f32.mrb[13].mxu1  ;;  %v5359_v21 = vld [vmem:[#allocation7 + $0x344] ss:$16 sps:$4 sm:$0xff]   ;;  %v5360_v41 = vld [vmem:[#allocation7 + $0x348] ss:$16 sps:$4 sm:$0xff]  }
 0x3b7   :  { %v4739_v43 = vadd.f32 %v2194_v44, %v1464_v39  ;;  %v4741_v46 = vadd.f32 %v2276_v45, %v1472_v40  ;;  %v2196_v47 = vpop.f32.mrb[6].mxu0  ;;  %v2278_v48 = vpop.f32.mrb[14].mxu1  ;;  %v5362_v39 = vld [vmem:[#allocation7 + $0x34c] ss:$16 sps:$4 sm:$0xff]   ;;  %v5357_v40 = vld [vmem:[#allocation7 + $0x340] ss:$16 sps:$4 sm:$0xff]   ;;  %v1468_v45 = vrot.slane %v6042_v38, %v6018_v29 }
 0x3b8   :  { %v2197_v49 = vpop.f32.mrb[7].mxu0  ;;  %v2279_v50 = vpop.f32.mrb[15].mxu1  ;;  %5569 = vtanh.f32 %v4738_v42  ;;  %v5365_v42 = vld [vmem:[#allocation7 + $0x364] ss:$16 sps:$4 sm:$0xff]   ;;  %v5368_v44 = vld [vmem:[#allocation7 + $0x36c] ss:$16 sps:$4 sm:$0xff]  }
 0x3b9   :  { %5571 = vtanh.f32 %v4739_v43  ;;  %v5363_v43 = vld [vmem:[#allocation7 + $0x360] ss:$16 sps:$4 sm:$0xff]   ;;  %v5371_v47 = vld [vmem:[#allocation7 + $0x384] ss:$16 sps:$4 sm:$0xff]   ;;  %v5374_v48 = vld [vmem:[#allocation7 + $0x38c] ss:$16 sps:$4 sm:$0xff]   ;;  %v4740_v49 = vadd.f32 %v6050_v22, %v1468_v45 }
 0x3ba   :  { %5573 = vtanh.f32 %v4741_v46  ;;  %v5366_v46 = vld [vmem:[#allocation7 + $0x368] ss:$16 sps:$4 sm:$0xff]   ;;  %v5369_v50 = vld [vmem:[#allocation7 + $0x380] ss:$16 sps:$4 sm:$0xff]   ;;  %v5497_v45 = vld [vmem:[#allocation10 + $0x24] ss:$8 sps:$4 sm:$0xff]  }
 0x3bb   :  { %5575 = vtanh.f32 %v4740_v49  ;;  %v5375_v38 = vld [vmem:[#allocation7 + $0x3a0] ss:$16 sps:$4 sm:$0xff]  }
 0x3bc   :  { %v5381_v22 = vld [vmem:[#allocation7 + $0x3c0] ss:$16 sps:$4 sm:$0xff]  }
 0x3bd   :  { %v5501_v49 = vld [vmem:[#allocation10 + $0x40] ss:$8 sps:$4 sm:$0xff]  }
 0x3c2   :  { %v5570_v51 = vpop.eup %5569 }
 0x3c3   :  { %v5572_v52 = vpop.eup %5571  ;;  %v2285_v57 = vpack.c.bf16 %v5570_v51, %v5570_v51  ;;  %v5372_v51 = vld [vmem:[#allocation7 + $0x388] ss:$16 sps:$4 sm:$0xff]  }
 0x3c4   :  { %v5574_v53 = vpop.eup %5573  ;;  %v2286_v54 = vpack.c.bf16 %v5572_v52, %v5572_v52  ;;  %v5377_v52 = vld [vmem:[#allocation7 + $0x3a4] ss:$16 sps:$4 sm:$0xff]  }
 0x3c5   :  { %v2288_v61 = vpack.c.bf16 %v5574_v53, %v5574_v53  ;;  %v5380_v53 = vld [vmem:[#allocation7 + $0x3ac] ss:$16 sps:$4 sm:$0xff]  }
 0x3c6   :  { %3111 = vmatprep.mubr.bf16.mxu0 %v2286_v54  ;;  %3193 = vmatprep.mubr.bf16.mxu1 %v2286_v54  ;;  %v5378_v54 = vld [vmem:[#allocation7 + $0x3a8] ss:$16 sps:$4 sm:$0xff]  }
 0x3c7   :  { %3112 = vmatmul.mubr.bf16.vlgmr.msra.gmra.mrb[8].mxu0 %v2285_v57  ;;  %3194 = vmatmul.mubr.bf16.vlgmr.msra.gmra.mrb[16].mxu1 %v2285_v57  ;;  %v5384_v57 = vld [vmem:[#allocation7 + $0x3c8] ss:$16 sps:$4 sm:$0xff]  }
 0x3c8   :  { %3121 = vmatpush1.bf16.msra.mxu0 %v5297_v55  ;;  %3203 = vmatpush1.bf16.msra.mxu1 %v5300_v56  ;;  %v5383_v55 = vld [vmem:[#allocation7 + $0x3c4] ss:$16 sps:$4 sm:$0xff]   ;;  %v5386_v56 = vld [vmem:[#allocation7 + $0x3cc] ss:$16 sps:$4 sm:$0xff]  }
 0x3c9   :  { %3152 = vmatprep.mubr.bf16.mxu0 %v2288_v61  ;;  %3234 = vmatprep.mubr.bf16.mxu1 %v2288_v61  ;;  %v5387_v61 = vld [vmem:[#allocation7 + $0x3e0] ss:$16 sps:$4 sm:$0xff]  }
 0x3ca   :  { %3122 = vmatprep.subr.bf16.mxu0 %v5305_v58  ;;  %3204 = vmatprep.subr.bf16.mxu1 %v5308_v59  ;;  %v5389_v58 = vld [vmem:[#allocation7 + $0x3e4] ss:$16 sps:$4 sm:$0xff]   ;;  %v5392_v59 = vld [vmem:[#allocation7 + $0x3ec] ss:$16 sps:$4 sm:$0xff]  }
 0x3cc   :  { %3123 = vmatpush1.bf16.msra.mxu0 %v5303_v62  ;;  %3205 = vmatpush1.bf16.msra.mxu1 %v5306_v63  ;;  %v5390_v62 = vld [vmem:[#allocation7 + $0x3e8] ss:$16 sps:$4 sm:$0xff]   ;;  %v5395_v63 = vld [vmem:[#allocation9 + $0x4] ss:$8 sps:$4 sm:$0xff]  }
 0x3cd   :  { %3124 = vmatprep.subr.bf16.mxu0 %v5311_v0  ;;  %3206 = vmatprep.subr.bf16.mxu1 %v5314_v2  ;;  %v5576_v0 = vpop.eup %5575  ;;  %v5393_v2 = vld [vmem:[#allocation9] ss:$8 sps:$4 sm:$0xff]  }
 0x3d0   :  { %3125 = vmatpush1.bf16.msra.mxu0 %v5309_v3  ;;  %3207 = vmatpush1.bf16.msra.mxu1 %v5312_v4  ;;  %v2287_v3 = vpack.c.bf16 %v5576_v0, %v5576_v0  ;;  %v5398_v4 = vld [vmem:[#allocation9 + $0x14] ss:$8 sps:$4 sm:$0xff]  }
 0x3d1   :  { %3126 = vmatprep.subr.bf16.mxu0 %v5317_v5  ;;  %3208 = vmatprep.subr.bf16.mxu1 %v5320_v6  ;;  %v5396_v5 = vld [vmem:[#allocation9 + $0x10] ss:$8 sps:$4 sm:$0xff]   ;;  %v5401_v6 = vld [vmem:[#allocation9 + $0x24] ss:$8 sps:$4 sm:$0xff]  }
 0x3d4   :  { %3127 = vmatpush1.bf16.msra.mxu0 %v5315_v7  ;;  %3209 = vmatpush1.bf16.msra.mxu1 %v5318_v8  ;;  %v5399_v7 = vld [vmem:[#allocation9 + $0x20] ss:$8 sps:$4 sm:$0xff]   ;;  %v5404_v8 = vld [vmem:[#allocation9 + $0x34] ss:$8 sps:$4 sm:$0xff]  }
 0x3d5   :  { %3128 = vmatprep.subr.bf16.mxu0 %v5323_v9  ;;  %3210 = vmatprep.subr.bf16.mxu1 %v5326_v10  ;;  %v5402_v9 = vld [vmem:[#allocation9 + $0x30] ss:$8 sps:$4 sm:$0xff]   ;;  %v5407_v10 = vld [vmem:[#allocation9 + $0x44] ss:$8 sps:$4 sm:$0xff]  }
 0x3d8   :  { %3129 = vmatpush1.bf16.msra.mxu0 %v5321_v11  ;;  %3211 = vmatpush1.bf16.msra.mxu1 %v5324_v12  ;;  %v5405_v11 = vld [vmem:[#allocation9 + $0x40] ss:$8 sps:$4 sm:$0xff]   ;;  %v5410_v12 = vld [vmem:[#allocation9 + $0x54] ss:$8 sps:$4 sm:$0xff]  }
 0x3d9   :  { %3130 = vmatprep.subr.bf16.mxu0 %v5329_v13  ;;  %3212 = vmatprep.subr.bf16.mxu1 %v5332_v60  ;;  %v5408_v13 = vld [vmem:[#allocation9 + $0x50] ss:$8 sps:$4 sm:$0xff]   ;;  %v5413_v60 = vld [vmem:[#allocation9 + $0x64] ss:$8 sps:$4 sm:$0xff]  }
 0x3dc   :  { %3131 = vmatpush1.bf16.msra.mxu0 %v5327_v14  ;;  %3213 = vmatpush1.bf16.msra.mxu1 %v5330_v15  ;;  %v5411_v14 = vld [vmem:[#allocation9 + $0x60] ss:$8 sps:$4 sm:$0xff]   ;;  %v5416_v15 = vld [vmem:[#allocation9 + $0x74] ss:$8 sps:$4 sm:$0xff]  }
 0x3dd   :  { %3132 = vmatprep.subr.bf16.mxu0 %v5335_v16  ;;  %3214 = vmatprep.subr.bf16.mxu1 %v5338_v1  ;;  %v5414_v16 = vld [vmem:[#allocation9 + $0x70] ss:$8 sps:$4 sm:$0xff]   ;;  %v5419_v1 = vld [vmem:[#allocation9 + $0x84] ss:$8 sps:$4 sm:$0xff]  }
 0x3e0   :  { %3133 = vmatpush1.bf16.msra.mxu0 %v5333_v17  ;;  %3215 = vmatpush1.bf16.msra.mxu1 %v5336_v18  ;;  %v5417_v17 = vld [vmem:[#allocation9 + $0x80] ss:$8 sps:$4 sm:$0xff]   ;;  %v5422_v18 = vld [vmem:[#allocation9 + $0x94] ss:$8 sps:$4 sm:$0xff]  }
 0x3e1   :  { %3134 = vmatprep.subr.bf16.mxu0 %v5341_v19  ;;  %3216 = vmatprep.subr.bf16.mxu1 %v5344_v25  ;;  %v5420_v19 = vld [vmem:[#allocation9 + $0x90] ss:$8 sps:$4 sm:$0xff]   ;;  %v5425_v25 = vld [vmem:[#allocation9 + $0xa4] ss:$8 sps:$4 sm:$0xff]  }
 0x3e4   :  { %3135 = vmatpush1.bf16.msra.mxu0 %v5339_v26  ;;  %3217 = vmatpush1.bf16.msra.mxu1 %v5342_v27  ;;  %v5423_v26 = vld [vmem:[#allocation9 + $0xa0] ss:$8 sps:$4 sm:$0xff]   ;;  %v5428_v27 = vld [vmem:[#allocation9 + $0xb4] ss:$8 sps:$4 sm:$0xff]  }
 0x3e5   :  { %3136 = vmatprep.subr.bf16.mxu0 %v5347_v28  ;;  %3218 = vmatprep.subr.bf16.mxu1 %v5350_v30  ;;  %v5426_v28 = vld [vmem:[#allocation9 + $0xb0] ss:$8 sps:$4 sm:$0xff]   ;;  %v5431_v30 = vld [vmem:[#allocation9 + $0xc4] ss:$8 sps:$4 sm:$0xff]  }
 0x3e8   :  { %3137 = vmatpush1.bf16.msra.mxu0 %v5345_v31  ;;  %3219 = vmatpush1.bf16.msra.mxu1 %v5348_v32  ;;  %v5429_v31 = vld [vmem:[#allocation9 + $0xc0] ss:$8 sps:$4 sm:$0xff]   ;;  %v5434_v32 = vld [vmem:[#allocation9 + $0xd4] ss:$8 sps:$4 sm:$0xff]  }
 0x3e9   :  { %3138 = vmatprep.subr.bf16.mxu0 %v5353_v34  ;;  %3220 = vmatprep.subr.bf16.mxu1 %v5356_v35  ;;  %v5432_v34 = vld [vmem:[#allocation9 + $0xd0] ss:$8 sps:$4 sm:$0xff]   ;;  %v5437_v35 = vld [vmem:[#allocation9 + $0xe4] ss:$8 sps:$4 sm:$0xff]  }
 0x3ec   :  { %3139 = vmatpush1.bf16.msra.mxu0 %v5351_v36  ;;  %3221 = vmatpush1.bf16.msra.mxu1 %v5354_v37  ;;  %v5435_v36 = vld [vmem:[#allocation9 + $0xe0] ss:$8 sps:$4 sm:$0xff]   ;;  %v5440_v37 = vld [vmem:[#allocation9 + $0xf4] ss:$8 sps:$4 sm:$0xff]  }
 0x3ed   :  { %3140 = vmatprep.subr.bf16.mxu0 %v5359_v21  ;;  %3222 = vmatprep.subr.bf16.mxu1 %v5362_v39  ;;  %v5438_v21 = vld [vmem:[#allocation9 + $0xf0] ss:$8 sps:$4 sm:$0xff]   ;;  %v5443_v39 = vld [vmem:[#allocation9 + $0x104] ss:$8 sps:$4 sm:$0xff]  }
 0x3f0   :  { %3141 = vmatpush1.bf16.msra.mxu0 %v5357_v40  ;;  %3223 = vmatpush1.bf16.msra.mxu1 %v5360_v41  ;;  %v5489_v40 = vld [vmem:[#allocation10] ss:$8 sps:$4 sm:$0xff]   ;;  %v5491_v41 = vld [vmem:[#allocation10 + $0x4] ss:$8 sps:$4 sm:$0xff]  }
 0x3f1   :  { %3142 = vmatprep.subr.bf16.mxu0 %v5365_v42  ;;  %3224 = vmatprep.subr.bf16.mxu1 %v5368_v44  ;;  %v5494_v42 = vld [vmem:[#allocation10 + $0x14] ss:$8 sps:$4 sm:$0xff]   ;;  %v5492_v44 = vld [vmem:[#allocation10 + $0x10] ss:$8 sps:$4 sm:$0xff]  }
 0x3f4   :  { %3143 = vmatpush1.bf16.msra.mxu0 %v5363_v43  ;;  %3225 = vmatpush1.bf16.msra.mxu1 %v5366_v46  ;;  %v5495_v43 = vld [vmem:[#allocation10 + $0x20] ss:$8 sps:$4 sm:$0xff]   ;;  %v5500_v46 = vld [vmem:[#allocation10 + $0x34] ss:$8 sps:$4 sm:$0xff]  }
 0x3f5   :  { %3144 = vmatprep.subr.bf16.mxu0 %v5371_v47  ;;  %3226 = vmatprep.subr.bf16.mxu1 %v5374_v48  ;;  %v5498_v47 = vld [vmem:[#allocation10 + $0x30] ss:$8 sps:$4 sm:$0xff]   ;;  %v5503_v48 = vld [vmem:[#allocation10 + $0x44] ss:$8 sps:$4 sm:$0xff]  }
 0x3f8   :  { %3145 = vmatpush1.bf16.msra.mxu0 %v5369_v50  ;;  %3227 = vmatpush1.bf16.msra.mxu1 %v5372_v51  ;;  %v5506_v50 = vld [vmem:[#allocation10 + $0x54] ss:$8 sps:$4 sm:$0xff]   ;;  %v5504_v51 = vld [vmem:[#allocation10 + $0x50] ss:$8 sps:$4 sm:$0xff]  }
 0x3f9   :  { %3146 = vmatprep.subr.bf16.mxu0 %v5377_v52  ;;  %3228 = vmatprep.subr.bf16.mxu1 %v5380_v53  ;;  %v5509_v52 = vld [vmem:[#allocation10 + $0x64] ss:$8 sps:$4 sm:$0xff]   ;;  %v5507_v53 = vld [vmem:[#allocation10 + $0x60] ss:$8 sps:$4 sm:$0xff]  }
 0x3fc   :  { %3147 = vmatpush1.bf16.msra.mxu0 %v5375_v38  ;;  %3229 = vmatpush1.bf16.msra.mxu1 %v5378_v54  ;;  %v5512_v38 = vld [vmem:[#allocation10 + $0x74] ss:$8 sps:$4 sm:$0xff]   ;;  %v5510_v54 = vld [vmem:[#allocation10 + $0x70] ss:$8 sps:$4 sm:$0xff]  }
 0x3fd   :  { %3148 = vmatprep.subr.bf16.mxu0 %v5383_v55  ;;  %3230 = vmatprep.subr.bf16.mxu1 %v5386_v56  ;;  %v5515_v55 = vld [vmem:[#allocation10 + $0x84] ss:$8 sps:$4 sm:$0xff]   ;;  %v5513_v56 = vld [vmem:[#allocation10 + $0x80] ss:$8 sps:$4 sm:$0xff]  }
 0x400   :  { %3149 = vmatpush1.bf16.msra.mxu0 %v5381_v22  ;;  %3231 = vmatpush1.bf16.msra.mxu1 %v5384_v57  ;;  %v5518_v22 = vld [vmem:[#allocation10 + $0x94] ss:$8 sps:$4 sm:$0xff]   ;;  %v5516_v57 = vld [vmem:[#allocation10 + $0x90] ss:$8 sps:$4 sm:$0xff]  }
 0x401   :  { %3150 = vmatprep.subr.bf16.mxu0 %v5389_v58  ;;  %3232 = vmatprep.subr.bf16.mxu1 %v5392_v59  ;;  %v5521_v58 = vld [vmem:[#allocation10 + $0xa4] ss:$8 sps:$4 sm:$0xff]   ;;  %v6058_v59 = vld [vmem:[%s6103_s9] sm:$0xf] }
 0x402   :  { %v2426_v0 = vrot.slane %v6058_v59, %v6004_v24 }
 0x404   :  { %3151 = vmatpush1.bf16.msra.mxu0 %v5387_v61  ;;  %3233 = vmatpush1.bf16.msra.mxu1 %v5390_v62  ;;  %v5519_v61 = vld [vmem:[#allocation10 + $0xa0] ss:$8 sps:$4 sm:$0xff]   ;;  %v5524_v62 = vld [vmem:[#allocation10 + $0xb4] ss:$8 sps:$4 sm:$0xff]  }
 0x405   :  { %3647 = vmatprep.subr.bf16.mxu0 %v5395_v63  ;;  %3937 = vmatprep.subr.bf16.mxu1 %v5491_v41  ;;  %v2422_v63 = vrot.slane %v6058_v59, %v6001_v23  ;;  %v5465_v41 = vld [vmem:[#allocation9 + $0x180] ss:$8 sps:$4 sm:$0xff]  }
 0x407   :  { %3153 = vmatmul.mubr.bf16.vlgmr.msra.gmra.mrb[8].mxu0 %v2287_v3  ;;  %3235 = vmatmul.mubr.bf16.vlgmr.msra.gmra.mrb[16].mxu1 %v2287_v3  ;;  %v5522_v3 = vld [vmem:[#allocation10 + $0xb0] ss:$8 sps:$4 sm:$0xff]  }
 0x408   :  { %3648 = vmatpush1.bf16.msra.mxu0 %v5393_v2  ;;  %3938 = vmatpush1.bf16.msra.mxu1 %v5489_v40  ;;  %v2434_v2 = vrot.slane %v6058_v59, %v6011_v33  ;;  %v5467_v40 = vld [vmem:[#allocation9 + $0x184] ss:$8 sps:$4 sm:$0xff]  }
 0x409   :  { %3649 = vmatprep.subr.bf16.mxu0 %v5398_v4  ;;  %3939 = vmatprep.subr.bf16.mxu1 %v5494_v42  ;;  %v5470_v42 = vld [vmem:[#allocation9 + $0x194] ss:$8 sps:$4 sm:$0xff]  }
 0x40c   :  { %3650 = vmatpush1.bf16.msra.mxu0 %v5396_v5  ;;  %3940 = vmatpush1.bf16.msra.mxu1 %v5492_v44  ;;  %v5468_v44 = vld [vmem:[#allocation9 + $0x190] ss:$8 sps:$4 sm:$0xff]  }
 0x40d   :  { %3651 = vmatprep.subr.bf16.mxu0 %v5401_v6  ;;  %3941 = vmatprep.subr.bf16.mxu1 %v5497_v45  ;;  %v5473_v45 = vld [vmem:[#allocation9 + $0x1a4] ss:$8 sps:$4 sm:$0xff]  }
 0x410   :  { %3652 = vmatpush1.bf16.msra.mxu0 %v5399_v7  ;;  %3942 = vmatpush1.bf16.msra.mxu1 %v5495_v43  ;;  %v5471_v43 = vld [vmem:[#allocation9 + $0x1a0] ss:$8 sps:$4 sm:$0xff]  }
 0x411   :  { %3653 = vmatprep.subr.bf16.mxu0 %v5404_v8  ;;  %3943 = vmatprep.subr.bf16.mxu1 %v5500_v46  ;;  %v5476_v46 = vld [vmem:[#allocation9 + $0x1b4] ss:$8 sps:$4 sm:$0xff]  }
 0x414   :  { %3654 = vmatpush1.bf16.msra.mxu0 %v5402_v9  ;;  %3944 = vmatpush1.bf16.msra.mxu1 %v5498_v47  ;;  %v2430_v47 = vrot.slane %v6058_v59, %v6018_v29  ;;  %v5486_v29 = vld [vmem:[#allocation9 + $0x1f0] ss:$8 sps:$4 sm:$0xff]   ;;  %v5530_v59 = vld [vmem:[#allocation10 + $0xd4] ss:$8 sps:$4 sm:$0xff]  }
 0x415   :  { %3655 = vmatprep.subr.bf16.mxu0 %v5407_v10  ;;  %3945 = vmatprep.subr.bf16.mxu1 %v5503_v48  ;;  %v5474_v48 = vld [vmem:[#allocation9 + $0x1b0] ss:$8 sps:$4 sm:$0xff]  }
 0x418   :  { %3656 = vmatpush1.bf16.msra.mxu0 %v5405_v11  ;;  %3946 = vmatpush1.bf16.msra.mxu1 %v5501_v49  ;;  %v5479_v49 = vld [vmem:[#allocation9 + $0x1c4] ss:$8 sps:$4 sm:$0xff]  }
 0x419   :  { %3657 = vmatprep.subr.bf16.mxu0 %v5410_v12  ;;  %3947 = vmatprep.subr.bf16.mxu1 %v5506_v50 }
 0x41c   :  { %3658 = vmatpush1.bf16.msra.mxu0 %v5408_v13  ;;  %3948 = vmatpush1.bf16.msra.mxu1 %v5504_v51  ;;  %v5477_v51 = vld [vmem:[#allocation9 + $0x1c0] ss:$8 sps:$4 sm:$0xff]  }
 0x41d   :  { %3659 = vmatprep.subr.bf16.mxu0 %v5413_v60  ;;  %3949 = vmatprep.subr.bf16.mxu1 %v5509_v52  ;;  %v5482_v52 = vld [vmem:[#allocation9 + $0x1d4] ss:$8 sps:$4 sm:$0xff]  }
 0x420   :  { %3660 = vmatpush1.bf16.msra.mxu0 %v5411_v14  ;;  %3950 = vmatpush1.bf16.msra.mxu1 %v5507_v53  ;;  %v5480_v53 = vld [vmem:[#allocation9 + $0x1d0] ss:$8 sps:$4 sm:$0xff]  }
 0x421   :  { %3661 = vmatprep.subr.bf16.mxu0 %v5416_v15  ;;  %3951 = vmatprep.subr.bf16.mxu1 %v5512_v38  ;;  %v5485_v38 = vld [vmem:[#allocation9 + $0x1e4] ss:$8 sps:$4 sm:$0xff]  }
 0x424   :  { %3662 = vmatpush1.bf16.msra.mxu0 %v5414_v16  ;;  %3952 = vmatpush1.bf16.msra.mxu1 %v5510_v54  ;;  %v5483_v54 = vld [vmem:[#allocation9 + $0x1e0] ss:$8 sps:$4 sm:$0xff]  }
 0x425   :  { %3663 = vmatprep.subr.bf16.mxu0 %v5419_v1  ;;  %3953 = vmatprep.subr.bf16.mxu1 %v5515_v55  ;;  %v5441_v1 = vld [vmem:[#allocation9 + $0x100] ss:$8 sps:$4 sm:$0xff]   ;;  %v5488_v55 = vld [vmem:[#allocation9 + $0x1f4] ss:$8 sps:$4 sm:$0xff]  }
 0x428   :  { %3664 = vmatpush1.bf16.msra.mxu0 %v5417_v17  ;;  %3954 = vmatpush1.bf16.msra.mxu1 %v5513_v56 }
 0x429   :  { %3665 = vmatprep.subr.bf16.mxu0 %v5422_v18  ;;  %3955 = vmatprep.subr.bf16.mxu1 %v5518_v22  ;;  %v5446_v18 = vld [vmem:[#allocation9 + $0x114] ss:$8 sps:$4 sm:$0xff]  }
 0x42c   :  { %3666 = vmatpush1.bf16.msra.mxu0 %v5420_v19  ;;  %3956 = vmatpush1.bf16.msra.mxu1 %v5516_v57  ;;  %v5527_v57 = vld [vmem:[#allocation10 + $0xc4] ss:$8 sps:$4 sm:$0xff]  }
 0x42d   :  { %3667 = vmatprep.subr.bf16.mxu0 %v5425_v25  ;;  %3957 = vmatprep.subr.bf16.mxu1 %v5521_v58  ;;  %v5444_v25 = vld [vmem:[#allocation9 + $0x110] ss:$8 sps:$4 sm:$0xff]   ;;  %v5525_v58 = vld [vmem:[#allocation10 + $0xc0] ss:$8 sps:$4 sm:$0xff]  }
 0x430   :  { %3668 = vmatpush1.bf16.msra.mxu0 %v5423_v26  ;;  %3958 = vmatpush1.bf16.msra.mxu1 %v5519_v61  ;;  %v5449_v26 = vld [vmem:[#allocation9 + $0x124] ss:$8 sps:$4 sm:$0xff]   ;;  %v5528_v61 = vld [vmem:[#allocation10 + $0xd0] ss:$8 sps:$4 sm:$0xff]  }
 0x431   :  { %3669 = vmatprep.subr.bf16.mxu0 %v5428_v27  ;;  %3959 = vmatprep.subr.bf16.mxu1 %v5524_v62  ;;  %v5447_v27 = vld [vmem:[#allocation9 + $0x120] ss:$8 sps:$4 sm:$0xff]   ;;  %v5533_v62 = vld [vmem:[#allocation10 + $0xe4] ss:$8 sps:$4 sm:$0xff]  }
 0x434   :  { %3670 = vmatpush1.bf16.msra.mxu0 %v5426_v28  ;;  %3960 = vmatpush1.bf16.msra.mxu1 %v5522_v3  ;;  %v5452_v28 = vld [vmem:[#allocation9 + $0x134] ss:$8 sps:$4 sm:$0xff]   ;;  %v5537_v3 = vld [vmem:[#allocation12 + $0x40] sm:$0xff]  }
 0x435   :  { %3671 = vmatprep.subr.bf16.mxu0 %v5431_v30  ;;  %v5450_v30 = vld [vmem:[#allocation9 + $0x130] ss:$8 sps:$4 sm:$0xff]   ;;  %3961 = vmatprep.subr.bf16.mxu1 %v5527_v57 }
 0x438   :  { %3672 = vmatpush1.bf16.msra.mxu0 %v5429_v31  ;;  %v5455_v31 = vld [vmem:[#allocation9 + $0x144] ss:$8 sps:$4 sm:$0xff]   ;;  %3962 = vmatpush1.bf16.msra.mxu1 %v5525_v58 }
 0x439   :  { %3673 = vmatprep.subr.bf16.mxu0 %v5434_v32  ;;  %v5453_v32 = vld [vmem:[#allocation9 + $0x140] ss:$8 sps:$4 sm:$0xff]   ;;  %3963 = vmatprep.subr.bf16.mxu1 %v5530_v59 }
 0x43c   :  { %3674 = vmatpush1.bf16.msra.mxu0 %v5432_v34  ;;  %v5458_v34 = vld [vmem:[#allocation9 + $0x154] ss:$8 sps:$4 sm:$0xff]   ;;  %3964 = vmatpush1.bf16.msra.mxu1 %v5528_v61 }
 0x43d   :  { %3675 = vmatprep.subr.bf16.mxu0 %v5437_v35  ;;  %v5456_v35 = vld [vmem:[#allocation9 + $0x150] ss:$8 sps:$4 sm:$0xff]   ;;  %3965 = vmatprep.subr.bf16.mxu1 %v5533_v62 }
 0x440   :  { %3676 = vmatpush1.bf16.msra.mxu0 %v5435_v36  ;;  %v5461_v36 = vld [vmem:[#allocation9 + $0x164] ss:$8 sps:$4 sm:$0xff]  }
 0x441   :  { %3677 = vmatprep.subr.bf16.mxu0 %v5440_v37  ;;  %v5459_v37 = vld [vmem:[#allocation9 + $0x160] ss:$8 sps:$4 sm:$0xff]  }
 0x444   :  { %3678 = vmatpush1.bf16.msra.mxu0 %v5438_v21  ;;  %v5464_v21 = vld [vmem:[#allocation9 + $0x174] ss:$8 sps:$4 sm:$0xff]  }
 0x445   :  { %3688 = vmatprep.subr.bf16.mxu0 %v5443_v39  ;;  %v5462_v39 = vld [vmem:[#allocation9 + $0x170] ss:$8 sps:$4 sm:$0xff]  }
 0x4da   :  { %v3154_v4 = vpop.f32.mrb[8].mxu0  ;;  %v6066_v5 = vpop.f32.mrb[16].mxu1 }
 0x4db   :  { %v4742_v6 = vadd.f32 %v3154_v4, %v2422_v63  ;;  %v3156_v7 = vpop.f32.mrb[9].mxu0  ;;  %v3238_v8 = vpop.f32.mrb[17].mxu1  ;;  %v4744_v50 = vadd.f32 %v6066_v5, %v2430_v47  ;;  %v5531_v63 = vld [vmem:[#allocation10 + $0xe0] ss:$8 sps:$4 sm:$0xff]  }
 0x4dc   :  { %v4743_v9 = vadd.f32 %v3156_v7, %v2426_v0  ;;  %v4745_v10 = vadd.f32 %v3238_v8, %v2434_v2  ;;  %v3158_v11 = vpop.f32.mrb[10].mxu0  ;;  %v3240_v12 = vpop.f32.mrb[18].mxu1  ;;  %3966 = vmatpush1.bf16.msra.mxu1 %v5531_v63  ;;  %v5536_v0 = vld [vmem:[#allocation10 + $0xf4] ss:$8 sps:$4 sm:$0xff]   ;;  %v5534_v2 = vld [vmem:[#allocation10 + $0xf0] ss:$8 sps:$4 sm:$0xff]  }
 0x4dd   :  { %v3159_v13 = vpop.f32.mrb[11].mxu0  ;;  %v3241_v60 = vpop.f32.mrb[19].mxu1  ;;  %5577 = vtanh.f32 %v4742_v6  ;;  %3967 = vmatprep.subr.bf16.mxu1 %v5536_v0  ;;  %v3315_v4 = vld [vmem:[%s6104_s10] sm:$0x3] }
 0x4de   :  { %5579 = vtanh.f32 %v4743_v9  ;;  %v3320_v5 = vrot.slane %v3315_v4, %v6001_v23  ;;  %v3324_v6 = vrot.slane %v3315_v4, %v6004_v24 }
 0x4df   :  { %5581 = vtanh.f32 %v4745_v10 }
 0x4e0   :  { %5583 = vtanh.f32 %v4744_v50  ;;  %3968 = vmatpush1.bf16.msra.mxu1 %v5534_v2 }
 0x4e1   :  { %4712 = vmatprep.subr.bf16.mxu1 %v5537_v3  ;;  %v5773_v3 = vmov 0.0  }
 0x4e7   :  { %v5578_v33 = vpop.eup %5577 }
 0x4e8   :  { %v5580_v14 = vpop.eup %5579  ;;  %v3247_v17 = vpack.c.bf16 %v5578_v33, %v5578_v33 }
 0x4e9   :  { %v5582_v15 = vpop.eup %5581  ;;  %v3248_v16 = vpack.c.bf16 %v5580_v14, %v5580_v14  ;;  %v5538_v14 = vld [vmem:[#allocation12] sm:$0xff]  }
 0x4ea   :  { %v3250_v19 = vpack.c.bf16 %v5582_v15, %v5582_v15  ;;  %v5584_v56 = vpop.eup %5583 }
 0x4eb   :  { %3679 = vmatprep.mubr.bf16.mxu0 %v3248_v16  ;;  %v3249_v22 = vpack.c.bf16 %v5584_v56, %v5584_v56  ;;  %v5539_v16 = vld [vmem:[#allocation12 + $0x48] sm:$0xff]  }
 0x4ec   :  { %3680 = vmatmul.mubr.bf16.vlgmr.msra.gmra.mrb[12].mxu0 %v3247_v17  ;;  %v5541_v17 = vld [vmem:[#allocation12 + $0x50] sm:$0xff]  }
 0x4ed   :  { %3689 = vmatpush1.bf16.msra.mxu0 %v5441_v1  ;;  %3720 = vmatprep.mubr.bf16.mxu0 %v3250_v19  ;;  %v5540_v1 = vld [vmem:[#allocation12 + $0x8] sm:$0xff]   ;;  %v5543_v19 = vld [vmem:[#allocation12 + $0x58] sm:$0xff]  }
 0x4ee   :  { %3690 = vmatprep.subr.bf16.mxu0 %v5446_v18  ;;  %v5542_v18 = vld [vmem:[#allocation12 + $0x10] sm:$0xff]  }
 0x4f1   :  { %3691 = vmatpush1.bf16.msra.mxu0 %v5444_v25  ;;  %v5544_v25 = vld [vmem:[#allocation12 + $0x18] sm:$0xff]  }
 0x4f2   :  { %3692 = vmatprep.subr.bf16.mxu0 %v5449_v26  ;;  %v5545_v26 = vld [vmem:[#allocation12 + $0x60] sm:$0xff]  }
 0x4f5   :  { %3693 = vmatpush1.bf16.msra.mxu0 %v5447_v27  ;;  %v5546_v27 = vld [vmem:[#allocation12 + $0x20] sm:$0xff]  }
 0x4f6   :  { %3694 = vmatprep.subr.bf16.mxu0 %v5452_v28  ;;  %v5547_v28 = vld [vmem:[#allocation12 + $0x68] sm:$0xff]  }
 0x4f9   :  { %3695 = vmatpush1.bf16.msra.mxu0 %v5450_v30  ;;  %v5548_v30 = vld [vmem:[#allocation12 + $0x28] sm:$0xff]  }
 0x4fa   :  { %3696 = vmatprep.subr.bf16.mxu0 %v5455_v31  ;;  %v5549_v31 = vld [vmem:[#allocation12 + $0x70] sm:$0xff]  }
 0x4fd   :  { %3697 = vmatpush1.bf16.msra.mxu0 %v5453_v32  ;;  %v5550_v32 = vld [vmem:[#allocation12 + $0x30] sm:$0xff]  }
 0x4fe   :  { %3698 = vmatprep.subr.bf16.mxu0 %v5458_v34  ;;  %v5551_v34 = vld [vmem:[#allocation12 + $0x78] sm:$0xff]  }
 0x501   :  { %3699 = vmatpush1.bf16.msra.mxu0 %v5456_v35  ;;  %v5552_v35 = vld [vmem:[#allocation12 + $0x38] sm:$0xff]  }
 0x502   :  { %3700 = vmatprep.subr.bf16.mxu0 %v5461_v36  ;;  %v3765_v36 = vld [vmem:[%s6106_s12] sm:$0x3] }
 0x505   :  { %3701 = vmatpush1.bf16.msra.mxu0 %v5459_v37  ;;  %v3770_v37 = vrot.slane %v3765_v36, %v6001_v23  ;;  %v4157_v23 = vld [vmem:[%s6109_s15] sm:$0xf] }
 0x506   :  { %3702 = vmatprep.subr.bf16.mxu0 %v5464_v21  ;;  %v3774_v21 = vrot.slane %v3765_v36, %v6004_v24  ;;  %v4694_v24 = vld [vmem:[%s6108_s14] ss:$0 sm:$0xff] }
 0x509   :  { %3703 = vmatpush1.bf16.msra.mxu0 %v5462_v39 }
 0x50a   :  { %3704 = vmatprep.subr.bf16.mxu0 %v5467_v40 }
 0x50d   :  { %3705 = vmatpush1.bf16.msra.mxu0 %v5465_v41 }
 0x50e   :  { %3706 = vmatprep.subr.bf16.mxu0 %v5470_v42 }
 0x511   :  { %3707 = vmatpush1.bf16.msra.mxu0 %v5468_v44 }
 0x512   :  { %3708 = vmatprep.subr.bf16.mxu0 %v5473_v45 }
 0x515   :  { %3709 = vmatpush1.bf16.msra.mxu0 %v5471_v43 }
 0x516   :  { %3710 = vmatprep.subr.bf16.mxu0 %v5476_v46 }
 0x519   :  { %3711 = vmatpush1.bf16.msra.mxu0 %v5474_v48 }
 0x51a   :  { %3712 = vmatprep.subr.bf16.mxu0 %v5479_v49 }
 0x51d   :  { %3713 = vmatpush1.bf16.msra.mxu0 %v5477_v51  ;;  %v4161_v51 = vand.u32 127, %v171_v20 }
 0x51e   :  { %3714 = vmatprep.subr.bf16.mxu0 %v5482_v52 }
 0x51f   :  { %vm4162_vm1 = vcmp.lt.s32.totalorder %v4161_v51, 16  ;;  %vm4185_vm3 = vcmp.eq.s32.totalorder %v4161_v51, 17 }
 0x521   :  { %3715 = vmatpush1.bf16.msra.mxu0 %v5480_v53  ;;  %v4158_v53 = vunpack.c.l.bf16 %v4157_v23 }
 0x522   :  { %3716 = vmatprep.subr.bf16.mxu0 %v5485_v38 }
 0x525   :  { %3717 = vmatpush1.bf16.msra.mxu0 %v5483_v54 }
 0x526   :  { %3718 = vmatprep.subr.bf16.mxu0 %v5488_v55 }
 0x529   :  { %3719 = vmatpush1.bf16.msra.mxu0 %v5486_v29 }
 0x52c   :  { %3721 = vmatmul.mubr.bf16.vlgmr.msra.gmra.mrb[12].mxu0 %v3249_v22  ;;  %v4174_v22 = vld [vmem:[%s6110_s16] sm:$0xff] }
 0x52d   :  { %4176 = vperm.xlu1 %4791, %v4174_v22  }
 0x5ac   :  { %v4177_v62 = vpop.permute.xlu1 %4176 }
 0x5ad   :  { %vm4178_vm2 = vcmp.eq.s32.totalorder %v4161_v51, %v4177_v62 }
 0x5ae   :  { %v4711_v4 = vsel %vm4178_vm2, 1.0, %v5773_v3 }
 0x5ff   :  { %v3722_v7 = vpop.f32.mrb[12].mxu0 }
 0x600   :  { %v4746_v8 = vadd.f32 %v3722_v7, %v3320_v5  ;;  %v3724_v9 = vpop.f32.mrb[13].mxu0 }
 0x601   :  { %v4747_v10 = vadd.f32 %v3724_v9, %v3324_v6  ;;  %v3726_v11 = vpop.f32.mrb[14].mxu0 }
 0x602   :  { %5585 = vtanh.f32 %v4746_v8  ;;  %v3727_v12 = vpop.f32.mrb[15].mxu0 }
 0x603   :  { %5587 = vtanh.f32 %v4747_v10 }
 0x60c   :  { %v5586_v13 = vpop.eup %5585 }
 0x60d   :  { %v5588_v60 = vpop.eup %5587  ;;  %v3731_v15 = vpack.c.bf16 %v5586_v13, %v5586_v13 }
 0x60e   :  { %v3732_v33 = vpack.c.bf16 %v5588_v60, %v5588_v60 }
 0x610   :  { %3969 = vmatprep.mubr.bf16.mxu1 %v3732_v33 }
 0x611   :  { %3970 = vmatmul.mubr.bf16.vlgmr.msra.gmra.mrb[20].mxu1 %v3731_v15 }
 0x612   :  { %4713 = vmatpush3.bf16.msra.mxu1 %v5538_v14 }
 0x613   :  { %4714 = vmatprep.subr.bf16.mxu1 %v5539_v16 }
 0x616   :  { %4715 = vmatpush3.bf16.msra.mxu1 %v5540_v1 }
 0x617   :  { %4716 = vmatprep.subr.bf16.mxu1 %v5541_v17 }
 0x61a   :  { %4717 = vmatpush3.bf16.msra.mxu1 %v5542_v18 }
 0x61b   :  { %4718 = vmatprep.subr.bf16.mxu1 %v5543_v19 }
 0x61e   :  { %4719 = vmatpush3.bf16.msra.mxu1 %v5544_v25 }
 0x61f   :  { %4720 = vmatprep.subr.bf16.mxu1 %v5545_v26 }
 0x622   :  { %4721 = vmatpush3.bf16.msra.mxu1 %v5546_v27 }
 0x623   :  { %4722 = vmatprep.subr.bf16.mxu1 %v5547_v28 }
 0x626   :  { %4723 = vmatpush3.bf16.msra.mxu1 %v5548_v30 }
 0x627   :  { %4724 = vmatprep.subr.bf16.mxu1 %v5549_v31 }
 0x62a   :  { %4725 = vmatpush3.bf16.msra.mxu1 %v5550_v32 }
 0x62b   :  { %4726 = vmatprep.subr.bf16.mxu1 %v5551_v34 }
 0x62e   :  { %4727 = vmatpush3.bf16.msra.mxu1 %v5552_v35 }
 0x6e4   :  { %v3971_v39 = vpop.f32.mrb[20].mxu1 }
 0x6e5   :  { %v3972_v40 = vadd.f32 %v3971_v39, %v3770_v37  ;;  %v3973_v41 = vpop.f32.mrb[21].mxu1 }
 0x6e6   :  { %v3974_v42 = vadd.f32 %v3973_v41, %v3774_v21  ;;  %v3975_v44 = vpop.f32.mrb[22].mxu1 }
 0x6e7   :  { %5589 = vtanh.f32 %v3972_v40  ;;  %v3976_v45 = vpop.f32.mrb[23].mxu1 }
 0x6e8   :  { %5591 = vtanh.f32 %v3974_v42 }
 0x6f1   :  { %v5590_v43 = vpop.eup %5589 }
 0x6f2   :  { %v5592_v46 = vpop.eup %5591  ;;  %v3980_v48 = vpack.c.bf16 %v5590_v43, %v5590_v43 }
 0x6f3   :  { %v3981_v47 = vpack.c.bf16 %v5592_v46, %v5592_v46 }
 0x6f5   :  { %4149 = vmatprep.mubr.bf16.mxu1 %v3981_v47 }
 0x6f6   :  { %4150 = vmatmul.mubr.bf16.vlgmr.msra.gmra.mrb[24].mxu1 %v3980_v48 }
 0x7c9   :  { %v4728_v49 = vpop.f32.mrb[24].mxu1 }
 0x7ca   :  { %v4729_v50 = vpop.f32.mrb[25].mxu1 }
 0x7cb   :  { %v4730_v52 = vadd.f32 %v4729_v50, %v4728_v49  ;;  %v4731_v38 = vpop.f32.mrb[26].mxu1 }
 0x7cc   :  { %v4732_v54 = vpop.f32.mrb[27].mxu1 }
 0x7cd   :  { %v4152_v55 = vadd.f32 %v4730_v52, %v4694_v24 }
 0x7cf   :  { %v4159_v29 = vadd.f32 %v4158_v53, %v4152_v55 }
 0x7d1   :  { %v4163_v56 = vsel %vm4162_vm1, %v4159_v29, -1e+30 }
 0x7d2   :  { %4164 = vmax.xlane.f32.xlu0 %v4163_v56 }
 0x85f   :  { %v4165_v57 = vpop.xlane.xlu0 %4164 }
 0x860   :  { %v4166_v58 = vsub.f32 %v4163_v56, %v4165_v57 }
 0x862   :  { %v4167_v59 = vmul.f32 1.442695, %v4166_v58 }
 0x864   :  { %5593 = vpow2.f32 %v4167_v59 }
 0x86e   :  { %v5594_v61 = vpop.eup %5593 }
 0x86f   :  { %4169 = vadd.xlane.f32.xlu0 %v5594_v61 }
 0x8fc   :  { %v4170_v20 = vpop.xlane.xlu0 %4169 }
 0x8fd   :  { %5595 = vlog2.f32 %v4170_v20 }
 0x907   :  { %v5596_v63 = vpop.eup %5595 }
 0x908   :  { %v4172_v0 = vmul.f32 0.6931472, %v5596_v63 }
 0x90a   :  { %v4173_v2 = vadd.f32 %v4172_v0, %v4165_v57 }
 0x90c   :  { %v4181_v5 = vsub.f32 %v4159_v29, %v4173_v2 }
 0x90e   :  { %v4182_v6 = vmul.f32 %v4711_v4, %v4181_v5 }
 0x910   :  { %4183 = vadd.xlane.f32.xlu1 %v4182_v6 }
 0x99d   :  { %v4184_v7 = vpop.xlane.xlu1 %4183 }
 0x99e   :  { %v4186_v8 = vsel %vm4185_vm3, %v4184_v7, %v4159_v29 }
 0x99f   :  { %4187 = vst [vmem:[%s6111_s17] sm:$0xff] %v4186_v8 }
 0x9a0   :  { %4192 = vsyncpa [#allocation3], 1 }
 0x9a1   :  { %4193 = vsyncpa [#allocation5], 1 }
 0x9a2   :  { %4194 = vsyncpa [#allocation8], 1 }
 0x9a3   :  { %4195 = vsyncpa [#allocation11], 1 }

</bundles_post_ra>
